<compile_context>
chip_gen: v7x
topology: tpu7x:2x2x1
jax: 0.10.0
libtpu: 0.0.40
codegen_flags: <defaults>
</compile_context>

<pallas_src>
import math
from functools import partial

import jax
import jax.numpy as jnp
from jax import lax
from jax.experimental import pallas as pl
from jax.experimental.pallas import tpu as pltpu

NUM_HEADS = 4
LN_EPS = 1e-5
TARGET_ROWS = 512            # rows (= Bt*S) per grid step


def _layernorm(x, g, b):
    mu = jnp.mean(x, axis=-1, keepdims=True)
    var = jnp.mean((x - mu) ** 2, axis=-1, keepdims=True)
    return (x - mu) * lax.rsqrt(var + LN_EPS) * g[None, :] + b[None, :]


def _attn_bias(Bt, S, dtype=jnp.float32):
    """Additive mask over the flattened (Bt*S, Bt*S) scores: 0 where key position is
    in the same sequence and not in the future, -1e9 elsewhere.  Data-independent —
    built once in the wrapper and passed as a constant-index input."""
    N = Bt * S
    r = jnp.arange(N, dtype=jnp.int32)
    same = (r[:, None] // S) == (r[None, :] // S)
    causal = r[:, None] >= r[None, :]
    return jnp.where(same & causal, 0.0, -1e9).astype(dtype)


def _sakt_tile_math(q, a_b, nq, bias, wsq, posb, vec, *, num_heads=NUM_HEADS,
                    in_kernel=True):
    """Forward math for one (Bt, S, D) tile; shared by the kernel and the reference.

    q, nq : (Bt, S, D)  bf16  question / next-question embeddings
    a_b   : (Bt, S, 1)  bf16  answer in {0., 1.}
    bias  : (N, N)      f32   causal + block-diagonal additive mask (N = Bt*S)
    wsq   : (9, D, D)   bf16  [Wq*scale, Wk, Wi_top@Wv, Wi_bot@Wv, Wo, W1, W2,
                               Wh_ks, Wh_nq]
    posb  : (2, S, D)   f32   [pos@Wk + bk, (pos + b_inter)@Wv + bv]
    vec   : (11, D)     f32   [bq*scale, bo, ln1_g, ln1_b, b1, b2, ln2_g, ln2_b,
                               b_hid, w_pred, b_pred(bcast)]
    returns (1, N) f32 sigmoid predictions (lane-dense).
    """
    Bt, S, D = q.shape
    H = num_heads
    dh = D // H
    N = Bt * S
    f32 = jnp.float32
    cdt = q.dtype                                            # MXU input dtype (bf16)
    mm = partial(jnp.einsum, preferred_element_type=f32)

    Wq, Wk, Wiv_top, Wiv_bot, Wo, W1, W2, Wh_ks, Wh_nq = (wsq[i] for i in range(9))
    bq, bo = vec[0], vec[1]
    ln1_g, ln1_b, b1, b2 = vec[2], vec[3], vec[4], vec[5]
    ln2_g, ln2_b, b_hid, w_pred = vec[6], vec[7], vec[8], vec[9]
    b_pred = vec[10:11, 0:1]                                 # (1, 1)
    posK, posV = posb[0], posb[1]                            # (S, D) f32 each

    q2 = q.reshape(N, D)                                     # bf16
    nq2 = nq.reshape(N, D)
    qa1 = (q * a_b).reshape(N, D)                            # a == 1 half (exact bf16)
    qa0 = (q * (1.0 - a_b)).reshape(N, D)                    # a == 0 half

    # ---- full-width (N,D)@(D,D) Q/K/V projections; pos & biases pre-folded -------
    Qm = mm('nd,df->nf', nq2, Wq) + bq[None, :]              # (N, D) f32 (scale folded)
    Km = (mm('nd,df->nf', q2, Wk).reshape(Bt, S, D) + posK[None]).reshape(N, D)
    Vm = ((mm('nd,df->nf', qa1, Wiv_top) + mm('nd,df->nf', qa0, Wiv_bot)
           ).reshape(Bt, S, D) + posV[None]).reshape(N, D)

    # ---- per-head lane-dense (N, N) masked attention ------------------------------
    attn = jnp.zeros((N, D), f32)
    for h in range(H):
        sl = slice(h * dh, (h + 1) * dh)
        qh = Qm[:, sl].astype(cdt)                           # (N, dh)
        kh = Km[:, sl].astype(cdt)
        vh = Vm[:, sl].astype(cdt)
        s = mm('nd,md->nm', qh, kh) + bias                   # (N, N) f32, lane-dense
        s = s - jnp.max(s, axis=-1, keepdims=True)
        p = jnp.exp(s)
        denom = jnp.sum(p, axis=-1, keepdims=True)
        inv = pl.reciprocal(denom, approx=True) if in_kernel else 1.0 / denom
        p = p * inv
        ctx = mm('nm,md->nd', p.astype(cdt), vh)             # (N, dh) f32
        attn = attn + mm('nf,fd->nd', ctx.astype(cdt), Wo[sl, :])
    attn = attn + bo[None, :]

    # ---- residual + LayerNorm + FFN ------------------------------------------------
    nq32 = nq2.astype(f32)
    h1 = _layernorm(attn + nq32, ln1_g, ln1_b)
    ffn = jnp.maximum(mm('nd,df->nf', h1.astype(cdt), W1) + b1[None, :], 0.0)
    ffn = mm('nd,df->nf', ffn.astype(cdt), W2) + b2[None, :]
    ks = _layernorm(ffn + h1, ln2_g, ln2_b)                  # ks_emb

    # ---- SAKT head: hidden(cat(ks_emb, next_q)) -> relu -> predict -> sigmoid ------
    y = (mm('nd,df->nf', ks.astype(cdt), Wh_ks)
         + mm('nd,df->nf', nq2, Wh_nq) + b_hid[None, :])
    y = jnp.maximum(y, 0.0)
    # Lane-dense logits: (1, D) x (N, D)^T -> (1, N); the store target is N lanes.
    logits = mm('od,nd->on', w_pred[None, :].astype(cdt), y.astype(cdt)) + b_pred
    return jax.nn.sigmoid(logits)                            # (1, N) f32


def sakt_kernel(q_ref, a_ref, nq_ref, bias_ref, wsq_ref, posb_ref, vec_ref, out_ref):
    out_ref[0] = _sakt_tile_math(
        q_ref[...], a_ref[...], nq_ref[...], bias_ref[...], wsq_ref[...],
        posb_ref[...], vec_ref[...], in_kernel=True)


def sakt_forward(q_ids, answers, nq_ids, params, *, block_batch=None):
    """q_ids, answers, nq_ids: int32 (B, S). Returns float32 (B, S) probabilities."""
    emb = params["emb"]
    B, S = q_ids.shape
    D = emb.shape[1]

    if block_batch is not None:
        Bt = int(block_batch)
    else:
        # 512-1024 rows per step, but keep >= 2 grid steps when the batch allows so
        # v7x's two TensorCores both get work (batch axis is "parallel").
        Bt = min(max(1, TARGET_ROWS // S), max(1, -(-B // 2)))
        T0 = -(-B // Bt)
        if T0 > 2 and T0 % 2:                                # keep the grid even (v7x)
            Bt = -(-B // (T0 + 1))
    T = -(-B // Bt)
    B_pad = T * Bt
    N = Bt * S

    pad = ((0, B_pad - B), (0, 0))
    # TODO(synk): at large B, move this gather in-kernel via scalar-prefetched ids
    #             (PrefetchScalarGridSpec) to avoid the extra HBM round trip.
    q = jnp.take(emb, jnp.pad(q_ids, pad), axis=0)           # (B_pad, S, D) bf16
    nq = jnp.take(emb, jnp.pad(nq_ids, pad), axis=0)
    a_b = jnp.pad(answers, pad).astype(emb.dtype)[..., None] # (B_pad, S, 1) bf16
    bias = _attn_bias(Bt, S)                                 # (N, N) f32 constant

    out = pl.pallas_call(
        sakt_kernel,
        out_shape=jax.ShapeDtypeStruct((T, 1, N), jnp.float32),
        grid=(T,),
        in_specs=[
            pl.BlockSpec((Bt, S, D), lambda t: (t, 0, 0)),        # q embeddings
            pl.BlockSpec((Bt, S, 1), lambda t: (t, 0, 0)),        # answers
            pl.BlockSpec((Bt, S, D), lambda t: (t, 0, 0)),        # next_q embeddings
            pl.BlockSpec(bias.shape, lambda t: (0, 0)),           # attention mask bias
            pl.BlockSpec(params["wsq"].shape, lambda t: (0, 0, 0)),
            pl.BlockSpec(params["posb"].shape, lambda t: (0, 0, 0)),
            pl.BlockSpec(params["vec"].shape, lambda t: (0, 0)),
        ],
        out_specs=pl.BlockSpec((1, 1, N), lambda t: (t, 0, 0)),   # lane-dense slab
        compiler_params=pltpu.CompilerParams(
            dimension_semantics=("parallel",)),                   # v7x: 2 TCs
    )(q, a_b, nq, bias, params["wsq"], params["posb"], params["vec"])

    return out.reshape(B_pad, S)[:B]                              # (B, S)


def init_params(key, question_num, S, D):
    """Unpacked ('PyTorch-like') parameters."""
    ks = jax.random.split(key, 16)

    def nrm(k, shape, scale):
        return jax.random.normal(k, shape, jnp.float32) * scale

    sD, s2D = 1.0 / math.sqrt(D), 1.0 / math.sqrt(2 * D)
    return dict(
        emb=nrm(ks[0], (question_num, D), 0.1),
        pos=nrm(ks[1], (S, D), 0.1),
        Wq=nrm(ks[2], (D, D), sD), Wk=nrm(ks[3], (D, D), sD),
        Wv=nrm(ks[4], (D, D), sD), Wo=nrm(ks[5], (D, D), sD),
        W1=nrm(ks[6], (D, D), sD), W2=nrm(ks[7], (D, D), sD),
        W_inter=nrm(ks[8], (2 * D, D), s2D),
        W_hid=nrm(ks[9], (2 * D, D), s2D),
        w_pred=nrm(ks[10], (D,), sD),
        bq=nrm(ks[11], (D,), 0.02), bk=nrm(ks[12], (D,), 0.02),
        bv=nrm(ks[13], (D,), 0.02), bo=nrm(ks[14], (D,), 0.02),
        b_inter=nrm(ks[15], (D,), 0.02),
        b1=jnp.zeros((D,), jnp.float32), b2=jnp.zeros((D,), jnp.float32),
        b_hid=jnp.zeros((D,), jnp.float32),
        ln1_g=jnp.ones((D,), jnp.float32), ln1_b=jnp.zeros((D,), jnp.float32),
        ln2_g=jnp.ones((D,), jnp.float32), ln2_b=jnp.zeros((D,), jnp.float32),
        b_pred=jnp.float32(0.05),
    )


def pack_params(p, num_heads=NUM_HEADS):
    """Repack weights into the kernel layout.  All foldings below are mathematically
    equivalent rewrites of the original graph: interaction projection composed with
    the value projection, positional embedding folded into per-position K/V biases,
    softmax scale folded into the query projection."""
    D = p["Wq"].shape[0]
    dh = D // num_heads
    scale = 1.0 / math.sqrt(dh)
    f32, bf16 = jnp.float32, jnp.bfloat16

    Wi_top, Wi_bot = p["W_inter"][:D], p["W_inter"][D:]
    wsq = jnp.stack([
        p["Wq"] * scale,          # 0  Wq (softmax scale folded)
        p["Wk"],                  # 1  Wk
        Wi_top @ p["Wv"],         # 2  interaction(top) -> value
        Wi_bot @ p["Wv"],         # 3  interaction(bot) -> value
        p["Wo"],                  # 4  Wo (row block h*dh:(h+1)*dh per head)
        p["W1"],                  # 5  FFN W1
        p["W2"],                  # 6  FFN W2
        p["W_hid"][:D],           # 7  hidden (ks_emb half)
        p["W_hid"][D:],           # 8  hidden (next_q half)
    ], 0).astype(bf16)

    posK = p["pos"] @ p["Wk"] + p["bk"][None, :]
    posV = (p["pos"] + p["b_inter"][None, :]) @ p["Wv"] + p["bv"][None, :]
    posb = jnp.stack([posK, posV], 0).astype(f32)             # (2, S, D)

    vec = jnp.stack([
        p["bq"] * scale, p["bo"], p["ln1_g"], p["ln1_b"], p["b1"], p["b2"],
        p["ln2_g"], p["ln2_b"], p["b_hid"], p["w_pred"],
        jnp.full((D,), p["b_pred"], f32)], 0).astype(f32)      # (11, D)

    return dict(emb=p["emb"].astype(bf16), wsq=wsq, posb=posb, vec=vec)


if __name__ == "__main__":
    B, S, D, QN = 20, 8, 32, 50
    key = jax.random.PRNGKey(0)
    k1, k2, k3, kp = jax.random.split(key, 4)
    q_ids = jax.random.randint(k1, (B, S), 0, QN, dtype=jnp.int32)
    nq_ids = jax.random.randint(k2, (B, S), 0, QN, dtype=jnp.int32)
    answers = jax.random.randint(k3, (B, S), 0, 2, dtype=jnp.int32)
    packed = pack_params(init_params(kp, QN, S, D))

    out = jax.block_until_ready(sakt_forward(q_ids, answers, nq_ids, packed))

    # Pure-JAX reference: the same math helper applied to the whole batch (no Pallas).
    q_e = jnp.take(packed["emb"], q_ids, axis=0)
    nq_e = jnp.take(packed["emb"], nq_ids, axis=0)
    a_b = answers.astype(packed["emb"].dtype)[..., None]
    ref = _sakt_tile_math(q_e, a_b, nq_e, _attn_bias(B, S), packed["wsq"],
                          packed["posb"], packed["vec"],
                          in_kernel=False).reshape(B, S)

    assert out.shape == (B, S), out.shape
    assert bool(jnp.all(jnp.isfinite(out)))
    err = float(jnp.max(jnp.abs(out - ref)))
    assert bool(jnp.allclose(out, ref, atol=5e-3, rtol=5e-3)), err
    print("KERNEL_OK")
</pallas_src>

<mosaic_0001>
module attributes {stable_mosaic.version = 11 : i64} {
  func.func @sakt_kernel(%arg0: i32, %arg1: memref<10x8x32xbf16, #tpu.memory_space<vmem>>, %arg2: memref<10x8x1xbf16, #tpu.memory_space<vmem>>, %arg3: memref<10x8x32xbf16, #tpu.memory_space<vmem>>, %arg4: memref<80x80xf32, #tpu.memory_space<vmem>>, %arg5: memref<9x32x32xbf16, #tpu.memory_space<vmem>>, %arg6: memref<2x8x32xf32, #tpu.memory_space<vmem>>, %arg7: memref<11x32xf32, #tpu.memory_space<vmem>>, %arg8: memref<1x1x80xf32, #tpu.memory_space<vmem>>) attributes {dimension_semantics = [#tpu.dimension_semantics<parallel>], iteration_bounds = array<i64: 2>, scalar_prefetch = 0 : i64, scratch_operands = 0 : i64, tpu.core_type = #tpu.core_type<tc>, window_params = [{transform_indices = @transform_0, window_bounds = array<i64: 10, 8, 32>}, {transform_indices = @transform_1, window_bounds = array<i64: 10, 8, 1>}, {transform_indices = @transform_2, window_bounds = array<i64: 10, 8, 32>}, {pipeline_mode = #tpu.pipeline_mode<synchronous>, transform_indices = @transform_3, window_bounds = array<i64: 80, 80>}, {pipeline_mode = #tpu.pipeline_mode<synchronous>, transform_indices = @transform_4, window_bounds = array<i64: 9, 32, 32>}, {pipeline_mode = #tpu.pipeline_mode<synchronous>, transform_indices = @transform_5, window_bounds = array<i64: 2, 8, 32>}, {pipeline_mode = #tpu.pipeline_mode<synchronous>, transform_indices = @transform_6, window_bounds = array<i64: 11, 32>}, {transform_indices = @transform_7, window_bounds = array<i64: 1, 1, 80>}]} {
    %c0 = arith.constant 0 : index
    %c0_0 = arith.constant 0 : index
    %c0_1 = arith.constant 0 : index
    %0 = vector.load %arg1[%c0, %c0_0, %c0_1] : memref<10x8x32xbf16, #tpu.memory_space<vmem>>, vector<10x8x32xbf16>
    %c0_2 = arith.constant 0 : index
    %c0_3 = arith.constant 0 : index
    %c0_4 = arith.constant 0 : index
    %1 = vector.load %arg2[%c0_2, %c0_3, %c0_4] : memref<10x8x1xbf16, #tpu.memory_space<vmem>>, vector<10x8x1xbf16>
    %c0_5 = arith.constant 0 : index
    %c0_6 = arith.constant 0 : index
    %c0_7 = arith.constant 0 : index
    %2 = vector.load %arg3[%c0_5, %c0_6, %c0_7] : memref<10x8x32xbf16, #tpu.memory_space<vmem>>, vector<10x8x32xbf16>
    %c0_8 = arith.constant 0 : index
    %c0_9 = arith.constant 0 : index
    %3 = vector.load %arg4[%c0_8, %c0_9] : memref<80x80xf32, #tpu.memory_space<vmem>>, vector<80x80xf32>
    %c0_10 = arith.constant 0 : index
    %c0_11 = arith.constant 0 : index
    %c0_12 = arith.constant 0 : index
    %4 = vector.load %arg5[%c0_10, %c0_11, %c0_12] : memref<9x32x32xbf16, #tpu.memory_space<vmem>>, vector<9x32x32xbf16>
    %c0_13 = arith.constant 0 : index
    %c0_14 = arith.constant 0 : index
    %c0_15 = arith.constant 0 : index
    %5 = vector.load %arg6[%c0_13, %c0_14, %c0_15] : memref<2x8x32xf32, #tpu.memory_space<vmem>>, vector<2x8x32xf32>
    %c0_16 = arith.constant 0 : index
    %c0_17 = arith.constant 0 : index
    %6 = vector.load %arg7[%c0_16, %c0_17] : memref<11x32xf32, #tpu.memory_space<vmem>>, vector<11x32xf32>
    %7 = vector.extract_strided_slice %4 {offsets = [0, 0, 0], sizes = [1, 32, 32], strides = [1, 1, 1]} : vector<9x32x32xbf16> to vector<1x32x32xbf16>
    %8 = vector.shape_cast %7 : vector<1x32x32xbf16> to vector<32x32xbf16>
    %9 = vector.extract_strided_slice %4 {offsets = [1, 0, 0], sizes = [1, 32, 32], strides = [1, 1, 1]} : vector<9x32x32xbf16> to vector<1x32x32xbf16>
    %10 = vector.shape_cast %9 : vector<1x32x32xbf16> to vector<32x32xbf16>
    %11 = vector.extract_strided_slice %4 {offsets = [2, 0, 0], sizes = [1, 32, 32], strides = [1, 1, 1]} : vector<9x32x32xbf16> to vector<1x32x32xbf16>
    %12 = vector.shape_cast %11 : vector<1x32x32xbf16> to vector<32x32xbf16>
    %13 = vector.extract_strided_slice %4 {offsets = [3, 0, 0], sizes = [1, 32, 32], strides = [1, 1, 1]} : vector<9x32x32xbf16> to vector<1x32x32xbf16>
    %14 = vector.shape_cast %13 : vector<1x32x32xbf16> to vector<32x32xbf16>
    %15 = vector.extract_strided_slice %4 {offsets = [4, 0, 0], sizes = [1, 32, 32], strides = [1, 1, 1]} : vector<9x32x32xbf16> to vector<1x32x32xbf16>
    %16 = vector.shape_cast %15 : vector<1x32x32xbf16> to vector<32x32xbf16>
    %17 = vector.extract_strided_slice %4 {offsets = [5, 0, 0], sizes = [1, 32, 32], strides = [1, 1, 1]} : vector<9x32x32xbf16> to vector<1x32x32xbf16>
    %18 = vector.shape_cast %17 : vector<1x32x32xbf16> to vector<32x32xbf16>
    %19 = vector.extract_strided_slice %4 {offsets = [6, 0, 0], sizes = [1, 32, 32], strides = [1, 1, 1]} : vector<9x32x32xbf16> to vector<1x32x32xbf16>
    %20 = vector.shape_cast %19 : vector<1x32x32xbf16> to vector<32x32xbf16>
    %21 = vector.extract_strided_slice %4 {offsets = [7, 0, 0], sizes = [1, 32, 32], strides = [1, 1, 1]} : vector<9x32x32xbf16> to vector<1x32x32xbf16>
    %22 = vector.shape_cast %21 : vector<1x32x32xbf16> to vector<32x32xbf16>
    %23 = vector.extract_strided_slice %4 {offsets = [8, 0, 0], sizes = [1, 32, 32], strides = [1, 1, 1]} : vector<9x32x32xbf16> to vector<1x32x32xbf16>
    %24 = vector.shape_cast %23 : vector<1x32x32xbf16> to vector<32x32xbf16>
    %25 = vector.extract_strided_slice %6 {offsets = [0, 0], sizes = [1, 32], strides = [1, 1]} : vector<11x32xf32> to vector<1x32xf32>
    %26 = vector.shape_cast %25 : vector<1x32xf32> to vector<32xf32>
    %27 = vector.extract_strided_slice %6 {offsets = [1, 0], sizes = [1, 32], strides = [1, 1]} : vector<11x32xf32> to vector<1x32xf32>
    %28 = vector.shape_cast %27 : vector<1x32xf32> to vector<32xf32>
    %29 = vector.extract_strided_slice %6 {offsets = [2, 0], sizes = [1, 32], strides = [1, 1]} : vector<11x32xf32> to vector<1x32xf32>
    %30 = vector.shape_cast %29 : vector<1x32xf32> to vector<32xf32>
    %31 = vector.extract_strided_slice %6 {offsets = [3, 0], sizes = [1, 32], strides = [1, 1]} : vector<11x32xf32> to vector<1x32xf32>
    %32 = vector.shape_cast %31 : vector<1x32xf32> to vector<32xf32>
    %33 = vector.extract_strided_slice %6 {offsets = [4, 0], sizes = [1, 32], strides = [1, 1]} : vector<11x32xf32> to vector<1x32xf32>
    %34 = vector.shape_cast %33 : vector<1x32xf32> to vector<32xf32>
    %35 = vector.extract_strided_slice %6 {offsets = [5, 0], sizes = [1, 32], strides = [1, 1]} : vector<11x32xf32> to vector<1x32xf32>
    %36 = vector.shape_cast %35 : vector<1x32xf32> to vector<32xf32>
    %37 = vector.extract_strided_slice %6 {offsets = [6, 0], sizes = [1, 32], strides = [1, 1]} : vector<11x32xf32> to vector<1x32xf32>
    %38 = vector.shape_cast %37 : vector<1x32xf32> to vector<32xf32>
    %39 = vector.extract_strided_slice %6 {offsets = [7, 0], sizes = [1, 32], strides = [1, 1]} : vector<11x32xf32> to vector<1x32xf32>
    %40 = vector.shape_cast %39 : vector<1x32xf32> to vector<32xf32>
    %41 = vector.extract_strided_slice %6 {offsets = [8, 0], sizes = [1, 32], strides = [1, 1]} : vector<11x32xf32> to vector<1x32xf32>
    %42 = vector.shape_cast %41 : vector<1x32xf32> to vector<32xf32>
    %43 = vector.extract_strided_slice %6 {offsets = [9, 0], sizes = [1, 32], strides = [1, 1]} : vector<11x32xf32> to vector<1x32xf32>
    %44 = vector.shape_cast %43 : vector<1x32xf32> to vector<32xf32>
    %45 = vector.extract_strided_slice %6 {offsets = [10, 0], sizes = [1, 1], strides = [1, 1]} : vector<11x32xf32> to vector<1x1xf32>
    %46 = vector.extract_strided_slice %5 {offsets = [0, 0, 0], sizes = [1, 8, 32], strides = [1, 1, 1]} : vector<2x8x32xf32> to vector<1x8x32xf32>
    %47 = vector.shape_cast %46 : vector<1x8x32xf32> to vector<8x32xf32>
    %48 = vector.extract_strided_slice %5 {offsets = [1, 0, 0], sizes = [1, 8, 32], strides = [1, 1, 1]} : vector<2x8x32xf32> to vector<1x8x32xf32>
    %49 = vector.shape_cast %48 : vector<1x8x32xf32> to vector<8x32xf32>
    %50 = vector.shape_cast %0 : vector<10x8x32xbf16> to vector<80x32xbf16>
    %51 = vector.shape_cast %2 : vector<10x8x32xbf16> to vector<80x32xbf16>
    %52 = vector.broadcast %1 : vector<10x8x1xbf16> to vector<10x8x32xbf16>
    %53 = arith.mulf %0, %52 : vector<10x8x32xbf16>
    %54 = vector.shape_cast %53 : vector<10x8x32xbf16> to vector<80x32xbf16>
    %cst = arith.constant 1.000000e+00 : bf16
    %55 = vector.broadcast %cst : bf16 to vector<10x8x1xbf16>
    %56 = arith.subf %55, %1 : vector<10x8x1xbf16>
    %57 = vector.broadcast %56 : vector<10x8x1xbf16> to vector<10x8x32xbf16>
    %58 = arith.mulf %0, %57 : vector<10x8x32xbf16>
    %59 = vector.shape_cast %58 : vector<10x8x32xbf16> to vector<80x32xbf16>
    "tpu.trace_start"() <{level = 10 : i32, message = "nd,df->nf"}> : () -> ()
    %cst_18 = arith.constant dense<0.000000e+00> : vector<80x32xf32>
    %60 = tpu.matmul %51, %8, %cst_18 {dimension_numbers = #tpu.dot_dimension_numbers<[1], [0], [0], [1], [0, 0, 1, 1], [], []>} : vector<80x32xbf16>, vector<32x32xbf16>, vector<80x32xf32> -> vector<80x32xf32>
    "tpu.trace_stop"() : () -> ()
    %61 = vector.shape_cast %26 : vector<32xf32> to vector<1x32xf32>
    %62 = vector.broadcast %61 : vector<1x32xf32> to vector<80x32xf32>
    %63 = arith.addf %60, %62 : vector<80x32xf32>
    "tpu.trace_start"() <{level = 10 : i32, message = "nd,df->nf"}> : () -> ()
    %cst_19 = arith.constant dense<0.000000e+00> : vector<80x32xf32>
    %64 = tpu.matmul %50, %10, %cst_19 {dimension_numbers = #tpu.dot_dimension_numbers<[1], [0], [0], [1], [0, 0, 1, 1], [], []>} : vector<80x32xbf16>, vector<32x32xbf16>, vector<80x32xf32> -> vector<80x32xf32>
    "tpu.trace_stop"() : () -> ()
    %65 = vector.shape_cast %64 : vector<80x32xf32> to vector<10x8x32xf32>
    %66 = vector.shape_cast %47 : vector<8x32xf32> to vector<1x8x32xf32>
    %67 = vector.broadcast %66 : vector<1x8x32xf32> to vector<10x8x32xf32>
    %68 = arith.addf %65, %67 : vector<10x8x32xf32>
    %69 = vector.shape_cast %68 : vector<10x8x32xf32> to vector<80x32xf32>
    "tpu.trace_start"() <{level = 10 : i32, message = "nd,df->nf"}> : () -> ()
    %cst_20 = arith.constant dense<0.000000e+00> : vector<80x32xf32>
    %70 = tpu.matmul %54, %12, %cst_20 {dimension_numbers = #tpu.dot_dimension_numbers<[1], [0], [0], [1], [0, 0, 1, 1], [], []>} : vector<80x32xbf16>, vector<32x32xbf16>, vector<80x32xf32> -> vector<80x32xf32>
    %cst_21 = arith.constant dense<0.000000e+00> : vector<80x32xf32>
    %71 = tpu.matmul %59, %14, %cst_21 {dimension_numbers = #tpu.dot_dimension_numbers<[1], [0], [0], [1], [0, 0, 1, 1], [], []>} : vector<80x32xbf16>, vector<32x32xbf16>, vector<80x32xf32> -> vector<80x32xf32>
    "tpu.trace_stop"() : () -> ()
    %72 = arith.addf %70, %71 : vector<80x32xf32>
    %73 = vector.shape_cast %72 : vector<80x32xf32> to vector<10x8x32xf32>
    %74 = vector.shape_cast %49 : vector<8x32xf32> to vector<1x8x32xf32>
    %75 = vector.broadcast %74 : vector<1x8x32xf32> to vector<10x8x32xf32>
    %76 = arith.addf %73, %75 : vector<10x8x32xf32>
    %77 = vector.shape_cast %76 : vector<10x8x32xf32> to vector<80x32xf32>
    %cst_22 = arith.constant 0.000000e+00 : f32
    %78 = vector.broadcast %cst_22 : f32 to vector<80x32xf32>
    %79 = vector.extract_strided_slice %63 {offsets = [0, 0], sizes = [80, 8], strides = [1, 1]} : vector<80x32xf32> to vector<80x8xf32>
    %80 = arith.truncf %79 : vector<80x8xf32> to vector<80x8xbf16>
    %81 = vector.extract_strided_slice %69 {offsets = [0, 0], sizes = [80, 8], strides = [1, 1]} : vector<80x32xf32> to vector<80x8xf32>
    %82 = arith.truncf %81 : vector<80x8xf32> to vector<80x8xbf16>
    %83 = vector.extract_strided_slice %77 {offsets = [0, 0], sizes = [80, 8], strides = [1, 1]} : vector<80x32xf32> to vector<80x8xf32>
    %84 = arith.truncf %83 : vector<80x8xf32> to vector<80x8xbf16>
    "tpu.trace_start"() <{level = 10 : i32, message = "nd,md->nm"}> : () -> ()
    %cst_23 = arith.constant dense<0.000000e+00> : vector<80x80xf32>
    %85 = tpu.matmul %80, %82, %cst_23 {dimension_numbers = #tpu.dot_dimension_numbers<[1], [1], [0], [0], [0, 0, 1, 0], [], []>} : vector<80x8xbf16>, vector<80x8xbf16>, vector<80x80xf32> -> vector<80x80xf32>
    "tpu.trace_stop"() : () -> ()
    %86 = arith.addf %85, %3 : vector<80x80xf32>
    %cst_24 = arith.constant dense<0xFF800000> : vector<80xf32>
    %87 = vector.multi_reduction <maximumf>, %86, %cst_24 [1] : vector<80x80xf32> to vector<80xf32>
    %88 = vector.shape_cast %87 : vector<80xf32> to vector<80x1xf32>
    %89 = vector.broadcast %88 : vector<80x1xf32> to vector<80x80xf32>
    %90 = arith.subf %86, %89 : vector<80x80xf32>
    %91 = math.exp %90 : vector<80x80xf32>
    %cst_25 = arith.constant dense<0.000000e+00> : vector<80xf32>
    %92 = vector.multi_reduction <add>, %91, %cst_25 [1] : vector<80x80xf32> to vector<80xf32>
    %93 = vector.shape_cast %92 : vector<80xf32> to vector<80x1xf32>
    %94 = tpu.reciprocal %93 {approx = true} : vector<80x1xf32> -> vector<80x1xf32>
    %95 = vector.broadcast %94 : vector<80x1xf32> to vector<80x80xf32>
    %96 = arith.mulf %91, %95 : vector<80x80xf32>
    %97 = arith.truncf %96 : vector<80x80xf32> to vector<80x80xbf16>
    "tpu.trace_start"() <{level = 10 : i32, message = "nm,md->nd"}> : () -> ()
    %cst_26 = arith.constant dense<0.000000e+00> : vector<80x8xf32>
    %98 = tpu.matmul %97, %84, %cst_26 {dimension_numbers = #tpu.dot_dimension_numbers<[1], [0], [0], [1], [0, 0, 1, 1], [], []>} : vector<80x80xbf16>, vector<80x8xbf16>, vector<80x8xf32> -> vector<80x8xf32>
    "tpu.trace_stop"() : () -> ()
    %99 = arith.truncf %98 : vector<80x8xf32> to vector<80x8xbf16>
    %100 = vector.extract_strided_slice %16 {offsets = [0, 0], sizes = [8, 32], strides = [1, 1]} : vector<32x32xbf16> to vector<8x32xbf16>
    "tpu.trace_start"() <{level = 10 : i32, message = "nf,fd->nd"}> : () -> ()
    %cst_27 = arith.constant dense<0.000000e+00> : vector<80x32xf32>
    %101 = tpu.matmul %99, %100, %cst_27 {dimension_numbers = #tpu.dot_dimension_numbers<[1], [0], [0], [1], [0, 0, 1, 1], [], []>} : vector<80x8xbf16>, vector<8x32xbf16>, vector<80x32xf32> -> vector<80x32xf32>
    "tpu.trace_stop"() : () -> ()
    %102 = arith.addf %78, %101 : vector<80x32xf32>
    %103 = vector.extract_strided_slice %63 {offsets = [0, 8], sizes = [80, 8], strides = [1, 1]} : vector<80x32xf32> to vector<80x8xf32>
    %104 = arith.truncf %103 : vector<80x8xf32> to vector<80x8xbf16>
    %105 = vector.extract_strided_slice %69 {offsets = [0, 8], sizes = [80, 8], strides = [1, 1]} : vector<80x32xf32> to vector<80x8xf32>
    %106 = arith.truncf %105 : vector<80x8xf32> to vector<80x8xbf16>
    %107 = vector.extract_strided_slice %77 {offsets = [0, 8], sizes = [80, 8], strides = [1, 1]} : vector<80x32xf32> to vector<80x8xf32>
    %108 = arith.truncf %107 : vector<80x8xf32> to vector<80x8xbf16>
    "tpu.trace_start"() <{level = 10 : i32, message = "nd,md->nm"}> : () -> ()
    %cst_28 = arith.constant dense<0.000000e+00> : vector<80x80xf32>
    %109 = tpu.matmul %104, %106, %cst_28 {dimension_numbers = #tpu.dot_dimension_numbers<[1], [1], [0], [0], [0, 0, 1, 0], [], []>} : vector<80x8xbf16>, vector<80x8xbf16>, vector<80x80xf32> -> vector<80x80xf32>
    "tpu.trace_stop"() : () -> ()
    %110 = arith.addf %109, %3 : vector<80x80xf32>
    %cst_29 = arith.constant dense<0xFF800000> : vector<80xf32>
    %111 = vector.multi_reduction <maximumf>, %110, %cst_29 [1] : vector<80x80xf32> to vector<80xf32>
    %112 = vector.shape_cast %111 : vector<80xf32> to vector<80x1xf32>
    %113 = vector.broadcast %112 : vector<80x1xf32> to vector<80x80xf32>
    %114 = arith.subf %110, %113 : vector<80x80xf32>
    %115 = math.exp %114 : vector<80x80xf32>
    %cst_30 = arith.constant dense<0.000000e+00> : vector<80xf32>
    %116 = vector.multi_reduction <add>, %115, %cst_30 [1] : vector<80x80xf32> to vector<80xf32>
    %117 = vector.shape_cast %116 : vector<80xf32> to vector<80x1xf32>
    %118 = tpu.reciprocal %117 {approx = true} : vector<80x1xf32> -> vector<80x1xf32>
    %119 = vector.broadcast %118 : vector<80x1xf32> to vector<80x80xf32>
    %120 = arith.mulf %115, %119 : vector<80x80xf32>
    %121 = arith.truncf %120 : vector<80x80xf32> to vector<80x80xbf16>
    "tpu.trace_start"() <{level = 10 : i32, message = "nm,md->nd"}> : () -> ()
    %cst_31 = arith.constant dense<0.000000e+00> : vector<80x8xf32>
    %122 = tpu.matmul %121, %108, %cst_31 {dimension_numbers = #tpu.dot_dimension_numbers<[1], [0], [0], [1], [0, 0, 1, 1], [], []>} : vector<80x80xbf16>, vector<80x8xbf16>, vector<80x8xf32> -> vector<80x8xf32>
    "tpu.trace_stop"() : () -> ()
    %123 = arith.truncf %122 : vector<80x8xf32> to vector<80x8xbf16>
    %124 = vector.extract_strided_slice %16 {offsets = [8, 0], sizes = [8, 32], strides = [1, 1]} : vector<32x32xbf16> to vector<8x32xbf16>
    "tpu.trace_start"() <{level = 10 : i32, message = "nf,fd->nd"}> : () -> ()
    %cst_32 = arith.constant dense<0.000000e+00> : vector<80x32xf32>
    %125 = tpu.matmul %123, %124, %cst_32 {dimension_numbers = #tpu.dot_dimension_numbers<[1], [0], [0], [1], [0, 0, 1, 1], [], []>} : vector<80x8xbf16>, vector<8x32xbf16>, vector<80x32xf32> -> vector<80x32xf32>
    "tpu.trace_stop"() : () -> ()
    %126 = arith.addf %102, %125 : vector<80x32xf32>
    %127 = vector.extract_strided_slice %63 {offsets = [0, 16], sizes = [80, 8], strides = [1, 1]} : vector<80x32xf32> to vector<80x8xf32>
    %128 = arith.truncf %127 : vector<80x8xf32> to vector<80x8xbf16>
    %129 = vector.extract_strided_slice %69 {offsets = [0, 16], sizes = [80, 8], strides = [1, 1]} : vector<80x32xf32> to vector<80x8xf32>
    %130 = arith.truncf %129 : vector<80x8xf32> to vector<80x8xbf16>
    %131 = vector.extract_strided_slice %77 {offsets = [0, 16], sizes = [80, 8], strides = [1, 1]} : vector<80x32xf32> to vector<80x8xf32>
    %132 = arith.truncf %131 : vector<80x8xf32> to vector<80x8xbf16>
    "tpu.trace_start"() <{level = 10 : i32, message = "nd,md->nm"}> : () -> ()
    %cst_33 = arith.constant dense<0.000000e+00> : vector<80x80xf32>
    %133 = tpu.matmul %128, %130, %cst_33 {dimension_numbers = #tpu.dot_dimension_numbers<[1], [1], [0], [0], [0, 0, 1, 0], [], []>} : vector<80x8xbf16>, vector<80x8xbf16>, vector<80x80xf32> -> vector<80x80xf32>
    "tpu.trace_stop"() : () -> ()
    %134 = arith.addf %133, %3 : vector<80x80xf32>
    %cst_34 = arith.constant dense<0xFF800000> : vector<80xf32>
    %135 = vector.multi_reduction <maximumf>, %134, %cst_34 [1] : vector<80x80xf32> to vector<80xf32>
    %136 = vector.shape_cast %135 : vector<80xf32> to vector<80x1xf32>
    %137 = vector.broadcast %136 : vector<80x1xf32> to vector<80x80xf32>
    %138 = arith.subf %134, %137 : vector<80x80xf32>
    %139 = math.exp %138 : vector<80x80xf32>
    %cst_35 = arith.constant dense<0.000000e+00> : vector<80xf32>
    %140 = vector.multi_reduction <add>, %139, %cst_35 [1] : vector<80x80xf32> to vector<80xf32>
    %141 = vector.shape_cast %140 : vector<80xf32> to vector<80x1xf32>
    %142 = tpu.reciprocal %141 {approx = true} : vector<80x1xf32> -> vector<80x1xf32>
    %143 = vector.broadcast %142 : vector<80x1xf32> to vector<80x80xf32>
    %144 = arith.mulf %139, %143 : vector<80x80xf32>
    %145 = arith.truncf %144 : vector<80x80xf32> to vector<80x80xbf16>
    "tpu.trace_start"() <{level = 10 : i32, message = "nm,md->nd"}> : () -> ()
    %cst_36 = arith.constant dense<0.000000e+00> : vector<80x8xf32>
    %146 = tpu.matmul %145, %132, %cst_36 {dimension_numbers = #tpu.dot_dimension_numbers<[1], [0], [0], [1], [0, 0, 1, 1], [], []>} : vector<80x80xbf16>, vector<80x8xbf16>, vector<80x8xf32> -> vector<80x8xf32>
    "tpu.trace_stop"() : () -> ()
    %147 = arith.truncf %146 : vector<80x8xf32> to vector<80x8xbf16>
    %148 = vector.extract_strided_slice %16 {offsets = [16, 0], sizes = [8, 32], strides = [1, 1]} : vector<32x32xbf16> to vector<8x32xbf16>
    "tpu.trace_start"() <{level = 10 : i32, message = "nf,fd->nd"}> : () -> ()
    %cst_37 = arith.constant dense<0.000000e+00> : vector<80x32xf32>
    %149 = tpu.matmul %147, %148, %cst_37 {dimension_numbers = #tpu.dot_dimension_numbers<[1], [0], [0], [1], [0, 0, 1, 1], [], []>} : vector<80x8xbf16>, vector<8x32xbf16>, vector<80x32xf32> -> vector<80x32xf32>
    "tpu.trace_stop"() : () -> ()
    %150 = arith.addf %126, %149 : vector<80x32xf32>
    %151 = vector.extract_strided_slice %63 {offsets = [0, 24], sizes = [80, 8], strides = [1, 1]} : vector<80x32xf32> to vector<80x8xf32>
    %152 = arith.truncf %151 : vector<80x8xf32> to vector<80x8xbf16>
    %153 = vector.extract_strided_slice %69 {offsets = [0, 24], sizes = [80, 8], strides = [1, 1]} : vector<80x32xf32> to vector<80x8xf32>
    %154 = arith.truncf %153 : vector<80x8xf32> to vector<80x8xbf16>
    %155 = vector.extract_strided_slice %77 {offsets = [0, 24], sizes = [80, 8], strides = [1, 1]} : vector<80x32xf32> to vector<80x8xf32>
    %156 = arith.truncf %155 : vector<80x8xf32> to vector<80x8xbf16>
    "tpu.trace_start"() <{level = 10 : i32, message = "nd,md->nm"}> : () -> ()
    %cst_38 = arith.constant dense<0.000000e+00> : vector<80x80xf32>
    %157 = tpu.matmul %152, %154, %cst_38 {dimension_numbers = #tpu.dot_dimension_numbers<[1], [1], [0], [0], [0, 0, 1, 0], [], []>} : vector<80x8xbf16>, vector<80x8xbf16>, vector<80x80xf32> -> vector<80x80xf32>
    "tpu.trace_stop"() : () -> ()
    %158 = arith.addf %157, %3 : vector<80x80xf32>
    %cst_39 = arith.constant dense<0xFF800000> : vector<80xf32>
    %159 = vector.multi_reduction <maximumf>, %158, %cst_39 [1] : vector<80x80xf32> to vector<80xf32>
    %160 = vector.shape_cast %159 : vector<80xf32> to vector<80x1xf32>
    %161 = vector.broadcast %160 : vector<80x1xf32> to vector<80x80xf32>
    %162 = arith.subf %158, %161 : vector<80x80xf32>
    %163 = math.exp %162 : vector<80x80xf32>
    %cst_40 = arith.constant dense<0.000000e+00> : vector<80xf32>
    %164 = vector.multi_reduction <add>, %163, %cst_40 [1] : vector<80x80xf32> to vector<80xf32>
    %165 = vector.shape_cast %164 : vector<80xf32> to vector<80x1xf32>
    %166 = tpu.reciprocal %165 {approx = true} : vector<80x1xf32> -> vector<80x1xf32>
    %167 = vector.broadcast %166 : vector<80x1xf32> to vector<80x80xf32>
    %168 = arith.mulf %163, %167 : vector<80x80xf32>
    %169 = arith.truncf %168 : vector<80x80xf32> to vector<80x80xbf16>
    "tpu.trace_start"() <{level = 10 : i32, message = "nm,md->nd"}> : () -> ()
    %cst_41 = arith.constant dense<0.000000e+00> : vector<80x8xf32>
    %170 = tpu.matmul %169, %156, %cst_41 {dimension_numbers = #tpu.dot_dimension_numbers<[1], [0], [0], [1], [0, 0, 1, 1], [], []>} : vector<80x80xbf16>, vector<80x8xbf16>, vector<80x8xf32> -> vector<80x8xf32>
    "tpu.trace_stop"() : () -> ()
    %171 = arith.truncf %170 : vector<80x8xf32> to vector<80x8xbf16>
    %172 = vector.extract_strided_slice %16 {offsets = [24, 0], sizes = [8, 32], strides = [1, 1]} : vector<32x32xbf16> to vector<8x32xbf16>
    "tpu.trace_start"() <{level = 10 : i32, message = "nf,fd->nd"}> : () -> ()
    %cst_42 = arith.constant dense<0.000000e+00> : vector<80x32xf32>
    %173 = tpu.matmul %171, %172, %cst_42 {dimension_numbers = #tpu.dot_dimension_numbers<[1], [0], [0], [1], [0, 0, 1, 1], [], []>} : vector<80x8xbf16>, vector<8x32xbf16>, vector<80x32xf32> -> vector<80x32xf32>
    "tpu.trace_stop"() : () -> ()
    %174 = arith.addf %150, %173 : vector<80x32xf32>
    %175 = vector.shape_cast %28 : vector<32xf32> to vector<1x32xf32>
    %176 = vector.broadcast %175 : vector<1x32xf32> to vector<80x32xf32>
    %177 = arith.addf %174, %176 : vector<80x32xf32>
    %178 = arith.extf %51 : vector<80x32xbf16> to vector<80x32xf32>
    %179 = arith.addf %177, %178 : vector<80x32xf32>
    %cst_43 = arith.constant dense<0.000000e+00> : vector<80xf32>
    %180 = vector.multi_reduction <add>, %179, %cst_43 [1] : vector<80x32xf32> to vector<80xf32>
    %181 = vector.shape_cast %180 : vector<80xf32> to vector<80x1xf32>
    %cst_44 = arith.constant 3.200000e+01 : f32
    %182 = vector.broadcast %cst_44 : f32 to vector<80x1xf32>
    %183 = arith.divf %181, %182 : vector<80x1xf32>
    %184 = vector.broadcast %183 : vector<80x1xf32> to vector<80x32xf32>
    %185 = arith.subf %179, %184 : vector<80x32xf32>
    %186 = arith.mulf %185, %185 : vector<80x32xf32>
    %cst_45 = arith.constant dense<0.000000e+00> : vector<80xf32>
    %187 = vector.multi_reduction <add>, %186, %cst_45 [1] : vector<80x32xf32> to vector<80xf32>
    %188 = vector.shape_cast %187 : vector<80xf32> to vector<80x1xf32>
    %cst_46 = arith.constant 3.200000e+01 : f32
    %189 = vector.broadcast %cst_46 : f32 to vector<80x1xf32>
    %190 = arith.divf %188, %189 : vector<80x1xf32>
    %191 = vector.broadcast %183 : vector<80x1xf32> to vector<80x32xf32>
    %192 = arith.subf %179, %191 : vector<80x32xf32>
    %cst_47 = arith.constant 9.99999974E-6 : f32
    %193 = vector.broadcast %cst_47 : f32 to vector<80x1xf32>
    %194 = arith.addf %190, %193 : vector<80x1xf32>
    %195 = math.rsqrt %194 : vector<80x1xf32>
    %196 = vector.broadcast %195 : vector<80x1xf32> to vector<80x32xf32>
    %197 = arith.mulf %192, %196 : vector<80x32xf32>
    %198 = vector.shape_cast %30 : vector<32xf32> to vector<1x32xf32>
    %199 = vector.broadcast %198 : vector<1x32xf32> to vector<80x32xf32>
    %200 = arith.mulf %197, %199 : vector<80x32xf32>
    %201 = vector.shape_cast %32 : vector<32xf32> to vector<1x32xf32>
    %202 = vector.broadcast %201 : vector<1x32xf32> to vector<80x32xf32>
    %203 = arith.addf %200, %202 : vector<80x32xf32>
    %204 = arith.truncf %203 : vector<80x32xf32> to vector<80x32xbf16>
    "tpu.trace_start"() <{level = 10 : i32, message = "nd,df->nf"}> : () -> ()
    %cst_48 = arith.constant dense<0.000000e+00> : vector<80x32xf32>
    %205 = tpu.matmul %204, %18, %cst_48 {dimension_numbers = #tpu.dot_dimension_numbers<[1], [0], [0], [1], [0, 0, 1, 1], [], []>} : vector<80x32xbf16>, vector<32x32xbf16>, vector<80x32xf32> -> vector<80x32xf32>
    "tpu.trace_stop"() : () -> ()
    %206 = vector.shape_cast %34 : vector<32xf32> to vector<1x32xf32>
    %207 = vector.broadcast %206 : vector<1x32xf32> to vector<80x32xf32>
    %208 = arith.addf %205, %207 : vector<80x32xf32>
    %cst_49 = arith.constant 0.000000e+00 : f32
    %209 = vector.broadcast %cst_49 : f32 to vector<80x32xf32>
    %210 = arith.maximumf %208, %209 : vector<80x32xf32>
    %211 = arith.truncf %210 : vector<80x32xf32> to vector<80x32xbf16>
    "tpu.trace_start"() <{level = 10 : i32, message = "nd,df->nf"}> : () -> ()
    %cst_50 = arith.constant dense<0.000000e+00> : vector<80x32xf32>
    %212 = tpu.matmul %211, %20, %cst_50 {dimension_numbers = #tpu.dot_dimension_numbers<[1], [0], [0], [1], [0, 0, 1, 1], [], []>} : vector<80x32xbf16>, vector<32x32xbf16>, vector<80x32xf32> -> vector<80x32xf32>
    "tpu.trace_stop"() : () -> ()
    %213 = vector.shape_cast %36 : vector<32xf32> to vector<1x32xf32>
    %214 = vector.broadcast %213 : vector<1x32xf32> to vector<80x32xf32>
    %215 = arith.addf %212, %214 : vector<80x32xf32>
    %216 = arith.addf %215, %203 : vector<80x32xf32>
    %cst_51 = arith.constant dense<0.000000e+00> : vector<80xf32>
    %217 = vector.multi_reduction <add>, %216, %cst_51 [1] : vector<80x32xf32> to vector<80xf32>
    %218 = vector.shape_cast %217 : vector<80xf32> to vector<80x1xf32>
    %cst_52 = arith.constant 3.200000e+01 : f32
    %219 = vector.broadcast %cst_52 : f32 to vector<80x1xf32>
    %220 = arith.divf %218, %219 : vector<80x1xf32>
    %221 = vector.broadcast %220 : vector<80x1xf32> to vector<80x32xf32>
    %222 = arith.subf %216, %221 : vector<80x32xf32>
    %223 = arith.mulf %222, %222 : vector<80x32xf32>
    %cst_53 = arith.constant dense<0.000000e+00> : vector<80xf32>
    %224 = vector.multi_reduction <add>, %223, %cst_53 [1] : vector<80x32xf32> to vector<80xf32>
    %225 = vector.shape_cast %224 : vector<80xf32> to vector<80x1xf32>
    %cst_54 = arith.constant 3.200000e+01 : f32
    %226 = vector.broadcast %cst_54 : f32 to vector<80x1xf32>
    %227 = arith.divf %225, %226 : vector<80x1xf32>
    %228 = vector.broadcast %220 : vector<80x1xf32> to vector<80x32xf32>
    %229 = arith.subf %216, %228 : vector<80x32xf32>
    %cst_55 = arith.constant 9.99999974E-6 : f32
    %230 = vector.broadcast %cst_55 : f32 to vector<80x1xf32>
    %231 = arith.addf %227, %230 : vector<80x1xf32>
    %232 = math.rsqrt %231 : vector<80x1xf32>
    %233 = vector.broadcast %232 : vector<80x1xf32> to vector<80x32xf32>
    %234 = arith.mulf %229, %233 : vector<80x32xf32>
    %235 = vector.shape_cast %38 : vector<32xf32> to vector<1x32xf32>
    %236 = vector.broadcast %235 : vector<1x32xf32> to vector<80x32xf32>
    %237 = arith.mulf %234, %236 : vector<80x32xf32>
    %238 = vector.shape_cast %40 : vector<32xf32> to vector<1x32xf32>
    %239 = vector.broadcast %238 : vector<1x32xf32> to vector<80x32xf32>
    %240 = arith.addf %237, %239 : vector<80x32xf32>
    %241 = arith.truncf %240 : vector<80x32xf32> to vector<80x32xbf16>
    "tpu.trace_start"() <{level = 10 : i32, message = "nd,df->nf"}> : () -> ()
    %cst_56 = arith.constant dense<0.000000e+00> : vector<80x32xf32>
    %242 = tpu.matmul %241, %22, %cst_56 {dimension_numbers = #tpu.dot_dimension_numbers<[1], [0], [0], [1], [0, 0, 1, 1], [], []>} : vector<80x32xbf16>, vector<32x32xbf16>, vector<80x32xf32> -> vector<80x32xf32>
    %cst_57 = arith.constant dense<0.000000e+00> : vector<80x32xf32>
    %243 = tpu.matmul %51, %24, %cst_57 {dimension_numbers = #tpu.dot_dimension_numbers<[1], [0], [0], [1], [0, 0, 1, 1], [], []>} : vector<80x32xbf16>, vector<32x32xbf16>, vector<80x32xf32> -> vector<80x32xf32>
    "tpu.trace_stop"() : () -> ()
    %244 = arith.addf %242, %243 : vector<80x32xf32>
    %245 = vector.shape_cast %42 : vector<32xf32> to vector<1x32xf32>
    %246 = vector.broadcast %245 : vector<1x32xf32> to vector<80x32xf32>
    %247 = arith.addf %244, %246 : vector<80x32xf32>
    %cst_58 = arith.constant 0.000000e+00 : f32
    %248 = vector.broadcast %cst_58 : f32 to vector<80x32xf32>
    %249 = arith.maximumf %247, %248 : vector<80x32xf32>
    %250 = vector.shape_cast %44 : vector<32xf32> to vector<1x32xf32>
    %251 = arith.truncf %250 : vector<1x32xf32> to vector<1x32xbf16>
    %252 = arith.truncf %249 : vector<80x32xf32> to vector<80x32xbf16>
    "tpu.trace_start"() <{level = 10 : i32, message = "od,nd->on"}> : () -> ()
    %cst_59 = arith.constant dense<0.000000e+00> : vector<1x80xf32>
    %253 = tpu.matmul %251, %252, %cst_59 {dimension_numbers = #tpu.dot_dimension_numbers<[1], [1], [0], [0], [0, 0, 1, 0], [], []>} : vector<1x32xbf16>, vector<80x32xbf16>, vector<1x80xf32> -> vector<1x80xf32>
    "tpu.trace_stop"() : () -> ()
    %254 = vector.broadcast %45 : vector<1x1xf32> to vector<1x80xf32>
    %255 = arith.addf %253, %254 : vector<1x80xf32>
    %256 = arith.negf %255 : vector<1x80xf32>
    %257 = math.exp %256 : vector<1x80xf32>
    %cst_60 = arith.constant 1.000000e+00 : f32
    %258 = vector.broadcast %cst_60 : f32 to vector<1x80xf32>
    %259 = arith.addf %258, %257 : vector<1x80xf32>
    %260 = arith.divf %258, %259 : vector<1x80xf32>
    %c0_61 = arith.constant 0 : index
    %c0_62 = arith.constant 0 : index
    %c0_63 = arith.constant 0 : index
    %261 = vector.load %arg8[%c0_61, %c0_62, %c0_63] : memref<1x1x80xf32, #tpu.memory_space<vmem>>, vector<1x1x80xf32>
    %262 = vector.shape_cast %261 : vector<1x1x80xf32> to vector<1x80xf32>
    %263 = vector.shape_cast %260 : vector<1x80xf32> to vector<1x1x80xf32>
    tpu.vector_store %arg8[%c0_61, %c0_62, %c0_63], %263 {strides = array<i32>} : memref<1x1x80xf32, #tpu.memory_space<vmem>>, vector<1x1x80xf32>,
    return
  }
  func.func @transform_0(%arg0: i32) -> (i32, i32, i32) {
    %c0_i32 = arith.constant 0 : i32
    %c0_i32_0 = arith.constant 0 : i32
    %c0_i32_1 = arith.constant 0 : i32
    return %arg0, %c0_i32, %c0_i32_0 : i32, i32, i32
  }
  func.func @transform_1(%arg0: i32) -> (i32, i32, i32) {
    %c0_i32 = arith.constant 0 : i32
    %c0_i32_0 = arith.constant 0 : i32
    %c0_i32_1 = arith.constant 0 : i32
    return %arg0, %c0_i32, %c0_i32_0 : i32, i32, i32
  }
  func.func @transform_2(%arg0: i32) -> (i32, i32, i32) {
    %c0_i32 = arith.constant 0 : i32
    %c0_i32_0 = arith.constant 0 : i32
    %c0_i32_1 = arith.constant 0 : i32
    return %arg0, %c0_i32, %c0_i32_0 : i32, i32, i32
  }
  func.func @transform_3(%arg0: i32) -> (i32, i32) {
    %c0_i32 = arith.constant 0 : i32
    %c0_i32_0 = arith.constant 0 : i32
    %c0_i32_1 = arith.constant 0 : i32
    return %c0_i32, %c0_i32_0 : i32, i32
  }
  func.func @transform_4(%arg0: i32) -> (i32, i32, i32) {
    %c0_i32 = arith.constant 0 : i32
    %c0_i32_0 = arith.constant 0 : i32
    %c0_i32_1 = arith.constant 0 : i32
    %c0_i32_2 = arith.constant 0 : i32
    return %c0_i32, %c0_i32_0, %c0_i32_1 : i32, i32, i32
  }
  func.func @transform_5(%arg0: i32) -> (i32, i32, i32) {
    %c0_i32 = arith.constant 0 : i32
    %c0_i32_0 = arith.constant 0 : i32
    %c0_i32_1 = arith.constant 0 : i32
    %c0_i32_2 = arith.constant 0 : i32
    return %c0_i32, %c0_i32_0, %c0_i32_1 : i32, i32, i32
  }
  func.func @transform_6(%arg0: i32) -> (i32, i32) {
    %c0_i32 = arith.constant 0 : i32
    %c0_i32_0 = arith.constant 0 : i32
    %c0_i32_1 = arith.constant 0 : i32
    return %c0_i32, %c0_i32_0 : i32, i32
  }
  func.func @transform_7(%arg0: i32) -> (i32, i32, i32) {
    %c0_i32 = arith.constant 0 : i32
    %c0_i32_0 = arith.constant 0 : i32
    %c0_i32_1 = arith.constant 0 : i32
    return %arg0, %c0_i32, %c0_i32_0 : i32, i32, i32
  }
}

</mosaic_0001>

<bundles_post_ra>
// kernel: tpu_custom_call.1
= control target key start
LH: loop header
LB: loop body
LE: loop exit
PB: predicated region body
PF: predicated region fallthrough
CT: control target
= control target key end

     0   :  { %s7414_s0 = inlined_call_operand.vmem [shape: bf16[20,8,32], index: 0, kind: input, shape index: {}]   ;;  %s7415_s1 = inlined_call_operand.vmem [shape: bf16[20,8,1], index: 1, kind: input, shape index: {}]   ;;  %s7416_s2 = inlined_call_operand.hbm [shape: bf16[20,8,32], index: 2, kind: input, shape index: {}]   ;;  %s7417_s3 = inlined_call_operand.hbm [shape: f32[80,80], index: 3, kind: input, shape index: {}]   ;;  %s7418_s4 = inlined_call_operand.hbm [shape: bf16[9,32,32], index: 4, kind: input, shape index: {}]   ;;  %s7419_s5 = inlined_call_operand.vmem [shape: f32[2,8,32], index: 5, kind: input, shape index: {}]   ;;  %s7420_s6 = inlined_call_operand.hbm [shape: f32[11,32], index: 6, kind: input, shape index: {}]   ;;  %s7421_s7 = inlined_call_operand.hbm [shape: f32[2,1,80], index: 7, kind: output, shape index: {}]  }
   0x1   :  { %7432 = sst [smem:[#allocation16_spill]] %s7417_s3 }
   0x2   :  { %12 = vsyncpa [#allocation3], 0 }
   0x3   :  { %14 = vsyncpa [#allocation3 + $0x1], 0 }
   0x4   :  { %15 = vsyncpa [#allocation6], 0 }
   0x5   :  { %16 = vsyncpa [#allocation9], 0 }
   0x6   :  { %17 = vsyncpa [#allocation4], 0 }
   0x7   :  { %19 = vsyncpa [#allocation4 + $0x1], 0  ;;  %s5488_s24 = smov 0   ;;  %s5490_s25 = smov 0  }
   0x8   :  { %s5492_s26 = smov 0   ;;  %s5494_s27 = smov 0  }
   0x9 LB: > { %s5509_s28 = sadd.s32 4294967295, %s5430_s27   ;;  %s4044_s29 = sadd.s32 4294967294, %s5430_s27   ;;  %s5430_s27 = sphi %s5494_s27, %s7460_s27   ;;  %s5426_s26 = sphi %s5492_s26, %s7459_s26   ;;  %s5422_s25 = sphi %s5490_s25, %s7458_s25   ;;  %s5418_s24 = sphi %s5488_s24, %s7457_s24  }
   0xa   : > { %p97_p0 = scmp.ne.s32.totalorder %s5422_s25, %s5418_s24  ;;  %p7422_p1 = scmp.eq.s32.totalorder %s5509_s28, 0 }
   0xb   : > { %p211_p3 = scmp.eq.s32.totalorder %s4044_s29, 1  ;;  %p4045_p5 = scmp.ge.s32.totalorder %s5430_s27, 1 }
   0xc   : > { %p5518_p4 = por %p7422_p1, %p97_p0  ;;  %p218_p7 = scmp.lt.s32.totalorder %s5430_s27, 3 }
   0xd   : > { %p5523_p6 = por %p211_p3, %p97_p0  ;;  %s5432_s10 = smov [#allocation5]  }
   0xe   : > { %s7433_s30 = scalar_select %p5518_p4, 1, 0 }
   0xf   : > { %s7434_s8 = scalar_select %p5523_p6, 1, 0 }
  0x10   : > { %p5528_p8 = pnand %p4045_p5, %p218_p7  ;;  %s230_s11 = sshll.u32 %s5432_s10, 4  ;;  %s5532_s11 = int_to_ptr.vmem [resolvable:$true] %s230_s11 }
  0x11   : > { %7435 = sst [smem:[#allocation15_spill]] %s7434_s8  ;;  %s5433_s13 = smov [#allocation7]  }
  0x12   : > { %s7436_s9 = scalar_select %p5528_p8, 1, 0 }
  0x13   : > { %p4917_p9 = pneg %p5528_p8  ;;  %s243_s14 = sshll.u32 %s5433_s13, 4  ;;  %s5543_s14 = int_to_ptr.vmem [resolvable:$true] %s243_s14 }
  0x14   : > { %s7438_s3 = sld [smem:[#allocation16_spill]] }
  0x15   : > { %p5539_p11 = pnand %p4917_p9, %p7422_p1 }
  0x17   : > { %p5553_p13 = pneg %p5539_p11 }
  0x1a   : > { %s5242_s17 = scalar_lea.hbm %s7438_s3, 1280 }
  0x1b   : > { %p5243_p12 = scmp.ne.s32.totalorder %s7438_s3, %s5242_s17  ;;  %p5249_p5 = scmp.lt.u32.totalorder %s5242_s17, %s7438_s3 }
  0x1d   : > { %p5245_p0 = pnand %p5553_p13, %p5243_p12 }
  0x1f   : > { %p5246_p3 = pneg %p5245_p0 }
  0x21   : > { %p5251_p7 = pnand %p5249_p5, %p5246_p3 }
  0x23   : > { %5254 = shalt.err (!%p5251_p7)
}
  0x24   : > { %s5255_s23 = scalar_lea.vmem %s5532_s11, 1280  ;;  %p5263_p2 = scmp.lt.s32.totalorder %s5532_s11, %s5532_s11 }
  0x25   : > { %p5256_p9 = scmp.ne.s32.totalorder %s5532_s11, %s5255_s23  ;;  %p5264_p6 = scmp.lt.s32.totalorder %s5255_s23, %s5255_s23 }
  0x27   : > { %p5258_p10 = pnand %p5256_p9, %p5553_p13  ;;  %p5265_p12 = por %p5264_p6, %p5263_p2 }
  0x29   : > { %p5259_p1 = pneg %p5258_p10 }
  0x2b   : > { %p5266_p0 = pnand %p5265_p12, %p5259_p1 }
  0x2d   : > { %5269 = shalt.err (!%p5266_p0)
}
  0x2e   : > { %s7423_s29 = smov 128   ;;  %s7424_s10 = smov 8  }
  0x2f   : > { %4920 = dma.hbm_to_vmem [thread:$0]  (!%p5539_p11), %s7438_s3, 1280, %s5532_s11, [#allocation6], %s7423_s29, %s7423_s29, %s7424_s10  }
  0x30   : > { %s5270_s18 = scalar_lea.hbm %s7418_s4, 2304 }
  0x31   : > { %p5271_p1 = scmp.ne.s32.totalorder %s7418_s4, %s5270_s18  ;;  %p5277_p10 = scmp.lt.u32.totalorder %s5270_s18, %s7418_s4 }
  0x33   : > { %p5273_p2 = pnand %p5271_p1, %p5553_p13 }
  0x35   : > { %p5274_p6 = pneg %p5273_p2 }
  0x37   : > { %p5279_p3 = pnand %p5277_p10, %p5274_p6 }
  0x39   : > { %5282 = shalt.err (!%p5279_p3)
}
  0x3a   : > { %s5283_s11 = scalar_lea.vmem %s5543_s14, 2304  ;;  %p5291_p12 = scmp.lt.s32.totalorder %s5543_s14, %s5543_s14 }
  0x3b   : > { %p5284_p5 = scmp.ne.s32.totalorder %s5543_s14, %s5283_s11  ;;  %p5292_p0 = scmp.lt.s32.totalorder %s5283_s11, %s5283_s11 }
  0x3d   : > { %p5286_p7 = pnand %p5284_p5, %p5553_p13  ;;  %p5293_p1 = por %p5292_p0, %p5291_p12 }
  0x3f   : > { %p5287_p9 = pneg %p5286_p7 }
  0x41   : > { %p5294_p2 = pnand %p5293_p1, %p5287_p9 }
  0x43   : > { %5297 = shalt.err (!%p5294_p2)
}
  0x44   : > { %s7428_s13 = smov 64   ;;  %s5437_s15 = smov 4  }
  0x45   : > { %4923 = dma.hbm_to_vmem [thread:$0]  (!%p5539_p11), %s7418_s4, 2304, %s5543_s14, [#allocation6], %s7428_s13, %s7428_s13, %s5437_s15  }
  0x46   : > { %s5438_s18 = smov [#allocation8]   ;;  %s5604_s21 = sadd.s32 1, %s5430_s27  }
  0x47   : > { %s259_s19 = sshll.u32 %s5438_s18, 4  ;;  %s5298_s11 = scalar_lea.hbm %s7420_s6, 256  ;;  %s260_s19 = int_to_ptr.vmem [resolvable:$true] %s259_s19 }
  0x48   : > { %p5299_p6 = scmp.ne.s32.totalorder %s7420_s6, %s5298_s11  ;;  %p5305_p5 = scmp.lt.u32.totalorder %s5298_s11, %s7420_s6 }
  0x4a   : > { %p5301_p10 = pnand %p5299_p6, %p5553_p13 }
  0x4c   : > { %p5302_p3 = pneg %p5301_p10 }
  0x4e   : > { %p5307_p7 = pnand %p5305_p5, %p5302_p3 }
  0x50   : > { %5310 = shalt.err (!%p5307_p7)
}
  0x51   : > { %s5311_s14 = scalar_lea.vmem %s260_s19, 256  ;;  %p5319_p1 = scmp.lt.s32.totalorder %s260_s19, %s260_s19 }
  0x52   : > { %p5312_p9 = scmp.ne.s32.totalorder %s260_s19, %s5311_s14  ;;  %p5320_p2 = scmp.lt.s32.totalorder %s5311_s14, %s5311_s14 }
  0x54   : > { %p5314_p12 = pnand %p5312_p9, %p5553_p13  ;;  %p5321_p4 = por %p5320_p2, %p5319_p1 }
  0x56   : > { %p5315_p0 = pneg %p5314_p12 }
  0x58   : > { %p5322_p8 = pnand %p5321_p4, %p5315_p0 }
  0x5a   : > { %5325 = shalt.err (!%p5322_p8)
}
  0x5b   : > { %s7440_s29 = smov 8   ;;  %s7441_s10 = smov 128  }
  0x5c   : > { %4926 = dma.hbm_to_vmem [thread:$0]  (!%p5539_p11), %s7420_s6, 256, %s260_s19, [#allocation9], %s7441_s10, %s7441_s10, %s7440_s29  }
  0x5d   : > { %s81_s20 = ssub.s32 %s5430_s27, %s5604_s21  ;;  %s84_s12 = sadd.s32 1, %s5426_s26 }
  0x5e   : > { %p82_p4 = scmp.eq.s32.totalorder %s81_s20, 0  ;;  %p91_p8 = scmp.ne.s32.totalorder %s5426_s26, %s5422_s25 }
  0x5f   : > { %p92_p13 = scmp.eq.s32.totalorder %s5430_s27, 0  ;;  %p4938_p6 = scmp.lt.s32.totalorder %s5430_s27, 2 }
  0x60   : > { %s5635_s16 = scalar_select %p82_p4, %s5426_s26, %s84_s12  }
  0x61   : > { %p93_p10 = por %p92_p13, %p91_p8  ;;  %p7442_p3 = scmp.eq.s32.totalorder %s5509_s28, 1 }
  0x62   : > { %s291_s18 = sand.u32 1, %s5426_s26   ;;  %s4198_s22 = smul.u32 640, %s5430_s27 }
  0x63   : > { %p5639_p5 = por %p7442_p3, %p91_p8  ;;  %s4899_s23 = smul.u32 40, %s291_s18 }
  0x64   : > { %p5645_p7 = pnand %p4938_p6, %p93_p10  ;;  %s5652_s29 = scalar_lea.hbm %s7416_s2, %s4198_s22 }
  0x65   : > { %s295_s10 = scalar_lea.vmem [#allocation2], %s4899_s23  ;;  %s5656_s8 = scalar_lea.sflag [#allocation3], %s291_s18 }
  0x66   : > { %s302_s3 = sshll.u32 %s295_s10, 4  ;;  %s5326_s20 = scalar_lea.hbm %s5652_s29, 640  ;;  %s5654_s3 = int_to_ptr.vmem [resolvable:$true] %s302_s3 }
  0x67   : > { %p5327_p11 = scmp.ne.s32.totalorder %s5652_s29, %s5326_s20  ;;  %p5328_p9 = pneg %p5645_p7 }
  0x68   : > { %s5331_s19 = scalar_lea.hbm %s7416_s2, 1280  ;;  %p5332_p1 = scmp.lt.u32.totalorder %s5652_s29, %s7416_s2 }
  0x69   : > { %p5329_p12 = pnand %p5328_p9, %p5327_p11  ;;  %p5333_p2 = scmp.lt.u32.totalorder %s5331_s19, %s5326_s20 }
  0x6a   : > { %p5335_p8 = scmp.lt.u32.totalorder %s5326_s20, %s5652_s29 }
  0x6b   : > { %p5330_p0 = pneg %p5329_p12  ;;  %p5334_p4 = por %p5333_p2, %p5332_p1 }
  0x6d   : > { %p5336_p13 = por %p5335_p8, %p5334_p4 }
  0x6f   : > { %p5337_p6 = pnand %p5336_p13, %p5330_p0 }
  0x71   : > { %5340 = shalt.err (!%p5337_p6)
}
  0x72   : > { %s5341_s18 = scalar_lea.vmem %s5654_s3, 640  ;;  %s5439_s23 = smov [#allocation2]  }
  0x73   : > { %p5342_p10 = scmp.ne.s32.totalorder %s5654_s3, %s5341_s18  ;;  %s5346_s10 = sshll.u32 %s5439_s23, 4  ;;  %s5347_s10 = int_to_ptr.vmem [resolvable:$false] %s5346_s10 }
  0x74   : > { %s5348_s13 = scalar_lea.vmem %s5347_s10, 1280  ;;  %p5349_p12 = scmp.lt.s32.totalorder %s5654_s3, %s5347_s10 }
  0x75   : > { %p5344_p3 = pnand %p5342_p10, %p5328_p9  ;;  %p5350_p1 = scmp.lt.s32.totalorder %s5348_s13, %s5341_s18 }
  0x77   : > { %p5345_p11 = pneg %p5344_p3  ;;  %p5351_p2 = por %p5350_p1, %p5349_p12 }
  0x79   : > { %p5352_p4 = pnand %p5351_p2, %p5345_p11 }
  0x7b   : > { %5355 = shalt.err (!%p5352_p4)
}
  0x7c   : > { %s7445_s20 = smov 64   ;;  %p7446_p9 = scmp.ne.s32.totalorder %s7436_s9, 0 }
  0x7d   : > { %4930 = dma.hbm_to_vmem [thread:$0]  (!%p5645_p7), %s5652_s29, 640, %s5654_s3, %s5656_s8, %s7445_s20, %s7445_s20, %s5437_s15  }
  0x7e   : > { %314 = sbr.rel (%p7446_p9) target bundleno = 4608 (0x1200), region = 48  ;;  %s5690_s12 = sand.u32 (!%p7446_p9), 1, %s5422_s25  }
  0x7f   : > { %s4900_s22 = smul.u32 (!%p7446_p9), 40, %s5690_s12  ;;  %s317_s19 = scalar_lea.sflag (!%p7446_p9), [#allocation3], %s5690_s12 }
  0x80   : > { %p7447_p0 = scmp.ne.s32.totalorder (!%p7446_p9), %s7433_s30, 0 }
  0x81   : > { %s5694_s14 = scalar_lea.vmem (!%p7446_p9), [#allocation2], %s4900_s22 }
  0x85   : > { %5401 = dma.done.wait (%p7447_p0), %s317_s19, 640  }
  0x86   : > { %5403 = vsyncadd (%p7447_p0), %s317_s19, 4294966656  ;;  %p7448_p7 = scmp.eq.s32.totalorder %s5509_s28, 0 }
  0x88   : > { %5405 = dma.done.wait (%p7448_p7), [#allocation6], 3584   ;;  %p7449_p8 = pmov %p7448_p7 }
  0x89   : > { %p7450_p13 = pmov %p7448_p7 }
  0x8a   : > { %5407 = vsyncadd (%p7449_p8), [#allocation6], 4294963712 }
  0x8b   : > { %5409 = dma.done.wait (%p7450_p13), [#allocation9], 256   ;;  %p7451_p6 = pmov %p7448_p7 }
  0x8c   : > { %s372_s9 = smul.u32 10, %s5509_s28  ;;  %v7430_v0 = vmov 0.0   ;;  %vm5441_vm0 = vmmov 0   ;;  %v5442_v1 = vmov 0   ;;  %v4991_v2 = vld [vmem:[#allocation7 + $0x10] sm:$0xff]   ;;  %v4992_v3 = vld [vmem:[#allocation7] sm:$0xff]   ;;  %v475_v50 = vlaneseq }
  0x8d   : > { %5411 = vsyncadd (%p7451_p6), [#allocation9], 4294967040  ;;  %4389 = vmatprep.subr.bf16.mxu1 %v7430_v0  ;;  %4365 = vmatprep.subr.bf16.mxu0 %v7430_v0  ;;  %v4993_v4 = vld [vmem:[#allocation7 + $0x18] sm:$0xff]   ;;  %v4995_v7 = vld [vmem:[#allocation7 + $0x8] sm:$0xff]   ;;  %vm778_vm1 = vcmask 261120   ;;  %vm1277_vm2 = vcmask 64512  }
  0x8e   : > { %4393 = vmatprep.mubr.msk.bf16.mxu1 %vm5441_vm0, %v7430_v0  ;;  %p373_p10 = scmp.lt.s32.totalorder %s372_s9, 19  ;;  %4369 = vmatprep.mubr.msk.bf16.mxu0 %vm5441_vm0, %v7430_v0  ;;  %v5729_v8 = vld [vmem:[%s5694_s14] sm:$0xff]   ;;  %v5761_v15 = vld [vmem:[%s5694_s14 + $0x8] sm:$0xff]   ;;  %v5798_v33 = vld [vmem:[%s5694_s14 + $0x10] sm:$0xff]   ;;  %v5443_v48 = vmov 839922192  }
  0x8f   : > { %4989 = vset.pattern.permute.xlu0 %v5442_v1  ;;  %4990 = vset.pattern.permute.xlu1 %v5442_v1  ;;  %v5005_v32 = vld [vmem:[#allocation7 + $0x30] sm:$0xff]   ;;  %v5006_v34 = vld [vmem:[#allocation7 + $0x38] sm:$0xff]   ;;  %v5850_v46 = vld [vmem:[%s5694_s14 + $0x20] sm:$0xff]   ;;  %v473_v49 = vunpack.c.l.s4 %v5443_v48  ;;  %v5861_v52 = vshrl.u32 %v475_v50, 7  ;;  %s5444_s13 = smov 120   ;;  %vm1381_vm3 = vcmask 654336  }
  0x90   : > { %s7462_s9 = smov (!%p373_p10, %s372_s9), 19  ;;  %4390 = vmatpush3.bf16.msra.mxu1 %v4991_v2  ;;  %4366 = vmatpush3.bf16.msra.mxu0 %v4992_v3  ;;  %v5832_v42 = vld [vmem:[%s5694_s14 + $0x18] sm:$0xff]   ;;  %s5445_s19 = smov 112   ;;  %vm1966_vm4 = vcmask 1043456   ;;  %vm3910_vm5 = vcmask 647168  }
  0x91   : > { %s4055_s30 = sshll.u32 %s7462_s9, 2  ;;  %4391 = vmatprep.subr.bf16.mxu1 %v7430_v0  ;;  %4367 = vmatprep.subr.bf16.mxu0 %v7430_v0  ;;  %v474_v51 = vunpack.c.0.s8 %v473_v49  ;;  %s5446_s9 = smov 104  }
  0x92   : > { %s5718_s29 = scalar_lea.vmem %s7414_s0, %s4055_s30  ;;  %s5736_s18 = scalar_lea.vmem %s7415_s1, %s4055_s30 }
  0x93   : > { %v5722_v5 = vld [vmem:[%s5718_s29] sm:$0xf]  ;;  %v5725_v6 = vld [vmem:[%s5718_s29 + $0x4] sm:$0xf]  ;;  %v5740_v10 = vld [vmem:[%s5718_s29 + $0x8] sm:$0xf]  ;;  %v5864_v53 = vsub.s32 %v474_v51, %v5861_v52 }
  0x94   : > { %v4069_v9 = vcombine.low %v5722_v5, %v5725_v6  ;;  %4392 = vmatpush3.bf16.msra.mxu1 %v4993_v4  ;;  %4368 = vmatpush3.bf16.msra.mxu0 %v4995_v7  ;;  %v5743_v11 = vld [vmem:[%s5718_s29 + $0xc] sm:$0xf]  ;;  %v5748_v12 = vld [vmem:[%s5736_s18] sm:$0xf]  ;;  %v5751_v13 = vld [vmem:[%s5736_s18 + $0x4] sm:$0xf] }
  0x95   : > { %4437 = vmatprep.subr.bf16.mxu1 %v7430_v0  ;;  %4413 = vmatprep.subr.bf16.mxu0 %v7430_v0  ;;  %v5754_v14 = vld [vmem:[%s5736_s18 + $0x8] sm:$0xf]  ;;  %v597_v16 = vsub.bf16 1065369472, %v5748_v12  ;;  %v5768_v18 = vld [vmem:[%s5736_s18 + $0xc] sm:$0xf]  ;;  %v4070_v23 = vcombine.low %v5740_v10, %v5743_v11 }
  0x96   : > { %v599_v17 = vsub.bf16 1065369472, %v5754_v14  ;;  %v5771_v19 = vld [vmem:[%s5736_s18 + $0x14] sm:$0xf]  ;;  %v5774_v20 = vld [vmem:[%s5736_s18 + $0x10] sm:$0xf] }
  0x97   : > { %4394 = vmatmul.mubr.msk.bf16.vlgmr.msra.gmra.mrb[0].mxu1 %vm778_vm1, %v4069_v9  ;;  %4370 = vmatmul.mubr.msk.bf16.vlgmr.msra.gmra.mrb[0].mxu0 %vm778_vm1, %v5729_v8  ;;  %v598_v21 = vsub.bf16 1065369472, %v5751_v13  ;;  %v600_v22 = vsub.bf16 1065369472, %v5768_v18  ;;  %v5781_v24 = vld [vmem:[%s5736_s18 + $0x1c] sm:$0xf] }
  0x98   : > { %4397 = vmatprep.mubr.msk.bf16.mxu1 %vm5441_vm0, %v7430_v0  ;;  %4373 = vmatprep.mubr.msk.bf16.mxu0 %vm5441_vm0, %v7430_v0  ;;  %v5784_v25 = vld [vmem:[%s5736_s18 + $0x18] sm:$0xf]  ;;  %v602_v26 = vsub.bf16 1065369472, %v5771_v19  ;;  %v601_v27 = vsub.bf16 1065369472, %v5774_v20 }
  0x99   : > { %609 = vperm.xlu0 %4989, %v597_v16   ;;  %633 = vperm.xlu1 %4990, %v599_v17   ;;  %v604_v28 = vsub.bf16 1065369472, %v5781_v24  ;;  %v5790_v29 = vld [vmem:[%s5718_s29 + $0x10] sm:$0xf]  ;;  %v5793_v30 = vld [vmem:[%s5718_s29 + $0x14] sm:$0xf] }
  0x9a   : > { %v603_v31 = vsub.bf16 1065369472, %v5784_v25  ;;  %v5807_v35 = vld [vmem:[%s5736_s18 + $0x24] sm:$0xf]  ;;  %4414 = vmatpush3.bf16.msra.mxu0 %v5005_v32  ;;  %v5810_v36 = vld [vmem:[%s5736_s18 + $0x20] sm:$0xf]  ;;  %v4071_v37 = vcombine.low %v5790_v29, %v5793_v30 }
  0x9b   : > { %4415 = vmatprep.subr.bf16.mxu0 %v7430_v0  ;;  %v606_v38 = vsub.bf16 1065369472, %v5807_v35  ;;  %v605_v39 = vsub.bf16 1065369472, %v5810_v36  ;;  %v5824_v40 = vld [vmem:[%s5718_s29 + $0x18] sm:$0xf] }
  0x9c   : > { %v5827_v41 = vld [vmem:[%s5718_s29 + $0x1c] sm:$0xf]  ;;  %v5842_v44 = vld [vmem:[%s5718_s29 + $0x20] sm:$0xf]  ;;  %v5845_v45 = vld [vmem:[%s5718_s29 + $0x24] sm:$0xf] }
  0x9d   : > { %621 = vperm.xlu0 %4989, %v598_v21   ;;  %645 = vperm.xlu1 %4990, %v600_v22   ;;  %v4072_v43 = vcombine.low %v5824_v40, %v5827_v41  ;;  %v4073_v47 = vcombine.low %v5842_v44, %v5845_v45  ;;  %v7429_v51 = vsub.s32 0, %v5861_v52  ;;  %s371_s30 = scalar_lea.vmem [#allocation10], %s5690_s12  ;;  %s3913_s8 = scalar_lea.sflag [#allocation4], %s5690_s12 }
  0x9e   : > { %4416 = vmatpush3.bf16.msra.mxu0 %v5006_v34  ;;  %s3925_s15 = sshll.u32 %s371_s30, 4  ;;  %s7372_s15 = int_to_ptr.vmem [resolvable:$true] %s3925_s15 }
  0x9f   : > { %4398 = vmatmul.mubr.msk.bf16.gmra.mrb[4].mxu1 %vm778_vm1, %v4070_v23  ;;  %4374 = vmatmul.mubr.msk.bf16.gmra.mrb[4].mxu0 %vm778_vm1, %v5761_v15  ;;  %s5356_s18 = scalar_lea.vmem %s7372_s15, 16 }
  0xa0   : > { %4401 = vmatprep.mubr.msk.bf16.mxu1 %vm5441_vm0, %v7430_v0  ;;  %4377 = vmatprep.mubr.msk.bf16.mxu0 %vm5441_vm0, %v7430_v0  ;;  %p5357_p3 = scmp.ne.s32.totalorder %s7372_s15, %s5356_s18 }
  0xa1   : > { %669 = vperm.xlu1 %4990, %v602_v26   ;;  %657 = vperm.xlu0 %4989, %v601_v27  }
  0xa2   : > { %4461 = vmatprep.subr.bf16.mxu0 %v7430_v0  ;;  %p5358_p11 = pnand %p5357_p3, %p5639_p5 }
  0xa4   : > { %p5359_p12 = pneg %p5358_p11 }
  0xa5   : > { %693 = vperm.xlu1 %4990, %v604_v28   ;;  %681 = vperm.xlu0 %4989, %v603_v31  }
  0xa7   : > { %4402 = vmatmul.mubr.msk.bf16.gmra.mrb[8].mxu1 %vm778_vm1, %v4071_v37  ;;  %4378 = vmatmul.mubr.msk.bf16.gmra.mrb[8].mxu0 %vm778_vm1, %v5798_v33 }
  0xa8   : > { %4405 = vmatprep.mubr.msk.bf16.mxu1 %vm5441_vm0, %v7430_v0  ;;  %4381 = vmatprep.mubr.msk.bf16.mxu0 %vm5441_vm0, %v7430_v0 }
  0xa9   : > { %717 = vperm.xlu1 %4990, %v606_v38   ;;  %705 = vperm.xlu0 %4989, %v605_v39  }
  0xaf   : > { %4406 = vmatmul.mubr.msk.bf16.gmra.mrb[12].mxu1 %vm778_vm1, %v4072_v43  ;;  %4382 = vmatmul.mubr.msk.bf16.gmra.mrb[12].mxu0 %vm778_vm1, %v5832_v42 }
  0xb0   : > { %4409 = vmatprep.mubr.msk.bf16.mxu1 %vm5441_vm0, %v7430_v0  ;;  %4385 = vmatprep.mubr.msk.bf16.mxu0 %vm5441_vm0, %v7430_v0 }
  0xb7   : > { %4410 = vmatmul.mubr.msk.bf16.gmra.mrb[16].mxu1 %vm778_vm1, %v4073_v47  ;;  %4386 = vmatmul.mubr.msk.bf16.gmra.mrb[16].mxu0 %vm778_vm1, %v5850_v46 }
  0xb8   : > { %4441 = vmatprep.mubr.msk.bf16.mxu1 %vm5441_vm0, %v7430_v0  ;;  %4417 = vmatprep.mubr.msk.bf16.mxu0 %vm5441_vm0, %v7430_v0 }
 0x118   : > { %v610_v54 = vpop.permute.xlu0 %609  ;;  %v634_v55 = vpop.permute.xlu1 %633 }
 0x119   : > { %v618_v56 = vrot.slane %v610_v54, %v5864_v53  ;;  %v642_v62 = vrot.slane %v634_v55, %v5864_v53  ;;  %v465_v54 = vld [vmem:[#allocation8] sm:$0xff] }
 0x11a   : > { %v5904_v55 = vrot.slane %v465_v54, %v7429_v51 }
 0x11b   : > { %v727_v59 = vmul.bf16 %v618_v56, %v5722_v5  ;;  %v729_v2 = vmul.bf16 %v642_v62, %v5740_v10  ;;  %v5909_v56 = vld [vmem:[%s7419_s5] sm:$0xff] }
 0x11c   : > { %v622_v57 = vpop.permute.xlu0 %621  ;;  %v646_v58 = vpop.permute.xlu1 %645 }
 0x11d   : > { %v630_v60 = vrot.slane %v622_v57, %v5864_v53  ;;  %v654_v63 = vrot.slane %v646_v58, %v5864_v53 }
 0x11f   : > { %v728_v61 = vmul.bf16 %v630_v60, %v5725_v6  ;;  %v730_v3 = vmul.bf16 %v654_v63, %v5743_v11 }
 0x120   : > { %v670_v4 = vpop.permute.xlu1 %669  ;;  %v658_v7 = vpop.permute.xlu0 %657 }
 0x121   : > { %v4081_v1 = vcombine.low %v727_v59, %v728_v61  ;;  %v4082_v9 = vcombine.low %v729_v2, %v730_v3  ;;  %v678_v16 = vrot.slane %v670_v4, %v5864_v53  ;;  %v666_v17 = vrot.slane %v658_v7, %v5864_v53 }
 0x123   : > { %4418 = vmatmul.mubr.msk.bf16.vlgmr.msra.gmra.mrb[20].mxu0 %vm778_vm1, %v4081_v1  ;;  %v732_v21 = vmul.bf16 %v678_v16, %v5793_v30  ;;  %v731_v22 = vmul.bf16 %v666_v17, %v5790_v29 }
 0x124   : > { %4421 = vmatprep.mubr.msk.bf16.mxu0 %vm5441_vm0, %v7430_v0  ;;  %v694_v23 = vpop.permute.xlu1 %693  ;;  %v682_v26 = vpop.permute.xlu0 %681 }
 0x125   : > { %v4083_v27 = vcombine.low %v731_v22, %v732_v21  ;;  %v702_v28 = vrot.slane %v694_v23, %v5864_v53  ;;  %v690_v31 = vrot.slane %v682_v26, %v5864_v53 }
 0x127   : > { %v734_v32 = vmul.bf16 %v702_v28, %v5827_v41  ;;  %v733_v34 = vmul.bf16 %v690_v31, %v5824_v40 }
 0x128   : > { %v718_v37 = vpop.permute.xlu1 %717  ;;  %v706_v38 = vpop.permute.xlu0 %705 }
 0x129   : > { %v4084_v39 = vcombine.low %v733_v34, %v734_v32  ;;  %v726_v43 = vrot.slane %v718_v37, %v5864_v53  ;;  %v714_v47 = vrot.slane %v706_v38, %v5864_v53 }
 0x12b   : > { %4422 = vmatmul.mubr.msk.bf16.gmra.mrb[24].mxu0 %vm778_vm1, %v4082_v9  ;;  %v736_v48 = vmul.bf16 %v726_v43, %v5845_v45  ;;  %v735_v49 = vmul.bf16 %v714_v47, %v5842_v44 }
 0x12c   : > { %4425 = vmatprep.mubr.msk.bf16.mxu0 %vm5441_vm0, %v7430_v0 }
 0x12d   : > { %v4085_v50 = vcombine.low %v735_v49, %v736_v48 }
 0x133   : > { %4426 = vmatmul.mubr.msk.bf16.gmra.mrb[28].mxu0 %vm778_vm1, %v4083_v27 }
 0x134   : > { %4429 = vmatprep.mubr.msk.bf16.mxu0 %vm5441_vm0, %v7430_v0 }
 0x13b   : > { %4430 = vmatmul.mubr.msk.bf16.gmra.mrb[32].mxu0 %vm778_vm1, %v4084_v39 }
 0x13c   : > { %4433 = vmatprep.mubr.msk.bf16.mxu0 %vm5441_vm0, %v7430_v0 }
 0x143   : > { %4434 = vmatmul.mubr.msk.bf16.gmra.mrb[36].mxu0 %vm778_vm1, %v4085_v50 }
 0x144   : > { %4471 = vmatprep.mubr.msk.bf16.mxu0 %vm5441_vm0, %v7430_v0 }
 0x16a   : > { %v953_v57 = vpop.f32.mrb[0].mxu1  ;;  %v828_v59 = vpop.f32.mrb[0].mxu0 }
 0x16b   : > { %v4395_v58 = vpop.f32.mrb[1].mxu1  ;;  %v829_v61 = vadd.f32 %v828_v59, %v5904_v55  ;;  %v4371_v62 = vpop.f32.mrb[1].mxu0  ;;  %v992_v63 = vadd.f32 %v953_v57, %v5909_v56 }
 0x16c   : > { %v956_v60 = vpop.f32.mrb[2].mxu1  ;;  %v831_v3 = vpop.f32.mrb[2].mxu0 }
 0x16d   : > { %v993_v1 = vadd.f32 %v956_v60, %v5909_v56  ;;  %v4396_v2 = vpop.f32.mrb[3].mxu1  ;;  %v832_v4 = vadd.f32 %v831_v3, %v5904_v55  ;;  %v4372_v7 = vpop.f32.mrb[3].mxu0 }
 0x16f   : > { %v5915_v9 = vpack.c.bf16 %v993_v1, %v992_v63  ;;  %v5917_v16 = vpack.c.bf16 %v832_v4, %v829_v61  ;;  %v5007_v4 = vld [vmem:[#allocation7 + $0x20] sm:$0xff]  }
 0x170   : > { %4438 = vmatpush3.bf16.msra.mxu1 %v5007_v4  ;;  %v5008_v4 = vld [vmem:[#allocation7 + $0x28] sm:$0xff]  }
 0x171   : > { %1610 = vrot.lane.b32.xlu0 %v5915_v9, %s5444_s13  ;;  %v1294_v17 = vsel %vm1277_vm2, %v5915_v9, 0  ;;  %4439 = vmatprep.subr.bf16.mxu1 %v7430_v0 }
 0x172   : > { %v961_v21 = vpop.f32.mrb[4].mxu1  ;;  %4462 = vmatpush3.bf16.xpose.msra.mxu0 %v1294_v17  ;;  %v836_v23 = vpop.f32.mrb[4].mxu0 }
 0x173   : > { %v4399_v22 = vpop.f32.mrb[5].mxu1  ;;  %4463 = vmatprep.subr.bf16.mxu0 %v7430_v0  ;;  %v837_v27 = vadd.f32 %v836_v23, %v5904_v55  ;;  %v4375_v28 = vpop.f32.mrb[5].mxu0  ;;  %v994_v31 = vadd.f32 %v961_v21, %v5909_v56 }
 0x174   : > { %v964_v26 = vpop.f32.mrb[6].mxu1  ;;  %v839_v37 = vpop.f32.mrb[6].mxu0  ;;  %4440 = vmatpush3.bf16.msra.mxu1 %v5008_v4 }
 0x175   : > { %v995_v32 = vadd.f32 %v964_v26, %v5909_v56  ;;  %v4400_v34 = vpop.f32.mrb[7].mxu1  ;;  %v840_v38 = vadd.f32 %v839_v37, %v5904_v55  ;;  %v4376_v39 = vpop.f32.mrb[7].mxu0  ;;  %4491 = vmatprep.subr.bf16.mxu1 %v7430_v0 }
 0x177   : > { %v5928_v43 = vpack.c.bf16 %v995_v32, %v994_v31  ;;  %v5930_v47 = vpack.c.bf16 %v840_v38, %v837_v27 }
 0x179   : > { %1612 = vrot.lane.b32.xlu1 %v5928_v43, %s5444_s13  ;;  %v1297_v48 = vsel %vm1277_vm2, %v5928_v43, 0 }
 0x17a   : > { %v969_v49 = vpop.f32.mrb[8].mxu1  ;;  %4464 = vmatpush3.bf16.xpose.msra.mxu0 %v1297_v48  ;;  %v844_v54 = vpop.f32.mrb[8].mxu0 }
 0x17b   : > { %v4403_v50 = vpop.f32.mrb[9].mxu1  ;;  %4465 = vmatprep.subr.bf16.mxu0 %v7430_v0  ;;  %v845_v58 = vadd.f32 %v844_v54, %v5904_v55  ;;  %v4379_v59 = vpop.f32.mrb[9].mxu0  ;;  %v996_v60 = vadd.f32 %v969_v49, %v5909_v56 }
 0x17c   : > { %v972_v57 = vpop.f32.mrb[10].mxu1  ;;  %v847_v63 = vpop.f32.mrb[10].mxu0 }
 0x17d   : > { %v997_v61 = vadd.f32 %v972_v57, %v5909_v56  ;;  %v4404_v62 = vpop.f32.mrb[11].mxu1  ;;  %v848_v1 = vadd.f32 %v847_v63, %v5904_v55  ;;  %v4380_v2 = vpop.f32.mrb[11].mxu0 }
 0x17f   : > { %v5941_v3 = vpack.c.bf16 %v997_v61, %v996_v60  ;;  %v5943_v7 = vpack.c.bf16 %v848_v1, %v845_v58 }
 0x181   : > { %1614 = vrot.lane.b32.xlu0 %v5941_v3, %s5444_s13  ;;  %v1300_v17 = vsel %vm1277_vm2, %v5941_v3, 0 }
 0x182   : > { %v977_v21 = vpop.f32.mrb[12].mxu1  ;;  %4466 = vmatpush3.bf16.xpose.msra.mxu0 %v1300_v17  ;;  %v852_v23 = vpop.f32.mrb[12].mxu0 }
 0x183   : > { %v4407_v22 = vpop.f32.mrb[13].mxu1  ;;  %4467 = vmatprep.subr.bf16.mxu0 %v7430_v0  ;;  %v853_v27 = vadd.f32 %v852_v23, %v5904_v55  ;;  %v4383_v28 = vpop.f32.mrb[13].mxu0  ;;  %v998_v31 = vadd.f32 %v977_v21, %v5909_v56 }
 0x184   : > { %v980_v26 = vpop.f32.mrb[14].mxu1  ;;  %v855_v37 = vpop.f32.mrb[14].mxu0 }
 0x185   : > { %v999_v32 = vadd.f32 %v980_v26, %v5909_v56  ;;  %v4408_v34 = vpop.f32.mrb[15].mxu1  ;;  %v856_v38 = vadd.f32 %v855_v37, %v5904_v55  ;;  %v4384_v39 = vpop.f32.mrb[15].mxu0 }
 0x187   : > { %v5955_v48 = vpack.c.bf16 %v999_v32, %v998_v31  ;;  %v5957_v49 = vpack.c.bf16 %v856_v38, %v853_v27 }
 0x189   : > { %1616 = vrot.lane.b32.xlu1 %v5955_v48, %s5444_s13  ;;  %v1303_v50 = vsel %vm1277_vm2, %v5955_v48, 0 }
 0x18a   : > { %v985_v54 = vpop.f32.mrb[16].mxu1  ;;  %4468 = vmatpush3.bf16.xpose.msra.mxu0 %v1303_v50  ;;  %v860_v58 = vpop.f32.mrb[16].mxu0 }
 0x18b   : > { %v4411_v57 = vpop.f32.mrb[17].mxu1  ;;  %4469 = vmatprep.subr.bf16.mxu0 %v7430_v0  ;;  %v861_v60 = vadd.f32 %v860_v58, %v5904_v55  ;;  %v4387_v61 = vpop.f32.mrb[17].mxu0  ;;  %v1000_v62 = vadd.f32 %v985_v54, %v5909_v56 }
 0x18c   : > { %v988_v59 = vpop.f32.mrb[18].mxu1  ;;  %v863_v2 = vpop.f32.mrb[18].mxu0 }
 0x18d   : > { %v1001_v63 = vadd.f32 %v988_v59, %v5909_v56  ;;  %1595 = vrot.lane.b32.xlu1 %v5917_v16, %s5444_s13  ;;  %v4412_v1 = vpop.f32.mrb[19].mxu1  ;;  %v864_v17 = vadd.f32 %v863_v2, %v5904_v55  ;;  %v4388_v21 = vpop.f32.mrb[19].mxu0 }
 0x18f   : > { %v5970_v22 = vpack.c.bf16 %v1001_v63, %v1000_v62  ;;  %v5972_v23 = vpack.c.bf16 %v864_v17, %v861_v60 }
 0x191   : > { %1599 = vrot.lane.b32.xlu1 %v5943_v7, %s5444_s13  ;;  %1618 = vrot.lane.b32.xlu0 %v5970_v22, %s5444_s13  ;;  %v1306_v56 = vsel %vm1277_vm2, %v5970_v22, 0 }
 0x192   : > { %4470 = vmatpush3.bf16.xpose.msra.mxu0 %v1306_v56 }
 0x193   : > { %4521 = vmatprep.subr.bf16.mxu0 %v7430_v0 }
 0x195   : > { %1603 = vrot.lane.b32.xlu1 %v5972_v23, %s5444_s13  ;;  %1597 = vrot.lane.b32.xlu0 %v5930_v47, %s5444_s13 }
 0x199   : > { %481 = vperm.xlu1 %4990, %v5751_v13   ;;  %1601 = vrot.lane.b32.xlu0 %v5957_v49, %s5444_s13 }
 0x19a   : > { %4472 = vmatmul.mubr.msk.bf16.vlgmr.msra.gmra.mrb[40].mxu0 %vm1277_vm2, %v5917_v16 }
 0x19b   : > { %4475 = vmatprep.mubr.msk.bf16.mxu0 %vm5441_vm0, %v7430_v0 }
 0x19d   : > { %505 = vperm.xlu1 %4990, %v5768_v18   ;;  %469 = vperm.xlu0 %4989, %v5748_v12  }
 0x1a1   : > { %529 = vperm.xlu1 %4990, %v5771_v19   ;;  %493 = vperm.xlu0 %4989, %v5754_v14  }
 0x1a2   : > { %4476 = vmatmul.mubr.msk.bf16.gmra.mrb[44].mxu0 %vm1277_vm2, %v5930_v47 }
 0x1a3   : > { %4479 = vmatprep.mubr.msk.bf16.mxu0 %vm5441_vm0, %v7430_v0 }
 0x1a5   : > { %553 = vperm.xlu1 %4990, %v5781_v24   ;;  %517 = vperm.xlu0 %4989, %v5774_v20  }
 0x1a9   : > { %577 = vperm.xlu1 %4990, %v5807_v35   ;;  %541 = vperm.xlu0 %4989, %v5784_v25  }
 0x1aa   : > { %4480 = vmatmul.mubr.msk.bf16.gmra.mrb[48].mxu0 %vm1277_vm2, %v5943_v7 }
 0x1ab   : > { %4483 = vmatprep.mubr.msk.bf16.mxu0 %vm5441_vm0, %v7430_v0 }
 0x1ad   : > { %565 = vperm.xlu0 %4989, %v5810_v36  }
 0x1b2   : > { %4484 = vmatmul.mubr.msk.bf16.gmra.mrb[52].mxu0 %vm1277_vm2, %v5957_v49 }
 0x1b3   : > { %4487 = vmatprep.mubr.msk.bf16.mxu0 %vm5441_vm0, %v7430_v0 }
 0x1ba   : > { %4488 = vmatmul.mubr.msk.bf16.gmra.mrb[56].mxu0 %vm1277_vm2, %v5972_v23 }
 0x1bb   : > { %4531 = vmatprep.mubr.msk.bf16.mxu0 %vm5441_vm0, %v7430_v0 }
 0x1e3   : > { %v1611_v12 = vpop.permute.xlu0 %1610 }
 0x1e4   : > { %v1636_v13 = vsel %vm1277_vm2, %v1611_v12, 0 }
 0x1e5   : > { %4522 = vmatpush3.bf16.xpose.msra.mxu0 %v1636_v13 }
 0x1e6   : > { %4523 = vmatprep.subr.bf16.mxu0 %v7430_v0 }
 0x1eb   : > { %v1613_v14 = vpop.permute.xlu1 %1612 }
 0x1ec   : > { %v1639_v18 = vsel %vm1277_vm2, %v1613_v14, 0 }
 0x1ed   : > { %4524 = vmatpush3.bf16.xpose.msra.mxu0 %v1639_v18 }
 0x1ee   : > { %4525 = vmatprep.subr.bf16.mxu0 %v7430_v0 }
 0x1f3   : > { %v1615_v19 = vpop.permute.xlu0 %1614 }
 0x1f4   : > { %v1642_v20 = vsel %vm1277_vm2, %v1615_v19, 0 }
 0x1f5   : > { %4526 = vmatpush3.bf16.xpose.msra.mxu0 %v1642_v20 }
 0x1f6   : > { %4527 = vmatprep.subr.bf16.mxu0 %v7430_v0  ;;  %v6024_v24 = vpop.f32.mrb[20].mxu0 }
 0x1f7   : > { %v4419_v25 = vpop.f32.mrb[21].mxu0 }
 0x1f8   : > { %v6026_v35 = vpop.f32.mrb[22].mxu0 }
 0x1f9   : > { %v4420_v36 = vpop.f32.mrb[23].mxu0 }
 0x1fb   : > { %v1617_v55 = vpop.permute.xlu1 %1616 }
 0x1fc   : > { %v1645_v26 = vsel %vm1277_vm2, %v1617_v55, 0 }
 0x1fd   : > { %4528 = vmatpush3.bf16.xpose.msra.mxu0 %v1645_v26 }
 0x1fe   : > { %4529 = vmatprep.subr.bf16.mxu0 %v7430_v0  ;;  %v6030_v27 = vpop.f32.mrb[24].mxu0 }
 0x1ff   : > { %v4423_v28 = vpop.f32.mrb[25].mxu0  ;;  %v1596_v50 = vpop.permute.xlu1 %1595 }
 0x200   : > { %v6032_v31 = vpop.f32.mrb[26].mxu0 }
 0x201   : > { %v4424_v32 = vpop.f32.mrb[27].mxu0 }
 0x203   : > { %v1619_v34 = vpop.permute.xlu0 %1618  ;;  %v1600_v59 = vpop.permute.xlu1 %1599 }
 0x204   : > { %v1648_v37 = vsel %vm1277_vm2, %v1619_v34, 0 }
 0x205   : > { %4530 = vmatpush3.bf16.xpose.msra.mxu0 %v1648_v37 }
 0x206   : > { %4581 = vmatprep.subr.bf16.mxu0 %v7430_v0  ;;  %v6036_v38 = vpop.f32.mrb[28].mxu0 }
 0x207   : > { %v4427_v39 = vpop.f32.mrb[29].mxu0  ;;  %v1598_v61 = vpop.permute.xlu0 %1597 }
 0x208   : > { %v6038_v54 = vpop.f32.mrb[30].mxu0  ;;  %v1604_v1 = vpop.permute.xlu1 %1603 }
 0x209   : > { %v4428_v57 = vpop.f32.mrb[31].mxu0 }
 0x20b   : > { %v1602_v2 = vpop.permute.xlu0 %1601 }
 0x20c   : > { %4532 = vmatmul.mubr.msk.bf16.vlgmr.msra.gmra.mrb[60].mxu0 %vm1277_vm2, %v1596_v50 }
 0x20d   : > { %4535 = vmatprep.mubr.msk.bf16.mxu0 %vm5441_vm0, %v7430_v0 }
 0x20e   : > { %v6043_v58 = vpop.f32.mrb[32].mxu0 }
 0x20f   : > { %v4431_v60 = vpop.f32.mrb[33].mxu0 }
 0x210   : > { %v6045_v62 = vpop.f32.mrb[34].mxu0 }
 0x211   : > { %v4432_v63 = vpop.f32.mrb[35].mxu0 }
 0x214   : > { %4536 = vmatmul.mubr.msk.bf16.gmra.mrb[64].mxu0 %vm1277_vm2, %v1598_v61 }
 0x215   : > { %4539 = vmatprep.mubr.msk.bf16.mxu0 %vm5441_vm0, %v7430_v0 }
 0x216   : > { %v6050_v4 = vpop.f32.mrb[36].mxu0 }
 0x217   : > { %v4435_v21 = vpop.f32.mrb[37].mxu0 }
 0x218   : > { %v482_v17 = vpop.permute.xlu1 %481  ;;  %v6052_v56 = vpop.f32.mrb[38].mxu0 }
 0x219   : > { %v4436_v12 = vpop.f32.mrb[39].mxu0  ;;  %v490_v13 = vrot.slane %v482_v17, %v5864_v53 }
 0x21b   : > { %v588_v19 = vmul.bf16 %v490_v13, %v5725_v6 }
 0x21c   : > { %v470_v14 = vpop.permute.xlu0 %469  ;;  %4540 = vmatmul.mubr.msk.bf16.gmra.mrb[68].mxu0 %vm1277_vm2, %v1600_v59  ;;  %v506_v25 = vpop.permute.xlu1 %505 }
 0x21d   : > { %v478_v18 = vrot.slane %v470_v14, %v5864_v53  ;;  %4543 = vmatprep.mubr.msk.bf16.mxu0 %vm5441_vm0, %v7430_v0  ;;  %v514_v28 = vrot.slane %v506_v25, %v5864_v53 }
 0x21f   : > { %v587_v20 = vmul.bf16 %v478_v18, %v5722_v5  ;;  %v590_v6 = vmul.bf16 %v514_v28, %v5743_v11 }
 0x220   : > { %v494_v36 = vpop.permute.xlu0 %493  ;;  %v530_v34 = vpop.permute.xlu1 %529 }
 0x221   : > { %v4093_v55 = vcombine.low %v587_v20, %v588_v19  ;;  %v502_v26 = vrot.slane %v494_v36, %v5864_v53  ;;  %v538_v50 = vrot.slane %v530_v34, %v5864_v53  ;;  %v418_v19 = vld [vmem:[#allocation5 + $0x8] sm:$0xff] }
 0x223   : > { %4442 = vmatmul.mubr.msk.bf16.vlgmr.msra.gmra.mrb[20].mxu1 %vm778_vm1, %v4093_v55  ;;  %v589_v32 = vmul.bf16 %v502_v26, %v5740_v10  ;;  %v592_v11 = vmul.bf16 %v538_v50, %v5793_v30  ;;  %v6109_v26 = vld [vmem:[#allocation5 + $0x10] sm:$0xff] }
 0x224   : > { %4544 = vmatmul.mubr.msk.bf16.gmra.mrb[72].mxu0 %vm1277_vm2, %v1602_v2  ;;  %4445 = vmatprep.mubr.msk.bf16.mxu1 %vm5441_vm0, %v7430_v0  ;;  %v518_v5 = vpop.permute.xlu0 %517  ;;  %v554_v59 = vpop.permute.xlu1 %553 }
 0x225   : > { %4547 = vmatprep.mubr.msk.bf16.mxu0 %vm5441_vm0, %v7430_v0  ;;  %v4094_v37 = vcombine.low %v589_v32, %v590_v6  ;;  %v526_v39 = vrot.slane %v518_v5, %v5864_v53  ;;  %v562_v63 = vrot.slane %v554_v59, %v5864_v53  ;;  %v420_v32 = vld [vmem:[#allocation5 + $0x18] sm:$0xff] }
 0x227   : > { %v591_v10 = vmul.bf16 %v526_v39, %v5790_v29  ;;  %v594_v2 = vmul.bf16 %v562_v63, %v5827_v41 }
 0x228   : > { %v542_v57 = vpop.permute.xlu0 %541  ;;  %v578_v17 = vpop.permute.xlu1 %577 }
 0x229   : > { %v4095_v60 = vcombine.low %v591_v10, %v592_v11  ;;  %v550_v61 = vrot.slane %v542_v57, %v5864_v53  ;;  %v586_v12 = vrot.slane %v578_v17, %v5864_v53  ;;  %v422_v11 = vld [vmem:[#allocation5 + $0x28] sm:$0xff] }
 0x22b   : > { %4446 = vmatmul.mubr.msk.bf16.gmra.mrb[24].mxu1 %vm778_vm1, %v4094_v37  ;;  %v596_v14 = vmul.bf16 %v586_v12, %v5845_v45 }
 0x22c   : > { %4548 = vmatmul.mubr.msk.bf16.gmra.mrb[76].mxu0 %vm1277_vm2, %v1604_v1  ;;  %4449 = vmatprep.mubr.msk.bf16.mxu1 %vm5441_vm0, %v7430_v0  ;;  %v593_v1 = vmul.bf16 %v550_v61, %v5824_v40  ;;  %v566_v29 = vpop.permute.xlu0 %565  ;;  %v6098_v40 = vld [vmem:[#allocation5] sm:$0xff] }
 0x22d   : > { %4583 = vmatprep.mubr.msk.bf16.mxu0 %vm5441_vm0, %v7430_v0  ;;  %v574_v30 = vrot.slane %v566_v29, %v5864_v53 }
 0x22e   : > { %v4096_v21 = vcombine.low %v593_v1, %v594_v2  ;;  %v6128_v2 = vld [vmem:[#allocation5 + $0x38] sm:$0xff] }
 0x22f   : > { %v595_v13 = vmul.bf16 %v574_v30, %v5842_v44 }
 0x231   : > { %v4097_v18 = vcombine.low %v595_v13, %v596_v14 }
 0x233   : > { %4450 = vmatmul.mubr.msk.bf16.gmra.mrb[28].mxu1 %vm778_vm1, %v4095_v60 }
 0x234   : > { %4453 = vmatprep.mubr.msk.bf16.mxu1 %vm5441_vm0, %v7430_v0 }
 0x23b   : > { %4454 = vmatmul.mubr.msk.bf16.gmra.mrb[32].mxu1 %vm778_vm1, %v4096_v21 }
 0x23c   : > { %4457 = vmatprep.mubr.msk.bf16.mxu1 %vm5441_vm0, %v7430_v0 }
 0x243   : > { %4458 = vmatmul.mubr.msk.bf16.gmra.mrb[36].mxu1 %vm778_vm1, %v4097_v18  ;;  %v6137_v18 = vld [vmem:[#allocation5 + $0x48] sm:$0xff] }
 0x244   : > { %4501 = vmatprep.mubr.msk.bf16.mxu1 %vm5441_vm0, %v7430_v0 }
 0x26d   : > { %v1342_v41 = vpop.f32.mrb[40].mxu0 }
 0x26e   : > { %v6101_v53 = vadd.f32 %v1342_v41, %v6098_v40  ;;  %v4473_v20 = vpop.f32.mrb[41].mxu0 }
 0x26f   : > { %v1345_v25 = vpop.f32.mrb[42].mxu0 }
 0x270   : > { %v6103_v36 = vadd.f32 %v1345_v25, %v418_v19  ;;  %v4474_v44 = vpop.f32.mrb[43].mxu0  ;;  %v1382_v45 = vsel %vm1381_vm3, %v6101_v53, -inf }
 0x271   : > { %1383 = vmax.xlane.f32.xlu0 %v1382_v45 }
 0x272   : > { %v1385_v55 = vsel %vm1381_vm3, %v6103_v36, -inf }
 0x273   : > { %1386 = vmax.xlane.f32.xlu1 %v1385_v55 }
 0x275   : > { %v1350_v28 = vpop.f32.mrb[44].mxu0 }
 0x276   : > { %v6112_v5 = vadd.f32 %v1350_v28, %v6109_v26  ;;  %v4477_v6 = vpop.f32.mrb[45].mxu0 }
 0x277   : > { %v1353_v34 = vpop.f32.mrb[46].mxu0 }
 0x278   : > { %v6114_v37 = vadd.f32 %v1353_v34, %v420_v32  ;;  %v4478_v39 = vpop.f32.mrb[47].mxu0  ;;  %v1388_v50 = vsel %vm1381_vm3, %v6112_v5, -inf }
 0x279   : > { %1389 = vmax.xlane.f32.xlu0 %v1388_v50 }
 0x27a   : > { %v1391_v10 = vsel %vm1381_vm3, %v6114_v37, -inf }
 0x27d   : > { %1392 = vmax.xlane.f32.xlu0 %v1391_v10  ;;  %v6120_v57 = vpop.f32.mrb[48].mxu0 }
 0x27e   : > { %v4481_v59 = vpop.f32.mrb[49].mxu0 }
 0x27f   : > { %v1361_v60 = vpop.f32.mrb[50].mxu0 }
 0x280   : > { %v6122_v61 = vadd.f32 %v1361_v60, %v422_v11  ;;  %v4482_v63 = vpop.f32.mrb[51].mxu0 }
 0x282   : > { %v1397_v1 = vsel %vm1381_vm3, %v6122_v61, -inf }
 0x283   : > { %1398 = vmax.xlane.f32.xlu0 %v1397_v1 }
 0x285   : > { %v6126_v29 = vpop.f32.mrb[52].mxu0 }
 0x286   : > { %v4485_v17 = vpop.f32.mrb[53].mxu0 }
 0x287   : > { %v1369_v21 = vpop.f32.mrb[54].mxu0 }
 0x288   : > { %v6131_v30 = vadd.f32 %v1369_v21, %v6128_v2  ;;  %v4486_v12 = vpop.f32.mrb[55].mxu0 }
 0x28a   : > { %v1403_v13 = vsel %vm1381_vm3, %v6131_v30, -inf }
 0x28b   : > { %1404 = vmax.xlane.f32.xlu0 %v1403_v13 }
 0x28d   : > { %v6135_v14 = vpop.f32.mrb[56].mxu0 }
 0x28e   : > { %v4489_v41 = vpop.f32.mrb[57].mxu0 }
 0x28f   : > { %v1377_v20 = vpop.f32.mrb[58].mxu0 }
 0x290   : > { %v6140_v25 = vadd.f32 %v1377_v20, %v6137_v18  ;;  %v4490_v44 = vpop.f32.mrb[59].mxu0 }
 0x292   : > { %v1409_v45 = vsel %vm1381_vm3, %v6140_v25, -inf }
 0x293   : > { %1410 = vmax.xlane.f32.xlu0 %v1409_v45 }
 0x2df   : > { %v6144_v55 = vpop.f32.mrb[60].mxu0 }
 0x2e0   : > { %v4533_v28 = vpop.f32.mrb[61].mxu0 }
 0x2e1   : > { %v1687_v6 = vpop.f32.mrb[62].mxu0 }
 0x2e2   : > { %v6146_v34 = vadd.f32 %v1687_v6, %v418_v19  ;;  %v4534_v39 = vpop.f32.mrb[63].mxu0  ;;  %v464_v6 = vld [vmem:[%s7419_s5 + $0x8] sm:$0xff] }
 0x2e4   : > { %v1726_v50 = vsel %vm1381_vm3, %v6146_v34, -inf }
 0x2e5   : > { %1727 = vmax.xlane.f32.xlu0 %v1726_v50 }
 0x2e7   : > { %v6150_v10 = vpop.f32.mrb[64].mxu0 }
 0x2e8   : > { %v4537_v59 = vpop.f32.mrb[65].mxu0 }
 0x2e9   : > { %v1695_v60 = vpop.f32.mrb[66].mxu0 }
 0x2ea   : > { %v6152_v63 = vadd.f32 %v1695_v60, %v420_v32  ;;  %v4538_v1 = vpop.f32.mrb[67].mxu0 }
 0x2ec   : > { %v1732_v17 = vsel %vm1381_vm3, %v6152_v63, -inf }
 0x2ed   : > { %1733 = vmax.xlane.f32.xlu0 %v1732_v17 }
 0x2ef   : > { %v6156_v21 = vpop.f32.mrb[68].mxu0 }
 0x2f0   : > { %v4541_v19 = vpop.f32.mrb[69].mxu0 }
 0x2f1   : > { %v1703_v12 = vpop.f32.mrb[70].mxu0 }
 0x2f2   : > { %v6158_v13 = vadd.f32 %v1703_v12, %v422_v11  ;;  %v4542_v41 = vpop.f32.mrb[71].mxu0 }
 0x2f4   : > { %v1738_v20 = vsel %vm1381_vm3, %v6158_v13, -inf }
 0x2f5   : > { %1739 = vmax.xlane.f32.xlu0 %v1738_v20 }
 0x2f6   : > { %v1213_v44 = vpop.f32.mrb[20].mxu1 }
 0x2f7   : > { %v1214_v32 = vadd.f32 %v1213_v44, %v6024_v24  ;;  %v4443_v45 = vpop.f32.mrb[21].mxu1  ;;  %v6163_v28 = vpop.f32.mrb[72].mxu0 }
 0x2f8   : > { %v1216_v39 = vpop.f32.mrb[22].mxu1  ;;  %v4545_v50 = vpop.f32.mrb[73].mxu0 }
 0x2f9   : > { %v1217_v11 = vadd.f32 %v1216_v39, %v6026_v35  ;;  %v4444_v59 = vpop.f32.mrb[23].mxu1  ;;  %v6169_v60 = vpop.f32.mrb[74].mxu0  ;;  %v1252_v17 = vadd.f32 %v1214_v32, %v464_v6 }
 0x2fa   : > { %v4546_v1 = vpop.f32.mrb[75].mxu0 }
 0x2fb   : > { %v1253_v19 = vadd.f32 %v1217_v11, %v464_v6 }
 0x2fd   : > { %v6171_v12 = vpack.c.bf16 %v1253_v19, %v1252_v17 }
 0x2fe   : > { %v1221_v24 = vpop.f32.mrb[24].mxu1 }
 0x2ff   : > { %v1222_v41 = vadd.f32 %v1221_v24, %v6030_v27  ;;  %v4447_v20 = vpop.f32.mrb[25].mxu1  ;;  %4492 = vmatpush3.bf16.msra.mxu1 %v6171_v12  ;;  %1843 = vrot.lane.b32.xlu1 %v6171_v12, %s5444_s13  ;;  %v6177_v44 = vpop.f32.mrb[76].mxu0 }
 0x300   : > { %v1224_v35 = vpop.f32.mrb[26].mxu1  ;;  %4493 = vmatprep.subr.bf16.mxu1 %v7430_v0  ;;  %v4549_v32 = vpop.f32.mrb[77].mxu0 }
 0x301   : > { %v1225_v45 = vadd.f32 %v1224_v35, %v6032_v31  ;;  %v4448_v39 = vpop.f32.mrb[27].mxu1  ;;  %v6181_v50 = vpop.f32.mrb[78].mxu0  ;;  %v1254_v11 = vadd.f32 %v1222_v41, %v464_v6 }
 0x302   : > { %v4550_v27 = vpop.f32.mrb[79].mxu0 }
 0x303   : > { %v1255_v59 = vadd.f32 %v1225_v45, %v464_v6 }
 0x305   : > { %v6183_v1 = vpack.c.bf16 %v1255_v59, %v1254_v11 }
 0x306   : > { %v1229_v17 = vpop.f32.mrb[28].mxu1 }
 0x307   : > { %v1230_v19 = vadd.f32 %v1229_v17, %v6036_v38  ;;  %v4451_v24 = vpop.f32.mrb[29].mxu1  ;;  %4494 = vmatpush3.bf16.msra.mxu1 %v6183_v1  ;;  %v6197_v17 = vpop.xlane.xlu0 %1383 }
 0x308   : > { %v1232_v20 = vpop.f32.mrb[30].mxu1  ;;  %4495 = vmatprep.subr.bf16.mxu1 %v7430_v0 }
 0x309   : > { %v1233_v31 = vadd.f32 %v1232_v20, %v6038_v54  ;;  %v4452_v35 = vpop.f32.mrb[31].mxu1  ;;  %v1256_v32 = vadd.f32 %v1230_v19, %v464_v6 }
 0x30b   : > { %v1257_v39 = vadd.f32 %v1233_v31, %v464_v6  ;;  %1845 = vrot.lane.b32.xlu0 %v6183_v1, %s5444_s13  ;;  %v6201_v35 = vpop.xlane.xlu0 %1389 }
 0x30d   : > { %v6191_v41 = vpack.c.bf16 %v1257_v39, %v1256_v32 }
 0x30e   : > { %v1237_v45 = vpop.f32.mrb[32].mxu1 }
 0x30f   : > { %v1238_v11 = vadd.f32 %v1237_v45, %v6043_v58  ;;  %v4455_v38 = vpop.f32.mrb[33].mxu1  ;;  %4496 = vmatpush3.bf16.msra.mxu1 %v6191_v41  ;;  %v1387_v45 = vpop.xlane.xlu1 %1386 }
 0x310   : > { %v1240_v59 = vpop.f32.mrb[34].mxu1  ;;  %4497 = vmatprep.subr.bf16.mxu1 %v7430_v0 }
 0x311   : > { %v1241_v27 = vadd.f32 %v1240_v59, %v6045_v62  ;;  %v4456_v54 = vpop.f32.mrb[35].mxu1  ;;  %v1258_v19 = vadd.f32 %v1238_v11, %v464_v6  ;;  %v6207_v59 = vld [vmem:[#allocation5 + $0x20] sm:$0xff] }
 0x312   : > { %v1413_v54 = vsub.f32 %v6103_v36, %v1387_v45 }
 0x313   : > { %v1259_v24 = vadd.f32 %v1241_v27, %v464_v6 }
 0x315   : > { %v6199_v20 = vpack.c.bf16 %v1259_v24, %v1258_v19  ;;  %v1393_v19 = vpop.xlane.xlu0 %1392 }
 0x316   : > { %v1245_v31 = vpop.f32.mrb[36].mxu1 }
 0x317   : > { %v1246_v58 = vadd.f32 %v1245_v31, %v6050_v4  ;;  %v4459_v32 = vpop.f32.mrb[37].mxu1  ;;  %4498 = vmatpush3.bf16.msra.mxu1 %v6199_v20  ;;  %v6214_v4 = vadd.f32 %v6120_v57, %v6207_v59  ;;  %v423_v31 = vld [vmem:[#allocation5 + $0x30] sm:$0xff] }
 0x318   : > { %v1248_v39 = vpop.f32.mrb[38].mxu1  ;;  %4499 = vmatprep.subr.bf16.mxu1 %v7430_v0  ;;  %v1424_v32 = vmul.f32 1.442695, %v1413_v54  ;;  %v6237_v54 = vadd.f32 %v6181_v50, %v6137_v18 }
 0x319   : > { %v1249_v62 = vadd.f32 %v1248_v39, %v6052_v56  ;;  %v4460_v38 = vpop.f32.mrb[39].mxu1  ;;  %v1260_v11 = vadd.f32 %v1246_v58, %v464_v6  ;;  %v1415_v56 = vsub.f32 %v6114_v37, %v1393_v19  ;;  %v1399_v39 = vpop.xlane.xlu0 %1398  ;;  %v1394_v36 = vsel %vm1381_vm3, %v6214_v4, -inf  ;;  %v425_v58 = vld [vmem:[#allocation5 + $0x40] sm:$0xff] }
 0x31a   : > { %5022 = vpow2.f32 %v1424_v32  ;;  %v1417_v45 = vsub.f32 %v6122_v61, %v1399_v39  ;;  %v6230_v38 = vadd.f32 %v6135_v14, %v425_v58  ;;  %v6243_v14 = vadd.f32 %v6144_v55, %v6098_v40 }
 0x31b   : > { %v1261_v27 = vadd.f32 %v1249_v62, %v464_v6  ;;  %v6220_v6 = vadd.f32 %v6126_v29, %v423_v31  ;;  %v1428_v57 = vmul.f32 1.442695, %v1415_v56  ;;  %v6227_v62 = vadd.f32 %v6169_v60, %v6128_v2 }
 0x31c   : > { %v1406_v60 = vsel %vm1381_vm3, %v6230_v38, -inf  ;;  %v1750_v18 = vsel %vm1381_vm3, %v6237_v54, -inf  ;;  %v6254_v32 = vadd.f32 %v6150_v10, %v6109_v26  ;;  %v1723_v40 = vsel %vm1381_vm3, %v6243_v14, -inf }
 0x31d   : > { %v6210_v24 = vpack.c.bf16 %v1261_v27, %v1260_v11  ;;  %v1405_v37 = vpop.xlane.xlu0 %1404  ;;  %v1400_v29 = vsel %vm1381_vm3, %v6220_v6, -inf  ;;  %5024 = vpow2.f32 %v1428_v57  ;;  %v1432_v11 = vmul.f32 1.442695, %v1417_v45 }
 0x31e   : > { %v1419_v27 = vsub.f32 %v6131_v30, %v1405_v37  ;;  %v1744_v2 = vsel %vm1381_vm3, %v6227_v62, -inf  ;;  %v6264_v39 = vadd.f32 %v6156_v21, %v6207_v59  ;;  %v1729_v26 = vsel %vm1381_vm3, %v6254_v32, -inf }
 0x31f   : > { %4500 = vmatpush3.bf16.msra.mxu1 %v6210_v24  ;;  %5026 = vpow2.f32 %v1432_v11  ;;  %v6273_v57 = vadd.f32 %v6163_v28, %v423_v31 }
 0x320   : > { %4551 = vmatprep.subr.bf16.mxu1 %v7430_v0  ;;  %v1436_v19 = vmul.f32 1.442695, %v1419_v27  ;;  %v1735_v45 = vsel %vm1381_vm3, %v6264_v39, -inf }
 0x321   : > { %v1411_v61 = vpop.xlane.xlu0 %1410  ;;  %v1741_v11 = vsel %vm1381_vm3, %v6273_v57, -inf }
 0x322   : > { %v1421_v30 = vsub.f32 %v6140_v25, %v1411_v61  ;;  %5028 = vpow2.f32 %v1436_v19 }
 0x323   : > { %1395 = vmax.xlane.f32.xlu1 %v1394_v36 }
 0x324   : > { %v6250_v50 = vpop.eup %5022  ;;  %v1440_v55 = vmul.f32 1.442695, %v1421_v30 }
 0x325   : > { %v1445_v56 = vsel %vm1381_vm3, %v6250_v50, 0.0 }
 0x326   : > { %5030 = vpow2.f32 %v1440_v55 }
 0x327   : > { %1401 = vmax.xlane.f32.xlu1 %v1400_v29  ;;  %v6260_v25 = vpop.eup %5024  ;;  %v6282_v29 = vadd.f32 %v6177_v44, %v425_v58  ;;  %v1412_v44 = vsub.f32 %v6101_v53, %v6197_v17 }
 0x328   : > { %v1451_v10 = vsel %vm1381_vm3, %v6260_v25, 0.0 }
 0x329   : > { %v6270_v36 = vpop.eup %5026  ;;  %v1747_v27 = vsel %vm1381_vm3, %v6282_v29, -inf  ;;  %v1422_v58 = vmul.f32 1.442695, %v1412_v44 }
 0x32a   : > { %1745 = vmax.xlane.f32.xlu0 %v1744_v2  ;;  %v1457_v21 = vsel %vm1381_vm3, %v6270_v36, 0.0  ;;  %v1414_v2 = vsub.f32 %v6112_v5, %v6201_v35 }
 0x32b   : > { %1407 = vmax.xlane.f32.xlu1 %v1406_v60  ;;  %5032 = vpow2.f32 %v1422_v58 }
 0x32c   : > { %v6279_v37 = vpop.eup %5028  ;;  %v1426_v60 = vmul.f32 1.442695, %v1414_v2 }
 0x32d   : > { %v1463_v28 = vsel %vm1381_vm3, %v6279_v37, 0.0 }
 0x32e   : > { %1751 = vmax.xlane.f32.xlu0 %v1750_v18  ;;  %5034 = vpow2.f32 %v1426_v60 }
 0x32f   : > { %1724 = vmax.xlane.f32.xlu1 %v1723_v40 }
 0x330   : > { %v6288_v31 = vpop.eup %5030 }
 0x331   : > { %v1469_v61 = vsel %vm1381_vm3, %v6288_v31, 0.0 }
 0x332   : > { %1446 = vadd.xlane.f32.xlu0 %v1445_v56 }
 0x333   : > { %1730 = vmax.xlane.f32.xlu1 %v1729_v26 }
 0x335   : > { %v6300_v19 = vpop.eup %5032 }
 0x336   : > { %1452 = vadd.xlane.f32.xlu0 %v1451_v10  ;;  %v1442_v40 = vsel %vm1381_vm3, %v6300_v19, 0.0 }
 0x337   : > { %1736 = vmax.xlane.f32.xlu1 %v1735_v45 }
 0x338   : > { %v6305_v55 = vpop.eup %5034 }
 0x339   : > { %v1448_v53 = vsel %vm1381_vm3, %v6305_v55, 0.0 }
 0x33a   : > { %1458 = vadd.xlane.f32.xlu0 %v1457_v21 }
 0x33b   : > { %1742 = vmax.xlane.f32.xlu1 %v1741_v11 }
 0x33e   : > { %1464 = vadd.xlane.f32.xlu0 %v1463_v28 }
 0x33f   : > { %1748 = vmax.xlane.f32.xlu1 %v1747_v27 }
 0x342   : > { %1470 = vadd.xlane.f32.xlu0 %v1469_v61 }
 0x350   : > { %1847 = vrot.lane.b32.xlu1 %v6191_v41, %s5444_s13 }
 0x371   : > { %v6325_v61 = vpop.permute.xlu1 %1843 }
 0x372   : > { %v1728_v30 = vpop.xlane.xlu0 %1727 }
 0x373   : > { %v1754_v18 = vsub.f32 %v6146_v34, %v1728_v30 }
 0x374   : > { %1443 = vadd.xlane.f32.xlu1 %v1442_v40 }
 0x375   : > { %v1765_v56 = vmul.f32 1.442695, %v1754_v18 }
 0x377   : > { %5036 = vpow2.f32 %v1765_v56 }
 0x378   : > { %1449 = vadd.xlane.f32.xlu1 %v1448_v53 }
 0x37a   : > { %v1734_v5 = vpop.xlane.xlu0 %1733 }
 0x37b   : > { %v1756_v17 = vsub.f32 %v6152_v63, %v1734_v5 }
 0x37d   : > { %v1769_v35 = vmul.f32 1.442695, %v1756_v17 }
 0x37f   : > { %5038 = vpow2.f32 %v1769_v35 }
 0x381   : > { %v6310_v26 = vpop.eup %5036 }
 0x382   : > { %v1740_v34 = vpop.xlane.xlu0 %1739  ;;  %v1786_v10 = vsel %vm1381_vm3, %v6310_v26, 0.0 }
 0x383   : > { %v1758_v45 = vsub.f32 %v6158_v13, %v1740_v34  ;;  %1787 = vadd.xlane.f32.xlu0 %v1786_v10 }
 0x385   : > { %v1773_v21 = vmul.f32 1.442695, %v1758_v45 }
 0x386   : > { %v6328_v58 = vpop.permute.xlu0 %1845 }
 0x387   : > { %5040 = vpow2.f32 %v1773_v21 }
 0x389   : > { %v6315_v11 = vpop.eup %5038 }
 0x38a   : > { %v1792_v28 = vsel %vm1381_vm3, %v6315_v11, 0.0 }
 0x38b   : > { %1793 = vadd.xlane.f32.xlu0 %v1792_v28 }
 0x391   : > { %v6319_v63 = vpop.eup %5040 }
 0x392   : > { %v1798_v27 = vsel %vm1381_vm3, %v6319_v63, 0.0 }
 0x393   : > { %1799 = vadd.xlane.f32.xlu0 %v1798_v27 }
 0x3a9   : > { %1849 = vrot.lane.b32.xlu0 %v6199_v20, %s5444_s13 }
 0x3b0   : > { %v1396_v13 = vpop.xlane.xlu1 %1395 }
 0x3b1   : > { %v1416_v44 = vsub.f32 %v6214_v4, %v1396_v13 }
 0x3b3   : > { %v1430_v2 = vmul.f32 1.442695, %v1416_v44 }
 0x3b4   : > { %v1402_v60 = vpop.xlane.xlu1 %1401 }
 0x3b5   : > { %5042 = vpow2.f32 %v1430_v2  ;;  %v1418_v30 = vsub.f32 %v6220_v6, %v1402_v60 }
 0x3b7   : > { %v1434_v18 = vmul.f32 1.442695, %v1418_v30  ;;  %v1746_v40 = vpop.xlane.xlu0 %1745 }
 0x3b8   : > { %v1760_v56 = vsub.f32 %v6227_v62, %v1746_v40  ;;  %v1408_v53 = vpop.xlane.xlu1 %1407 }
 0x3b9   : > { %5044 = vpow2.f32 %v1434_v18  ;;  %v1420_v5 = vsub.f32 %v6230_v38, %v1408_v53 }
 0x3ba   : > { %v1777_v17 = vmul.f32 1.442695, %v1760_v56 }
 0x3bb   : > { %v1438_v35 = vmul.f32 1.442695, %v1420_v5  ;;  %v1752_v30 = vpop.xlane.xlu0 %1751 }
 0x3bc   : > { %5046 = vpow2.f32 %v1777_v17  ;;  %v1725_v34 = vpop.xlane.xlu1 %1724  ;;  %v1762_v53 = vsub.f32 %v6237_v54, %v1752_v30 }
 0x3bd   : > { %5048 = vpow2.f32 %v1438_v35  ;;  %v1753_v4 = vsub.f32 %v6243_v14, %v1725_v34 }
 0x3bf   : > { %v6334_v10 = vpop.eup %5042  ;;  %v1763_v45 = vmul.f32 1.442695, %v1753_v4 }
 0x3c0   : > { %v1731_v21 = vpop.xlane.xlu1 %1730  ;;  %v1454_v6 = vsel %vm1381_vm3, %v6334_v10, 0.0 }
 0x3c1   : > { %5050 = vpow2.f32 %v1763_v45  ;;  %v1755_v62 = vsub.f32 %v6254_v32, %v1731_v21  ;;  %1455 = vadd.xlane.f32.xlu1 %v1454_v6  ;;  %v1781_v45 = vmul.f32 1.442695, %v1762_v53 }
 0x3c3   : > { %v6339_v28 = vpop.eup %5044  ;;  %v1767_v38 = vmul.f32 1.442695, %v1755_v62 }
 0x3c4   : > { %v1737_v27 = vpop.xlane.xlu1 %1736  ;;  %v1460_v13 = vsel %vm1381_vm3, %v6339_v28, 0.0 }
 0x3c5   : > { %5052 = vpow2.f32 %v1767_v38  ;;  %v1757_v14 = vsub.f32 %v6264_v39, %v1737_v27  ;;  %1461 = vadd.xlane.f32.xlu1 %v1460_v13 }
 0x3c6   : > { %v6344_v44 = vpop.eup %5046 }
 0x3c7   : > { %v6346_v2 = vpop.eup %5048  ;;  %v1771_v60 = vmul.f32 1.442695, %v1757_v14  ;;  %v1804_v32 = vsel %vm1381_vm3, %v6344_v44, 0.0 }
 0x3c8   : > { %v1743_v18 = vpop.xlane.xlu1 %1742  ;;  %1805 = vadd.xlane.f32.xlu0 %v1804_v32  ;;  %v1466_v40 = vsel %vm1381_vm3, %v6346_v2, 0.0 }
 0x3c9   : > { %5054 = vpow2.f32 %v1771_v60  ;;  %v1759_v56 = vsub.f32 %v6273_v57, %v1743_v18  ;;  %1467 = vadd.xlane.f32.xlu1 %v1466_v40  ;;  %v1447_v60 = vpop.xlane.xlu0 %1446 }
 0x3cb   : > { %v6353_v39 = vpop.eup %5050  ;;  %v1775_v5 = vmul.f32 1.442695, %v1759_v56 }
 0x3cc   : > { %v1749_v17 = vpop.xlane.xlu1 %1748  ;;  %v1783_v35 = vsel %vm1381_vm3, %v6353_v39, 0.0 }
 0x3cd   : > { %5056 = vpow2.f32 %v1775_v5  ;;  %v1761_v34 = vsub.f32 %v6282_v29, %v1749_v17  ;;  %1784 = vadd.xlane.f32.xlu1 %v1783_v35  ;;  %v1453_v18 = vpop.xlane.xlu0 %1452 }
 0x3cf   : > { %v6359_v4 = vpop.eup %5052  ;;  %v1779_v21 = vmul.f32 1.442695, %v1761_v34 }
 0x3d0   : > { %v1789_v57 = vsel %vm1381_vm3, %v6359_v4, 0.0  ;;  %v1848_v32 = vpop.permute.xlu1 %1847 }
 0x3d1   : > { %5058 = vpow2.f32 %v1779_v21  ;;  %1790 = vadd.xlane.f32.xlu1 %v1789_v57  ;;  %v1459_v56 = vpop.xlane.xlu0 %1458 }
 0x3d2   : > { %5060 = vpow2.f32 %v1781_v45 }
 0x3d3   : > { %v6363_v6 = vpop.eup %5054  ;;  %5062 = vrcp.f32 %v1447_v60 }
 0x3d4   : > { %v1795_v54 = vsel %vm1381_vm3, %v6363_v6, 0.0 }
 0x3d5   : > { %1796 = vadd.xlane.f32.xlu1 %v1795_v54  ;;  %v1465_v34 = vpop.xlane.xlu0 %1464 }
 0x3d7   : > { %v6367_v62 = vpop.eup %5056 }
 0x3d8   : > { %v1801_v29 = vsel %vm1381_vm3, %v6367_v62, 0.0 }
 0x3d9   : > { %1802 = vadd.xlane.f32.xlu1 %v1801_v29  ;;  %v1471_v29 = vpop.xlane.xlu0 %1470 }
 0x3db   : > { %v6371_v38 = vpop.eup %5058 }
 0x3dc   : > { %v1807_v27 = vsel %vm1381_vm3, %v6371_v38, 0.0  ;;  %v6375_v13 = vpop.eup %5060 }
 0x3dd   : > { %1808 = vadd.xlane.f32.xlu0 %v1807_v27  ;;  %v1810_v14 = vsel %vm1381_vm3, %v6375_v13, 0.0  ;;  %v5063_v53 = vpop.eup %5062 }
 0x3de   : > { %v1483_v17 = vmul.f32 %v5063_v53, %v6250_v50 }
 0x3e1   : > { %1811 = vadd.xlane.f32.xlu0 %v1810_v14 }
 0x3ea   : > { %1851 = vrot.lane.b32.xlu1 %v6210_v24, %s5444_s13 }
 0x3ee   : > { %2146 = vrot.lane.b32.xlu1 %v5928_v43, %s5445_s19 }
 0x3f2   : > { %2148 = vrot.lane.b32.xlu1 %v5941_v3, %s5445_s19 }
 0x3f6   : > { %2150 = vrot.lane.b32.xlu1 %v5955_v48, %s5445_s19 }
 0x3f7   : > { %2144 = vrot.lane.b32.xlu0 %v5915_v9, %s5445_s19 }
 0x3fa   : > { %2152 = vrot.lane.b32.xlu1 %v5970_v22, %s5445_s19 }
 0x3fb   : > { %2134 = vrot.lane.b32.xlu0 %v5917_v16, %s5445_s19 }
 0x3fe   : > { %2136 = vrot.lane.b32.xlu1 %v5930_v47, %s5445_s19 }
 0x3ff   : > { %2138 = vrot.lane.b32.xlu0 %v5943_v7, %s5445_s19 }
 0x401   : > { %v1444_v30 = vpop.xlane.xlu1 %1443 }
 0x402   : > { %5064 = vrcp.f32 %v1444_v30  ;;  %2140 = vrot.lane.b32.xlu1 %v5957_v49, %s5445_s19 }
 0x403   : > { %2142 = vrot.lane.b32.xlu0 %v5972_v23, %s5445_s19 }
 0x405   : > { %v1450_v40 = vpop.xlane.xlu1 %1449 }
 0x406   : > { %5066 = vrcp.f32 %v1450_v40  ;;  %2374 = vrot.lane.b32.xlu1 %v6183_v1, %s5445_s19 }
 0x407   : > { %2372 = vrot.lane.b32.xlu0 %v6171_v12, %s5445_s19  ;;  %5068 = vrcp.f32 %v1453_v18 }
 0x408   : > { %5070 = vrcp.f32 %v1459_v56 }
 0x40b   : > { %2376 = vrot.lane.b32.xlu0 %v6191_v41, %s5445_s19 }
 0x40c   : > { %v5065_v5 = vpop.eup %5064 }
 0x40d   : > { %v1482_v35 = vmul.f32 %v5065_v5, %v6300_v19 }
 0x40f   : > { %v1492_v45 = vpack.c.bf16 %v1483_v17, %v1482_v35 }
 0x410   : > { %v5067_v21 = vpop.eup %5066  ;;  %v1788_v27 = vpop.xlane.xlu0 %1787 }
 0x411   : > { %4502 = vmatmul.mubr.msk.bf16.vlgmr.msra.gmra.mrb[40].mxu1 %vm1381_vm3, %v1492_v45  ;;  %v5069_v57 = vpop.eup %5068  ;;  %v1484_v54 = vmul.f32 %v5067_v21, %v6305_v55 }
 0x412   : > { %4552 = vmatpush3.bf16.msra.mxu1 %v6325_v61  ;;  %4505 = vmatprep.mubr.msk.bf16.mxu1 %vm5441_vm0, %v7430_v0  ;;  %v1485_v50 = vmul.f32 %v5069_v57, %v6260_v25  ;;  %v5071_v30 = vpop.eup %5070 }
 0x413   : > { %4553 = vmatprep.subr.bf16.mxu1 %v7430_v0  ;;  %v1487_v53 = vmul.f32 %v5071_v30, %v6270_v36 }
 0x414   : > { %v1493_v19 = vpack.c.bf16 %v1485_v50, %v1484_v54 }
 0x416   : > { %4554 = vmatpush3.bf16.msra.mxu1 %v6328_v58 }
 0x417   : > { %4555 = vmatprep.subr.bf16.mxu1 %v7430_v0 }
 0x418   : > { %v1794_v61 = vpop.xlane.xlu0 %1793 }
 0x419   : > { %4506 = vmatmul.mubr.msk.bf16.gmra.mrb[44].mxu1 %vm1381_vm3, %v1493_v19 }
 0x41a   : > { %4556 = vmatpush3.bf16.msra.mxu1 %v1848_v32  ;;  %4509 = vmatprep.mubr.msk.bf16.mxu1 %vm5441_vm0, %v7430_v0 }
 0x41b   : > { %4557 = vmatprep.subr.bf16.mxu1 %v7430_v0 }
 0x420   : > { %v1800_v14 = vpop.xlane.xlu0 %1799 }
 0x424   : > { %v1850_v55 = vpop.permute.xlu0 %1849 }
 0x425   : > { %4558 = vmatpush3.bf16.msra.mxu1 %v1850_v55 }
 0x426   : > { %4559 = vmatprep.subr.bf16.mxu1 %v7430_v0 }
 0x44e   : > { %v1456_v25 = vpop.xlane.xlu1 %1455 }
 0x44f   : > { %5072 = vrcp.f32 %v1456_v25  ;;  %v443_v25 = vld [vmem:[#allocation7 + $0x40] sm:$0xf] }
 0x450   : > { %v2059_v30 = vsel %vm1966_vm4, %v443_v25, 0 }
 0x452   : > { %v1462_v58 = vpop.xlane.xlu1 %1461 }
 0x453   : > { %5074 = vrcp.f32 %v1462_v58 }
 0x454   : > { %5076 = vrcp.f32 %v1465_v34 }
 0x456   : > { %v1468_v60 = vpop.xlane.xlu1 %1467 }
 0x457   : > { %5078 = vrcp.f32 %v1468_v60 }
 0x458   : > { %5080 = vrcp.f32 %v1471_v29 }
 0x459   : > { %v5073_v32 = vpop.eup %5072 }
 0x45a   : > { %v1785_v18 = vpop.xlane.xlu1 %1784  ;;  %v1486_v40 = vmul.f32 %v5073_v32, %v6334_v10  ;;  %v1806_v32 = vpop.xlane.xlu0 %1805 }
 0x45b   : > { %5082 = vrcp.f32 %v1785_v18 }
 0x45c   : > { %v1494_v5 = vpack.c.bf16 %v1487_v53, %v1486_v40  ;;  %5084 = vrcp.f32 %v1788_v27 }
 0x45d   : > { %v5075_v17 = vpop.eup %5074 }
 0x45e   : > { %v1791_v35 = vpop.xlane.xlu1 %1790  ;;  %4510 = vmatmul.mubr.msk.bf16.gmra.mrb[48].mxu1 %vm1381_vm3, %v1494_v5  ;;  %v5077_v56 = vpop.eup %5076  ;;  %v1488_v34 = vmul.f32 %v5075_v17, %v6339_v28 }
 0x45f   : > { %4513 = vmatprep.mubr.msk.bf16.mxu1 %vm5441_vm0, %v7430_v0  ;;  %v1489_v21 = vmul.f32 %v5077_v56, %v6279_v37  ;;  %5086 = vrcp.f32 %v1791_v35 }
 0x460   : > { %5088 = vrcp.f32 %v1794_v61 }
 0x461   : > { %v1495_v10 = vpack.c.bf16 %v1489_v21, %v1488_v34  ;;  %v5079_v57 = vpop.eup %5078 }
 0x462   : > { %v1797_v45 = vpop.xlane.xlu1 %1796  ;;  %v5081_v54 = vpop.eup %5080  ;;  %v1490_v29 = vmul.f32 %v5079_v57, %v6346_v2 }
 0x463   : > { %v1491_v19 = vmul.f32 %v5081_v54, %v6288_v31  ;;  %v444_v31 = vld [vmem:[#allocation7 + $0x44] sm:$0xf]  ;;  %5090 = vrcp.f32 %v1797_v45 }
 0x464   : > { %v1968_v58 = vsel %vm1966_vm4, %v444_v31, 0  ;;  %5092 = vrcp.f32 %v1800_v14 }
 0x465   : > { %v1496_v28 = vpack.c.bf16 %v1491_v19, %v1490_v29  ;;  %v5083_v37 = vpop.eup %5082  ;;  %4582 = vmatpush3.bf16.msra.mxu0 %v1968_v58 }
 0x466   : > { %v1803_v36 = vpop.xlane.xlu1 %1802  ;;  %4514 = vmatmul.mubr.msk.bf16.gmra.mrb[52].mxu1 %vm1381_vm3, %v1495_v10  ;;  %v5085_v27 = vpop.eup %5084  ;;  %v1823_v55 = vmul.f32 %v5083_v37, %v6353_v39  ;;  %4625 = vmatprep.subr.bf16.mxu0 %v7430_v0 }
 0x467   : > { %4517 = vmatprep.mubr.msk.bf16.mxu1 %vm5441_vm0, %v7430_v0  ;;  %v1824_v2 = vmul.f32 %v5085_v27, %v6310_v26  ;;  %5094 = vrcp.f32 %v1803_v36 }
 0x468   : > { %5096 = vrcp.f32 %v1806_v32 }
 0x469   : > { %v1833_v60 = vpack.c.bf16 %v1824_v2, %v1823_v55  ;;  %v5087_v61 = vpop.eup %5086 }
 0x46a   : > { %v1852_v50 = vpop.permute.xlu1 %1851  ;;  %v5089_v39 = vpop.eup %5088  ;;  %v1825_v26 = vmul.f32 %v5087_v61, %v6359_v4 }
 0x46b   : > { %4560 = vmatpush3.bf16.msra.mxu1 %v1852_v50  ;;  %v1809_v18 = vpop.xlane.xlu0 %1808  ;;  %v1826_v40 = vmul.f32 %v5089_v39, %v6315_v11 }
 0x46c   : > { %4603 = vmatprep.subr.bf16.mxu1 %v7430_v0 }
 0x46d   : > { %v1834_v53 = vpack.c.bf16 %v1826_v40, %v1825_v26  ;;  %v5091_v14 = vpop.eup %5090 }
 0x46e   : > { %4518 = vmatmul.mubr.msk.bf16.gmra.mrb[56].mxu1 %vm1381_vm3, %v1496_v28  ;;  %v5093_v5 = vpop.eup %5092  ;;  %v1827_v35 = vmul.f32 %v5091_v14, %v6363_v6 }
 0x46f   : > { %4561 = vmatprep.mubr.msk.bf16.mxu1 %vm5441_vm0, %v7430_v0  ;;  %v1812_v17 = vpop.xlane.xlu0 %1811  ;;  %v1828_v4 = vmul.f32 %v5093_v5, %v6319_v63 }
 0x470   : > { %5098 = vrcp.f32 %v1812_v17 }
 0x471   : > { %v1835_v56 = vpack.c.bf16 %v1828_v4, %v1827_v35  ;;  %v5095_v34 = vpop.eup %5094  ;;  %5100 = vrcp.f32 %v1809_v18 }
 0x472   : > { %v5097_v11 = vpop.eup %5096  ;;  %v1829_v45 = vmul.f32 %v5095_v34, %v6367_v62  ;;  %v6468_v62 = vpop.permute.xlu1 %2146 }
 0x473   : > { %v1830_v21 = vmul.f32 %v5097_v11, %v6344_v44  ;;  %v2145_v29 = vpop.permute.xlu0 %2144 }
 0x475   : > { %v1836_v10 = vpack.c.bf16 %v1830_v21, %v1829_v45 }
 0x476   : > { %4562 = vmatmul.mubr.msk.bf16.vlgmr.msra.gmra.mrb[60].mxu1 %vm1381_vm3, %v1833_v60  ;;  %v6470_v44 = vpop.permute.xlu1 %2148 }
 0x477   : > { %4565 = vmatprep.mubr.msk.bf16.mxu1 %vm5441_vm0, %v7430_v0  ;;  %4604 = vmatpush3.bf16.msra.mxu1 %v2059_v30  ;;  %v6474_v19 = vpop.permute.xlu0 %2134 }
 0x478   : > { %4655 = vmatprep.subr.bf16.mxu1 %v7430_v0 }
 0x47a   : > { %v5099_v57 = vpop.eup %5098  ;;  %v6472_v50 = vpop.permute.xlu1 %2150 }
 0x47b   : > { %v5101_v6 = vpop.eup %5100  ;;  %v1832_v63 = vmul.f32 %v5099_v57, %v6375_v13  ;;  %v6478_v13 = vpop.permute.xlu0 %2138 }
 0x47c   : > { %v1831_v36 = vmul.f32 %v5101_v6, %v6371_v38 }
 0x47e   : > { %4566 = vmatmul.mubr.msk.bf16.gmra.mrb[64].mxu1 %vm1381_vm3, %v1834_v53  ;;  %v1837_v54 = vpack.c.bf16 %v1832_v63, %v1831_v36  ;;  %v6476_v28 = vpop.permute.xlu1 %2152 }
 0x47f   : > { %4569 = vmatprep.mubr.msk.bf16.mxu1 %vm5441_vm0, %v7430_v0  ;;  %v6482_v37 = vpop.permute.xlu0 %2142 }
 0x482   : > { %v6480_v38 = vpop.permute.xlu1 %2136 }
 0x483   : > { %v2373_v60 = vpop.permute.xlu0 %2372 }
 0x486   : > { %4570 = vmatmul.mubr.msk.bf16.gmra.mrb[68].mxu1 %vm1381_vm3, %v1835_v56  ;;  %v6484_v2 = vpop.permute.xlu1 %2140 }
 0x487   : > { %4573 = vmatprep.mubr.msk.bf16.mxu1 %vm5441_vm0, %v7430_v0  ;;  %v2377_v40 = vpop.permute.xlu0 %2376 }
 0x48a   : > { %v2375_v61 = vpop.permute.xlu1 %2374 }
 0x48e   : > { %4574 = vmatmul.mubr.msk.bf16.gmra.mrb[72].mxu1 %vm1381_vm3, %v1836_v10 }
 0x48f   : > { %4577 = vmatprep.mubr.msk.bf16.mxu1 %vm5441_vm0, %v7430_v0 }
 0x496   : > { %4578 = vmatmul.mubr.msk.bf16.gmra.mrb[76].mxu1 %vm1381_vm3, %v1837_v54 }
 0x497   : > { %4605 = vmatprep.mubr.msk.bf16.mxu1 %vm5441_vm0, %v7430_v0 }
 0x4e4   : > { %v1546_v27 = vpop.f32.mrb[40].mxu1 }
 0x4e5   : > { %v4503_v55 = vpop.f32.mrb[41].mxu1 }
 0x4e6   : > { %v1549_v25 = vpop.f32.mrb[42].mxu1 }
 0x4e7   : > { %v1585_v31 = vpack.c.bf16 %v1549_v25, %v1546_v27  ;;  %v4504_v58 = vpop.f32.mrb[43].mxu1 }
 0x4e9   : > { %4606 = vmatmul.mubr.msk.bf16.vlgmr.msra.gmra.mrb[80].mxu1 %vm1277_vm2, %v1585_v31  ;;  %v2170_v31 = vsel %vm1277_vm2, %v2145_v29, 0 }
 0x4ea   : > { %4656 = vmatpush3.bf16.msra.mxu1 %v2373_v60  ;;  %4609 = vmatprep.mubr.msk.bf16.mxu1 %vm5441_vm0, %v7430_v0 }
 0x4eb   : > { %4657 = vmatprep.subr.bf16.mxu1 %v7430_v0 }
 0x4ec   : > { %v1554_v30 = vpop.f32.mrb[44].mxu1 }
 0x4ed   : > { %v4507_v32 = vpop.f32.mrb[45].mxu1 }
 0x4ee   : > { %4658 = vmatpush3.bf16.msra.mxu1 %v2375_v61  ;;  %v1557_v39 = vpop.f32.mrb[46].mxu1 }
 0x4ef   : > { %v1586_v26 = vpack.c.bf16 %v1557_v39, %v1554_v30  ;;  %v4508_v18 = vpop.f32.mrb[47].mxu1  ;;  %4659 = vmatprep.subr.bf16.mxu1 %v7430_v0  ;;  %v2173_v39 = vsel %vm1277_vm2, %v6468_v62, 0 }
 0x4f1   : > { %4610 = vmatmul.mubr.msk.bf16.gmra.mrb[84].mxu1 %vm1277_vm2, %v1586_v26 }
 0x4f2   : > { %4660 = vmatpush3.bf16.msra.mxu1 %v2377_v40  ;;  %4613 = vmatprep.mubr.msk.bf16.mxu1 %vm5441_vm0, %v7430_v0 }
 0x4f3   : > { %4661 = vmatprep.subr.bf16.mxu1 %v7430_v0 }
 0x531   : > { %v1562_v53 = vpop.f32.mrb[48].mxu1 }
 0x532   : > { %v4511_v14 = vpop.f32.mrb[49].mxu1 }
 0x533   : > { %v1565_v5 = vpop.f32.mrb[50].mxu1  ;;  %v2176_v14 = vsel %vm1277_vm2, %v6470_v44, 0 }
 0x534   : > { %v1587_v17 = vpack.c.bf16 %v1565_v5, %v1562_v53  ;;  %v4512_v35 = vpop.f32.mrb[51].mxu1 }
 0x536   : > { %4614 = vmatmul.mubr.msk.bf16.gmra.mrb[88].mxu1 %vm1277_vm2, %v1587_v17 }
 0x537   : > { %4617 = vmatprep.mubr.msk.bf16.mxu1 %vm5441_vm0, %v7430_v0 }
 0x539   : > { %v1570_v4 = vpop.f32.mrb[52].mxu1 }
 0x53a   : > { %v4515_v56 = vpop.f32.mrb[53].mxu1 }
 0x53b   : > { %v1573_v34 = vpop.f32.mrb[54].mxu1  ;;  %v2179_v56 = vsel %vm1277_vm2, %v6472_v50, 0 }
 0x53c   : > { %v1588_v11 = vpack.c.bf16 %v1573_v34, %v1570_v4  ;;  %v4516_v45 = vpop.f32.mrb[55].mxu1 }
 0x53e   : > { %4618 = vmatmul.mubr.msk.bf16.gmra.mrb[92].mxu1 %vm1277_vm2, %v1588_v11 }
 0x53f   : > { %4621 = vmatprep.mubr.msk.bf16.mxu1 %vm5441_vm0, %v7430_v0 }
 0x541   : > { %v1578_v21 = vpop.f32.mrb[56].mxu1 }
 0x542   : > { %v4519_v10 = vpop.f32.mrb[57].mxu1 }
 0x543   : > { %v1581_v57 = vpop.f32.mrb[58].mxu1  ;;  %v2182_v10 = vsel %vm1277_vm2, %v6476_v28, 0 }
 0x544   : > { %v1589_v6 = vpack.c.bf16 %v1581_v57, %v1578_v21  ;;  %v4520_v63 = vpop.f32.mrb[59].mxu1 }
 0x546   : > { %4622 = vmatmul.mubr.msk.bf16.gmra.mrb[96].mxu1 %vm1277_vm2, %v1589_v6 }
 0x547   : > { %4665 = vmatprep.mubr.msk.bf16.mxu1 %vm5441_vm0, %v7430_v0 }
 0x549   : > { %v1907_v36 = vpop.f32.mrb[60].mxu1 }
 0x54a   : > { %v4563_v54 = vpop.f32.mrb[61].mxu1 }
 0x54b   : > { %v1910_v27 = vpop.f32.mrb[62].mxu1 }
 0x54c   : > { %v1946_v55 = vpack.c.bf16 %v1910_v27, %v1907_v36  ;;  %v4564_v25 = vpop.f32.mrb[63].mxu1 }
 0x54e   : > { %4584 = vmatmul.mubr.msk.bf16.vlgmr.msra.gmra.mrb[80].mxu0 %vm1277_vm2, %v1946_v55 }
 0x54f   : > { %4626 = vmatpush3.bf16.xpose.msra.mxu0 %v2170_v31  ;;  %4587 = vmatprep.mubr.msk.bf16.mxu0 %vm5441_vm0, %v7430_v0 }
 0x550   : > { %4627 = vmatprep.subr.bf16.mxu0 %v7430_v0 }
 0x551   : > { %v1915_v58 = vpop.f32.mrb[64].mxu1 }
 0x552   : > { %v4567_v60 = vpop.f32.mrb[65].mxu1 }
 0x553   : > { %v1918_v30 = vpop.f32.mrb[66].mxu1 }
 0x554   : > { %v1947_v61 = vpack.c.bf16 %v1918_v30, %v1915_v58  ;;  %v4568_v32 = vpop.f32.mrb[67].mxu1 }
 0x556   : > { %4588 = vmatmul.mubr.msk.bf16.gmra.mrb[84].mxu0 %vm1277_vm2, %v1947_v61 }
 0x557   : > { %4628 = vmatpush3.bf16.xpose.msra.mxu0 %v2173_v39  ;;  %4591 = vmatprep.mubr.msk.bf16.mxu0 %vm5441_vm0, %v7430_v0 }
 0x558   : > { %4629 = vmatprep.subr.bf16.mxu0 %v7430_v0 }
 0x559   : > { %v1923_v29 = vpop.f32.mrb[68].mxu1 }
 0x55a   : > { %v4571_v26 = vpop.f32.mrb[69].mxu1 }
 0x55b   : > { %v1926_v18 = vpop.f32.mrb[70].mxu1 }
 0x55c   : > { %v1948_v40 = vpack.c.bf16 %v1926_v18, %v1923_v29  ;;  %v4572_v53 = vpop.f32.mrb[71].mxu1 }
 0x55e   : > { %4592 = vmatmul.mubr.msk.bf16.gmra.mrb[88].mxu0 %vm1277_vm2, %v1948_v40 }
 0x55f   : > { %4630 = vmatpush3.bf16.xpose.msra.mxu0 %v2176_v14  ;;  %4595 = vmatprep.mubr.msk.bf16.mxu0 %vm5441_vm0, %v7430_v0 }
 0x560   : > { %4631 = vmatprep.subr.bf16.mxu0 %v7430_v0 }
 0x561   : > { %v1931_v62 = vpop.f32.mrb[72].mxu1 }
 0x562   : > { %v4575_v5 = vpop.f32.mrb[73].mxu1 }
 0x563   : > { %v1934_v17 = vpop.f32.mrb[74].mxu1 }
 0x564   : > { %v1949_v35 = vpack.c.bf16 %v1934_v17, %v1931_v62  ;;  %v4576_v4 = vpop.f32.mrb[75].mxu1 }
 0x566   : > { %4596 = vmatmul.mubr.msk.bf16.gmra.mrb[92].mxu0 %vm1277_vm2, %v1949_v35 }
 0x567   : > { %4632 = vmatpush3.bf16.xpose.msra.mxu0 %v2179_v56  ;;  %4599 = vmatprep.mubr.msk.bf16.mxu0 %vm5441_vm0, %v7430_v0 }
 0x568   : > { %4633 = vmatprep.subr.bf16.mxu0 %v7430_v0 }
 0x569   : > { %v1939_v44 = vpop.f32.mrb[76].mxu1 }
 0x56a   : > { %v4579_v34 = vpop.f32.mrb[77].mxu1 }
 0x56b   : > { %v1942_v11 = vpop.f32.mrb[78].mxu1 }
 0x56c   : > { %v1950_v45 = vpack.c.bf16 %v1942_v11, %v1939_v44  ;;  %v4580_v21 = vpop.f32.mrb[79].mxu1 }
 0x56e   : > { %4600 = vmatmul.mubr.msk.bf16.gmra.mrb[96].mxu0 %vm1277_vm2, %v1950_v45 }
 0x56f   : > { %4634 = vmatpush3.bf16.xpose.msra.mxu0 %v2182_v10  ;;  %4635 = vmatprep.mubr.msk.bf16.mxu0 %vm5441_vm0, %v7430_v0 }
 0x570   : > { %4685 = vmatprep.subr.bf16.mxu0 %v7430_v0 }
 0x576   : > { %4636 = vmatmul.mubr.msk.bf16.vlgmr.msra.gmra.mrb[100].mxu0 %vm1277_vm2, %v6474_v19 }
 0x577   : > { %4639 = vmatprep.mubr.msk.bf16.mxu0 %vm5441_vm0, %v7430_v0 }
 0x57e   : > { %4640 = vmatmul.mubr.msk.bf16.gmra.mrb[104].mxu0 %vm1277_vm2, %v6480_v38 }
 0x57f   : > { %4643 = vmatprep.mubr.msk.bf16.mxu0 %vm5441_vm0, %v7430_v0 }
 0x586   : > { %4644 = vmatmul.mubr.msk.bf16.gmra.mrb[108].mxu0 %vm1277_vm2, %v6478_v13 }
 0x587   : > { %4647 = vmatprep.mubr.msk.bf16.mxu0 %vm5441_vm0, %v7430_v0 }
 0x58e   : > { %4648 = vmatmul.mubr.msk.bf16.gmra.mrb[112].mxu0 %vm1277_vm2, %v6484_v2 }
 0x58f   : > { %4651 = vmatprep.mubr.msk.bf16.mxu0 %vm5441_vm0, %v7430_v0 }
 0x596   : > { %4652 = vmatmul.mubr.msk.bf16.gmra.mrb[116].mxu0 %vm1277_vm2, %v6482_v37 }
 0x597   : > { %4687 = vmatprep.mubr.msk.bf16.mxu0 %vm5441_vm0, %v7430_v0 }
 0x5bc   : > { %v2095_v50 = vpop.f32.mrb[80].mxu1 }
 0x5bd   : > { %v4607_v19 = vpop.f32.mrb[81].mxu1 }
 0x5be   : > { %v2098_v28 = vpop.f32.mrb[82].mxu1 }
 0x5bf   : > { %v4608_v38 = vpop.f32.mrb[83].mxu1 }
 0x5c4   : > { %v2103_v13 = vpop.f32.mrb[84].mxu1 }
 0x5c5   : > { %v4611_v57 = vpop.f32.mrb[85].mxu1 }
 0x5c6   : > { %v2106_v6 = vpop.f32.mrb[86].mxu1 }
 0x5c7   : > { %v4612_v63 = vpop.f32.mrb[87].mxu1 }
 0x609   : > { %v2111_v36 = vpop.f32.mrb[88].mxu1 }
 0x60a   : > { %v4615_v54 = vpop.f32.mrb[89].mxu1 }
 0x60b   : > { %v2114_v2 = vpop.f32.mrb[90].mxu1 }
 0x60c   : > { %v4616_v27 = vpop.f32.mrb[91].mxu1 }
 0x611   : > { %v2119_v55 = vpop.f32.mrb[92].mxu1 }
 0x612   : > { %v4619_v25 = vpop.f32.mrb[93].mxu1 }
 0x613   : > { %v2122_v31 = vpop.f32.mrb[94].mxu1 }
 0x614   : > { %v4620_v58 = vpop.f32.mrb[95].mxu1 }
 0x619   : > { %v2127_v37 = vpop.f32.mrb[96].mxu1 }
 0x61a   : > { %v4623_v60 = vpop.f32.mrb[97].mxu1 }
 0x61b   : > { %v2130_v30 = vpop.f32.mrb[98].mxu1  ;;  %v6576_v60 = vld [vmem:[#allocation5 + $0x8] sm:$0xff] }
 0x61c   : > { %v4624_v61 = vpop.f32.mrb[99].mxu1 }
 0x621   : > { %v2004_v32 = vpop.f32.mrb[80].mxu0 }
 0x622   : > { %v6553_v39 = vadd.f32 %v2095_v50, %v2004_v32  ;;  %v4585_v29 = vpop.f32.mrb[81].mxu0 }
 0x623   : > { %v2007_v26 = vpop.f32.mrb[82].mxu0  ;;  %v6581_v29 = vld [vmem:[#allocation5 + $0x10] sm:$0xff] }
 0x624   : > { %v6555_v18 = vadd.f32 %v2098_v28, %v2007_v26  ;;  %v4586_v40 = vpop.f32.mrb[83].mxu0 }
 0x629   : > { %v2012_v53 = vpop.f32.mrb[84].mxu0 }
 0x62a   : > { %v6557_v14 = vadd.f32 %v2103_v13, %v2012_v53  ;;  %v4589_v62 = vpop.f32.mrb[85].mxu0 }
 0x62b   : > { %v2015_v5 = vpop.f32.mrb[86].mxu0  ;;  %v6584_v62 = vld [vmem:[#allocation5 + $0x18] sm:$0xff] }
 0x62c   : > { %v6559_v17 = vadd.f32 %v2106_v6, %v2015_v5  ;;  %v4590_v35 = vpop.f32.mrb[87].mxu0 }
 0x631   : > { %v2020_v4 = vpop.f32.mrb[88].mxu0 }
 0x632   : > { %v6561_v56 = vadd.f32 %v2111_v36, %v2020_v4  ;;  %v4593_v44 = vpop.f32.mrb[89].mxu0 }
 0x633   : > { %v2023_v34 = vpop.f32.mrb[90].mxu0 }
 0x634   : > { %v6563_v11 = vadd.f32 %v2114_v2, %v2023_v34  ;;  %v4594_v45 = vpop.f32.mrb[91].mxu0  ;;  %v6573_v2 = vld [vmem:[#allocation5] sm:$0xff] }
 0x639   : > { %v2028_v21 = vpop.f32.mrb[92].mxu0 }
 0x63a   : > { %v6565_v10 = vadd.f32 %v2119_v55, %v2028_v21  ;;  %v4597_v50 = vpop.f32.mrb[93].mxu0 }
 0x63b   : > { %v2031_v19 = vpop.f32.mrb[94].mxu0 }
 0x63c   : > { %v6567_v28 = vadd.f32 %v2122_v31, %v2031_v19  ;;  %v4598_v38 = vpop.f32.mrb[95].mxu0  ;;  %v6592_v19 = vld [vmem:[#allocation5 + $0x28] sm:$0xff] }
 0x641   : > { %v2036_v13 = vpop.f32.mrb[96].mxu0 }
 0x642   : > { %v6569_v57 = vadd.f32 %v2127_v37, %v2036_v13  ;;  %v4601_v6 = vpop.f32.mrb[97].mxu0 }
 0x643   : > { %v2039_v63 = vpop.f32.mrb[98].mxu0 }
 0x644   : > { %v6571_v36 = vadd.f32 %v2130_v30, %v2039_v63  ;;  %v4602_v54 = vpop.f32.mrb[99].mxu0 }
 0x649   : > { %v2218_v27 = vpop.f32.mrb[100].mxu0 }
 0x64a   : > { %v2219_v25 = vadd.f32 %v6573_v2, %v2218_v27  ;;  %v4637_v55 = vpop.f32.mrb[101].mxu0  ;;  %v6598_v27 = vld [vmem:[#allocation5 + $0x30] sm:$0xff] }
 0x64b   : > { %v2221_v58 = vpop.f32.mrb[102].mxu0 }
 0x64c   : > { %v2222_v31 = vadd.f32 %v6576_v60, %v2221_v58  ;;  %v4638_v61 = vpop.f32.mrb[103].mxu0  ;;  %v2257_v37 = vsel %vm1381_vm3, %v2219_v25, -inf }
 0x64d   : > { %2258 = vmax.xlane.f32.xlu1 %v2257_v37  ;;  %v6603_v61 = vld [vmem:[#allocation5 + $0x38] sm:$0xff] }
 0x64e   : > { %v2260_v32 = vsel %vm1381_vm3, %v2222_v31, -inf }
 0x64f   : > { %2261 = vmax.xlane.f32.xlu0 %v2260_v32 }
 0x651   : > { %v2226_v30 = vpop.f32.mrb[104].mxu0 }
 0x652   : > { %v2227_v26 = vadd.f32 %v6581_v29, %v2226_v30  ;;  %v4641_v40 = vpop.f32.mrb[105].mxu0 }
 0x653   : > { %v2229_v53 = vpop.f32.mrb[106].mxu0 }
 0x654   : > { %v2230_v5 = vadd.f32 %v6584_v62, %v2229_v53  ;;  %v4642_v35 = vpop.f32.mrb[107].mxu0  ;;  %v2263_v4 = vsel %vm1381_vm3, %v2227_v26, -inf }
 0x655   : > { %2264 = vmax.xlane.f32.xlu0 %v2263_v4  ;;  %v6609_v35 = vld [vmem:[#allocation5 + $0x40] sm:$0xff] }
 0x656   : > { %v2266_v44 = vsel %vm1381_vm3, %v2230_v5, -inf }
 0x657   : > { %2267 = vmax.xlane.f32.xlu1 %v2266_v44 }
 0x659   : > { %v2234_v34 = vpop.f32.mrb[108].mxu0 }
 0x65a   : > { %v6590_v45 = vadd.f32 %v2234_v34, %v6207_v59  ;;  %v4645_v21 = vpop.f32.mrb[109].mxu0 }
 0x65b   : > { %v2237_v50 = vpop.f32.mrb[110].mxu0  ;;  %v6612_v21 = vld [vmem:[#allocation5 + $0x48] sm:$0xff] }
 0x65c   : > { %v2238_v38 = vadd.f32 %v6592_v19, %v2237_v50  ;;  %v4646_v13 = vpop.f32.mrb[111].mxu0  ;;  %v2269_v6 = vsel %vm1381_vm3, %v6590_v45, -inf }
 0x65d   : > { %2270 = vmax.xlane.f32.xlu0 %v2269_v6 }
 0x65e   : > { %v2272_v63 = vsel %vm1381_vm3, %v2238_v38, -inf }
 0x65f   : > { %2273 = vmax.xlane.f32.xlu1 %v2272_v63 }
 0x661   : > { %v2242_v54 = vpop.f32.mrb[112].mxu0 }
 0x662   : > { %v6601_v59 = vadd.f32 %v6598_v27, %v2242_v54  ;;  %v4649_v55 = vpop.f32.mrb[113].mxu0 }
 0x663   : > { %v2245_v58 = vpop.f32.mrb[114].mxu0 }
 0x664   : > { %v2246_v37 = vadd.f32 %v6603_v61, %v2245_v58  ;;  %v4650_v32 = vpop.f32.mrb[115].mxu0  ;;  %v2275_v30 = vsel %vm1381_vm3, %v6601_v59, -inf }
 0x665   : > { %2276 = vmax.xlane.f32.xlu0 %v2275_v30 }
 0x666   : > { %v2278_v40 = vsel %vm1381_vm3, %v2246_v37, -inf }
 0x667   : > { %2279 = vmax.xlane.f32.xlu1 %v2278_v40 }
 0x669   : > { %v2250_v53 = vpop.f32.mrb[116].mxu0 }
 0x66a   : > { %v2251_v4 = vadd.f32 %v6609_v35, %v2250_v53  ;;  %v4653_v44 = vpop.f32.mrb[117].mxu0 }
 0x66b   : > { %v2253_v34 = vpop.f32.mrb[118].mxu0 }
 0x66c   : > { %v2254_v50 = vadd.f32 %v6612_v21, %v2253_v34  ;;  %v4654_v13 = vpop.f32.mrb[119].mxu0  ;;  %v2281_v6 = vsel %vm1381_vm3, %v2251_v4, -inf }
 0x66d   : > { %2282 = vmax.xlane.f32.xlu0 %v2281_v6 }
 0x66e   : > { %v2284_v63 = vsel %vm1381_vm3, %v2254_v50, -inf }
 0x66f   : > { %2285 = vmax.xlane.f32.xlu1 %v2284_v63 }
 0x680   : > { %2380 = vrot.lane.b32.xlu1 %v6210_v24, %s5445_s19 }
 0x683   : > { %2378 = vrot.lane.b32.xlu0 %v6199_v20, %s5445_s19 }
 0x6da   : > { %v2259_v54 = vpop.xlane.xlu1 %2258 }
 0x6db   : > { %v2287_v55 = vsub.f32 %v2219_v25, %v2259_v54 }
 0x6dc   : > { %v2262_v58 = vpop.xlane.xlu0 %2261 }
 0x6dd   : > { %v2297_v32 = vmul.f32 1.442695, %v2287_v55  ;;  %v2288_v30 = vsub.f32 %v2222_v31, %v2262_v58 }
 0x6df   : > { %5102 = vpow2.f32 %v2297_v32  ;;  %v2299_v40 = vmul.f32 1.442695, %v2288_v30 }
 0x6e1   : > { %5104 = vpow2.f32 %v2299_v40 }
 0x6e2   : > { %v2265_v53 = vpop.xlane.xlu0 %2264 }
 0x6e3   : > { %v2289_v44 = vsub.f32 %v2227_v26, %v2265_v53 }
 0x6e4   : > { %v2268_v34 = vpop.xlane.xlu1 %2267 }
 0x6e5   : > { %v2301_v13 = vmul.f32 1.442695, %v2289_v44  ;;  %v2290_v6 = vsub.f32 %v2230_v5, %v2268_v34 }
 0x6e7   : > { %5106 = vpow2.f32 %v2301_v13  ;;  %v2303_v63 = vmul.f32 1.442695, %v2290_v6 }
 0x6e9   : > { %v6621_v51 = vpop.eup %5102  ;;  %5108 = vpow2.f32 %v2303_v63 }
 0x6ea   : > { %v2317_v0 = vsel %vm1381_vm3, %v6621_v51, 0.0  ;;  %v2271_v5 = vpop.xlane.xlu0 %2270 }
 0x6eb   : > { %v6625_v25 = vpop.eup %5104  ;;  %2318 = vadd.xlane.f32.xlu0 %v2317_v0 }
 0x6ec   : > { %v2274_v31 = vpop.xlane.xlu1 %2273  ;;  %v2320_v54 = vsel %vm1381_vm3, %v6625_v25, 0.0 }
 0x6ed   : > { %v2292_v55 = vsub.f32 %v2238_v38, %v2274_v31  ;;  %2321 = vadd.xlane.f32.xlu1 %v2320_v54 }
 0x6ef   : > { %v2307_v26 = vmul.f32 1.442695, %v2292_v55 }
 0x6f1   : > { %v6629_v58 = vpop.eup %5106  ;;  %5110 = vpow2.f32 %v2307_v26 }
 0x6f2   : > { %v2323_v32 = vsel %vm1381_vm3, %v6629_v58, 0.0  ;;  %v2277_v0 = vpop.xlane.xlu0 %2276 }
 0x6f3   : > { %v6633_v30 = vpop.eup %5108  ;;  %2324 = vadd.xlane.f32.xlu1 %v2323_v32  ;;  %v7452_v32 = vmov 0.0  }
 0x6f4   : > { %v2280_v40 = vpop.xlane.xlu1 %2279  ;;  %v2326_v44 = vsel %vm1381_vm3, %v6633_v30, 0.0 }
 0x6f5   : > { %v2294_v53 = vsub.f32 %v2246_v37, %v2280_v40 }
 0x6f7   : > { %v2311_v34 = vmul.f32 1.442695, %v2294_v53  ;;  %2327 = vadd.xlane.f32.xlu1 %v2326_v44  ;;  %v2291_v44 = vsub.f32 %v6590_v45, %v2271_v5 }
 0x6f9   : > { %5112 = vpow2.f32 %v2311_v34 }
 0x6fa   : > { %v2283_v38 = vpop.xlane.xlu0 %2282 }
 0x6fb   : > { %v6637_v13 = vpop.eup %5110  ;;  %v2295_v6 = vsub.f32 %v2251_v4, %v2283_v38 }
 0x6fc   : > { %v2286_v63 = vpop.xlane.xlu1 %2285  ;;  %v2332_v31 = vsel %vm1381_vm3, %v6637_v13, 0.0 }
 0x6fd   : > { %v2313_v54 = vmul.f32 1.442695, %v2295_v6  ;;  %v2296_v55 = vsub.f32 %v2254_v50, %v2286_v63  ;;  %2333 = vadd.xlane.f32.xlu1 %v2332_v31  ;;  %v2293_v6 = vsub.f32 %v6601_v59, %v2277_v0 }
 0x6fe   : > { %v2379_v26 = vpop.permute.xlu0 %2378 }
 0x6ff   : > { %5114 = vpow2.f32 %v2313_v54  ;;  %v2315_v37 = vmul.f32 1.442695, %v2296_v55  ;;  %4662 = vmatpush3.bf16.msra.mxu1 %v2379_v26  ;;  %v2309_v31 = vmul.f32 1.442695, %v2293_v6 }
 0x700   : > { %4663 = vmatprep.subr.bf16.mxu1 %v7452_v32  ;;  %v2381_v40 = vpop.permute.xlu1 %2380 }
 0x701   : > { %5116 = vpow2.f32 %v2315_v37  ;;  %2591 = vrot.lane.b32.xlu0 %v5915_v9, %s5446_s9  ;;  %v2305_v9 = vmul.f32 1.442695, %v2291_v44 }
 0x703   : > { %v6644_v4 = vpop.eup %5112  ;;  %4664 = vmatpush3.bf16.msra.mxu1 %v2381_v40  ;;  %5118 = vpow2.f32 %v2305_v9 }
 0x704   : > { %v2338_v53 = vsel %vm1381_vm3, %v6644_v4, 0.0  ;;  %4707 = vmatprep.subr.bf16.mxu1 %v7452_v32  ;;  %5120 = vpow2.f32 %v2309_v31 }
 0x705   : > { %2339 = vadd.xlane.f32.xlu1 %v2338_v53 }
 0x709   : > { %v6649_v50 = vpop.eup %5114 }
 0x70a   : > { %v2341_v34 = vsel %vm1381_vm3, %v6649_v50, 0.0 }
 0x70b   : > { %v6654_v38 = vpop.eup %5116  ;;  %2342 = vadd.xlane.f32.xlu1 %v2341_v34 }
 0x70c   : > { %v2344_v63 = vsel %vm1381_vm3, %v6654_v38, 0.0 }
 0x70d   : > { %v5119_v54 = vpop.eup %5118 }
 0x70e   : > { %v2329_v55 = vsel %vm1381_vm3, %v5119_v54, 0.0  ;;  %v6660_v45 = vpop.eup %5120 }
 0x70f   : > { %2345 = vadd.xlane.f32.xlu1 %v2344_v63  ;;  %v2335_v5 = vsel %vm1381_vm3, %v6660_v45, 0.0 }
 0x720   : > { %2330 = vadd.xlane.f32.xlu0 %v2329_v55  ;;  %2593 = vrot.lane.b32.xlu1 %v5928_v43, %s5446_s9 }
 0x724   : > { %2336 = vadd.xlane.f32.xlu0 %v2335_v5  ;;  %2581 = vrot.lane.b32.xlu1 %v5917_v16, %s5446_s9 }
 0x728   : > { %2585 = vrot.lane.b32.xlu1 %v5943_v7, %s5446_s9 }
 0x72c   : > { %2589 = vrot.lane.b32.xlu1 %v5972_v23, %s5446_s9 }
 0x73a   : > { %2595 = vrot.lane.b32.xlu0 %v5941_v3, %s5446_s9 }
 0x73e   : > { %2597 = vrot.lane.b32.xlu0 %v5955_v48, %s5446_s9 }
 0x742   : > { %2599 = vrot.lane.b32.xlu0 %v5970_v22, %s5446_s9 }
 0x746   : > { %2583 = vrot.lane.b32.xlu0 %v5930_v47, %s5446_s9 }
 0x74a   : > { %2587 = vrot.lane.b32.xlu0 %v5957_v49, %s5446_s9 }
 0x778   : > { %v2319_v16 = vpop.xlane.xlu0 %2318 }
 0x779   : > { %5122 = vrcp.f32 %v2319_v16 }
 0x77a   : > { %v2322_v43 = vpop.xlane.xlu1 %2321 }
 0x77b   : > { %5124 = vrcp.f32 %v2322_v43 }
 0x77c   : > { %v2592_v0 = vpop.permute.xlu0 %2591 }
 0x77d   : > { %v2617_v47 = vsel %vm1277_vm2, %v2592_v0, 0 }
 0x780   : > { %v2325_v7 = vpop.xlane.xlu1 %2324 }
 0x781   : > { %5126 = vrcp.f32 %v2325_v7 }
 0x783   : > { %v5123_v23 = vpop.eup %5122 }
 0x784   : > { %v2328_v3 = vpop.xlane.xlu1 %2327  ;;  %v2357_v48 = vmul.f32 %v5123_v23, %v6621_v51 }
 0x785   : > { %v5125_v59 = vpop.eup %5124  ;;  %5128 = vrcp.f32 %v2328_v3 }
 0x786   : > { %v2358_v22 = vmul.f32 %v5125_v59, %v6625_v25 }
 0x788   : > { %v2367_v26 = vpack.c.bf16 %v2358_v22, %v2357_v48 }
 0x78a   : > { %4666 = vmatmul.mubr.msk.bf16.vlgmr.msra.gmra.mrb[100].mxu1 %vm1381_vm3, %v2367_v26  ;;  %v2334_v40 = vpop.xlane.xlu1 %2333 }
 0x78b   : > { %4708 = vmatpush3.bf16.xpose.msra.mxu1 %v2617_v47  ;;  %4669 = vmatprep.mubr.msk.bf16.mxu1 %vm5441_vm0, %v7452_v32  ;;  %v5127_v49 = vpop.eup %5126  ;;  %5130 = vrcp.f32 %v2334_v40 }
 0x78c   : > { %4709 = vmatprep.subr.bf16.mxu1 %v7452_v32  ;;  %v2359_v53 = vmul.f32 %v5127_v49, %v6629_v58 }
 0x78f   : > { %v5129_v37 = vpop.eup %5128 }
 0x790   : > { %v2360_v51 = vmul.f32 %v5129_v37, %v6633_v30 }
 0x792   : > { %v2368_v25 = vpack.c.bf16 %v2360_v51, %v2359_v53  ;;  %v2340_v44 = vpop.xlane.xlu1 %2339 }
 0x794   : > { %4670 = vmatmul.mubr.msk.bf16.gmra.mrb[104].mxu1 %vm1381_vm3, %v2368_v25 }
 0x795   : > { %4673 = vmatprep.mubr.msk.bf16.mxu1 %vm5441_vm0, %v7452_v32  ;;  %v5131_v55 = vpop.eup %5130 }
 0x796   : > { %v2362_v7 = vmul.f32 %v5131_v55, %v6637_v13 }
 0x798   : > { %v2343_v34 = vpop.xlane.xlu1 %2342 }
 0x79c   : > { %v2346_v9 = vpop.xlane.xlu1 %2345 }
 0x7a0   : > { %v2594_v6 = vpop.permute.xlu1 %2593 }
 0x7a1   : > { %v2620_v63 = vsel %vm1277_vm2, %v2594_v6, 0 }
 0x7a2   : > { %4710 = vmatpush3.bf16.xpose.msra.mxu1 %v2620_v63 }
 0x7a3   : > { %4711 = vmatprep.subr.bf16.mxu1 %v7452_v32 }
 0x7ad   : > { %v2331_v31 = vpop.xlane.xlu0 %2330 }
 0x7ae   : > { %5132 = vrcp.f32 %v2331_v31 }
 0x7b1   : > { %v2337_v58 = vpop.xlane.xlu0 %2336 }
 0x7b2   : > { %5134 = vrcp.f32 %v2337_v58 }
 0x7b3   : > { %5136 = vrcp.f32 %v2340_v44 }
 0x7b4   : > { %5138 = vrcp.f32 %v2346_v9 }
 0x7b5   : > { %v2596_v30 = vpop.permute.xlu0 %2595  ;;  %5140 = vrcp.f32 %v2343_v34 }
 0x7b6   : > { %v2623_v5 = vsel %vm1277_vm2, %v2596_v30, 0 }
 0x7b7   : > { %4712 = vmatpush3.bf16.xpose.msra.mxu1 %v2623_v5 }
 0x7b8   : > { %v5133_v16 = vpop.eup %5132  ;;  %4713 = vmatprep.subr.bf16.mxu1 %v7452_v32 }
 0x7b9   : > { %v2361_v43 = vmul.f32 %v5133_v16, %v5119_v54  ;;  %v2598_v23 = vpop.permute.xlu0 %2597 }
 0x7ba   : > { %v2626_v22 = vsel %vm1277_vm2, %v2598_v23, 0 }
 0x7bb   : > { %v2369_v3 = vpack.c.bf16 %v2362_v7, %v2361_v43 }
 0x7bc   : > { %v5135_v59 = vpop.eup %5134 }
 0x7bd   : > { %4674 = vmatmul.mubr.msk.bf16.gmra.mrb[108].mxu1 %vm1381_vm3, %v2369_v3  ;;  %v5137_v48 = vpop.eup %5136  ;;  %v2363_v0 = vmul.f32 %v5135_v59, %v6660_v45  ;;  %v2600_v54 = vpop.permute.xlu0 %2599 }
 0x7be   : > { %4677 = vmatprep.mubr.msk.bf16.mxu1 %vm5441_vm0, %v7452_v32  ;;  %v2364_v13 = vmul.f32 %v5137_v48, %v6644_v4  ;;  %v5139_v47 = vpop.eup %5138  ;;  %v2629_v37 = vsel %vm1277_vm2, %v2600_v54, 0  ;;  %v2582_v4 = vpop.permute.xlu1 %2581 }
 0x7bf   : > { %4714 = vmatpush3.bf16.xpose.msra.mxu1 %v2626_v22  ;;  %v5141_v49 = vpop.eup %5140  ;;  %v2366_v40 = vmul.f32 %v5139_v47, %v6654_v38  ;;  %v445_v38 = vld [vmem:[#allocation7 + $0x48] sm:$0xf] }
 0x7c0   : > { %4715 = vmatprep.subr.bf16.mxu1 %v7452_v32  ;;  %v2370_v26 = vpack.c.bf16 %v2364_v13, %v2363_v0  ;;  %v2365_v45 = vmul.f32 %v5141_v49, %v6649_v50  ;;  %v2496_v50 = vsel %vm1966_vm4, %v445_v38, 0 }
 0x7c1   : > { %v2584_v51 = vpop.permute.xlu0 %2583  ;;  %4686 = vmatpush3.bf16.msra.mxu0 %v2496_v50 }
 0x7c2   : > { %v2371_v53 = vpack.c.bf16 %v2366_v40, %v2365_v45  ;;  %4737 = vmatprep.subr.bf16.mxu0 %v7452_v32  ;;  %v2586_v25 = vpop.permute.xlu1 %2585 }
 0x7c5   : > { %4678 = vmatmul.mubr.msk.bf16.gmra.mrb[112].mxu1 %vm1381_vm3, %v2370_v26  ;;  %v2588_v44 = vpop.permute.xlu0 %2587 }
 0x7c6   : > { %4681 = vmatprep.mubr.msk.bf16.mxu1 %vm5441_vm0, %v7452_v32  ;;  %v2590_v34 = vpop.permute.xlu1 %2589 }
 0x7c7   : > { %4716 = vmatpush3.bf16.xpose.msra.mxu1 %v2629_v37 }
 0x7c8   : > { %4767 = vmatprep.subr.bf16.mxu1 %v7452_v32 }
 0x7cd   : > { %4682 = vmatmul.mubr.msk.bf16.gmra.mrb[116].mxu1 %vm1381_vm3, %v2371_v53 }
 0x7ce   : > { %4717 = vmatprep.mubr.msk.bf16.mxu1 %vm5441_vm0, %v7452_v32 }
 0x7d5   : > { %4718 = vmatmul.mubr.msk.bf16.vlgmr.msra.gmra.mrb[120].mxu1 %vm1277_vm2, %v2582_v4 }
 0x7d6   : > { %4721 = vmatprep.mubr.msk.bf16.mxu1 %vm5441_vm0, %v7452_v32 }
 0x7dd   : > { %4722 = vmatmul.mubr.msk.bf16.gmra.mrb[124].mxu1 %vm1277_vm2, %v2584_v51 }
 0x7de   : > { %4725 = vmatprep.mubr.msk.bf16.mxu1 %vm5441_vm0, %v7452_v32 }
 0x7e5   : > { %4726 = vmatmul.mubr.msk.bf16.gmra.mrb[128].mxu1 %vm1277_vm2, %v2586_v25 }
 0x7e6   : > { %4729 = vmatprep.mubr.msk.bf16.mxu1 %vm5441_vm0, %v7452_v32 }
 0x7ed   : > { %4730 = vmatmul.mubr.msk.bf16.gmra.mrb[132].mxu1 %vm1277_vm2, %v2588_v44 }
 0x7ee   : > { %4733 = vmatprep.mubr.msk.bf16.mxu1 %vm5441_vm0, %v7452_v32 }
 0x7f5   : > { %4734 = vmatmul.mubr.msk.bf16.gmra.mrb[136].mxu1 %vm1277_vm2, %v2590_v34 }
 0x7f6   : > { %4769 = vmatprep.mubr.msk.bf16.mxu1 %vm5441_vm0, %v7452_v32 }
 0x85d   : > { %v2436_v9 = vpop.f32.mrb[100].mxu1 }
 0x85e   : > { %v4667_v6 = vpop.f32.mrb[101].mxu1 }
 0x85f   : > { %v2439_v63 = vpop.f32.mrb[102].mxu1 }
 0x860   : > { %v2475_v31 = vpack.c.bf16 %v2439_v63, %v2436_v9  ;;  %v4668_v58 = vpop.f32.mrb[103].mxu1 }
 0x862   : > { %4688 = vmatmul.mubr.msk.bf16.vlgmr.msra.gmra.mrb[120].mxu0 %vm1277_vm2, %v2475_v31 }
 0x863   : > { %4691 = vmatprep.mubr.msk.bf16.mxu0 %vm5441_vm0, %v7452_v32 }
 0x867   : > { %v2444_v30 = vpop.f32.mrb[104].mxu1 }
 0x868   : > { %v4671_v55 = vpop.f32.mrb[105].mxu1 }
 0x869   : > { %v2447_v5 = vpop.f32.mrb[106].mxu1 }
 0x86a   : > { %v2476_v16 = vpack.c.bf16 %v2447_v5, %v2444_v30  ;;  %v4672_v43 = vpop.f32.mrb[107].mxu1 }
 0x86c   : > { %4692 = vmatmul.mubr.msk.bf16.gmra.mrb[124].mxu0 %vm1277_vm2, %v2476_v16 }
 0x86d   : > { %4695 = vmatprep.mubr.msk.bf16.mxu0 %vm5441_vm0, %v7452_v32 }
 0x890   : > { %v2452_v7 = vpop.f32.mrb[108].mxu1 }
 0x891   : > { %v4675_v23 = vpop.f32.mrb[109].mxu1 }
 0x892   : > { %v2455_v3 = vpop.f32.mrb[110].mxu1 }
 0x893   : > { %v2477_v59 = vpack.c.bf16 %v2455_v3, %v2452_v7  ;;  %v4676_v48 = vpop.f32.mrb[111].mxu1 }
 0x895   : > { %4696 = vmatmul.mubr.msk.bf16.gmra.mrb[128].mxu0 %vm1277_vm2, %v2477_v59 }
 0x896   : > { %4699 = vmatprep.mubr.msk.bf16.mxu0 %vm5441_vm0, %v7452_v32 }
 0x898   : > { %v2460_v22 = vpop.f32.mrb[112].mxu1 }
 0x899   : > { %v4679_v0 = vpop.f32.mrb[113].mxu1 }
 0x89a   : > { %v2463_v13 = vpop.f32.mrb[114].mxu1 }
 0x89b   : > { %v2478_v54 = vpack.c.bf16 %v2463_v13, %v2460_v22  ;;  %v4680_v26 = vpop.f32.mrb[115].mxu1 }
 0x89d   : > { %4700 = vmatmul.mubr.msk.bf16.gmra.mrb[132].mxu0 %vm1277_vm2, %v2478_v54 }
 0x89e   : > { %4703 = vmatprep.mubr.msk.bf16.mxu0 %vm5441_vm0, %v7452_v32 }
 0x8a0   : > { %v2468_v47 = vpop.f32.mrb[116].mxu1 }
 0x8a1   : > { %v4683_v49 = vpop.f32.mrb[117].mxu1 }
 0x8a2   : > { %v2471_v37 = vpop.f32.mrb[118].mxu1 }
 0x8a3   : > { %v2479_v40 = vpack.c.bf16 %v2471_v37, %v2468_v47  ;;  %v4684_v45 = vpop.f32.mrb[119].mxu1  ;;  %v5235_v47 = vld [vmem:[#allocation5 + $0x20] sm:$0xff] }
 0x8a5   : > { %4704 = vmatmul.mubr.msk.bf16.gmra.mrb[136].mxu0 %vm1277_vm2, %v2479_v40 }
 0x8a6   : > { %4747 = vmatprep.mubr.msk.bf16.mxu0 %vm5441_vm0, %v7452_v32 }
 0x8a8   : > { %v2665_v53 = vpop.f32.mrb[120].mxu1 }
 0x8a9   : > { %v2666_v4 = vadd.f32 %v6573_v2, %v2665_v53  ;;  %v4719_v51 = vpop.f32.mrb[121].mxu1 }
 0x8aa   : > { %v2668_v38 = vpop.f32.mrb[122].mxu1 }
 0x8ab   : > { %v2669_v50 = vadd.f32 %v6576_v60, %v2668_v38  ;;  %v4720_v25 = vpop.f32.mrb[123].mxu1  ;;  %v2704_v44 = vsel %vm1381_vm3, %v2666_v4, -inf }
 0x8ac   : > { %2705 = vmax.xlane.f32.xlu0 %v2704_v44 }
 0x8ad   : > { %v2707_v34 = vsel %vm1381_vm3, %v2669_v50, -inf }
 0x8ae   : > { %2708 = vmax.xlane.f32.xlu1 %v2707_v34 }
 0x8b0   : > { %v2673_v9 = vpop.f32.mrb[124].mxu1 }
 0x8b1   : > { %v6753_v6 = vadd.f32 %v6581_v29, %v2673_v9  ;;  %v4723_v63 = vpop.f32.mrb[125].mxu1 }
 0x8b2   : > { %v2676_v31 = vpop.f32.mrb[126].mxu1 }
 0x8b3   : > { %v6756_v58 = vadd.f32 %v6584_v62, %v2676_v31  ;;  %v4724_v2 = vpop.f32.mrb[127].mxu1  ;;  %v2710_v60 = vsel %vm1381_vm3, %v6753_v6, -inf }
 0x8b4   : > { %2711 = vmax.xlane.f32.xlu0 %v2710_v60 }
 0x8b5   : > { %v2713_v30 = vsel %vm1381_vm3, %v6756_v58, -inf }
 0x8b8   : > { %2714 = vmax.xlane.f32.xlu0 %v2713_v30  ;;  %v2681_v55 = vpop.f32.mrb[128].mxu1 }
 0x8b9   : > { %v4727_v5 = vpop.f32.mrb[129].mxu1  ;;  %v6779_v49 = vadd.f32 %v5235_v47, %v2681_v55 }
 0x8ba   : > { %v2684_v16 = vpop.f32.mrb[130].mxu1 }
 0x8bb   : > { %v6763_v29 = vadd.f32 %v6592_v19, %v2684_v16  ;;  %v4728_v43 = vpop.f32.mrb[131].mxu1  ;;  %v2716_v37 = vsel %vm1381_vm3, %v6779_v49, -inf }
 0x8bd   : > { %v2719_v62 = vsel %vm1381_vm3, %v6763_v29, -inf }
 0x8be   : > { %2720 = vmax.xlane.f32.xlu0 %v2719_v62 }
 0x8bf   : > { %2819 = vrot.lane.b32.xlu1 %v6171_v12, %s5446_s9 }
 0x8c0   : > { %v2689_v7 = vpop.f32.mrb[132].mxu1 }
 0x8c1   : > { %v4731_v23 = vpop.f32.mrb[133].mxu1 }
 0x8c2   : > { %v2692_v3 = vpop.f32.mrb[134].mxu1 }
 0x8c3   : > { %v6770_v59 = vadd.f32 %v6603_v61, %v2692_v3  ;;  %v4732_v48 = vpop.f32.mrb[135].mxu1  ;;  %v6782_v61 = vadd.f32 %v6598_v27, %v2689_v7 }
 0x8c5   : > { %v2725_v22 = vsel %vm1381_vm3, %v6770_v59, -inf  ;;  %v2722_v40 = vsel %vm1381_vm3, %v6782_v61, -inf }
 0x8c6   : > { %2726 = vmax.xlane.f32.xlu0 %v2725_v22 }
 0x8c8   : > { %v2697_v19 = vpop.f32.mrb[136].mxu1 }
 0x8c9   : > { %v4735_v0 = vpop.f32.mrb[137].mxu1 }
 0x8ca   : > { %v2700_v13 = vpop.f32.mrb[138].mxu1 }
 0x8cb   : > { %v6775_v54 = vadd.f32 %v6612_v21, %v2700_v13  ;;  %v4736_v26 = vpop.f32.mrb[139].mxu1  ;;  %v6789_v21 = vadd.f32 %v6609_v35, %v2697_v19 }
 0x8cd   : > { %v2731_v12 = vsel %vm1381_vm3, %v6775_v54, -inf  ;;  %v2728_v45 = vsel %vm1381_vm3, %v6789_v21, -inf }
 0x8ce   : > { %2732 = vmax.xlane.f32.xlu0 %v2731_v12 }
 0x8e3   : > { %2717 = vmax.xlane.f32.xlu1 %v2716_v37 }
 0x8e4   : > { %2821 = vrot.lane.b32.xlu0 %v6183_v1, %s5446_s9 }
 0x8e7   : > { %2723 = vmax.xlane.f32.xlu1 %v2722_v40 }
 0x8eb   : > { %2729 = vmax.xlane.f32.xlu1 %v2728_v45 }
 0x8fc   : > { %2823 = vrot.lane.b32.xlu1 %v6191_v41, %s5446_s9 }
 0x935   : > { %v2532_v27 = vpop.f32.mrb[120].mxu0 }
 0x936   : > { %v6798_v53 = vadd.f32 %v2532_v27, %v6553_v39  ;;  %v4689_v51 = vpop.f32.mrb[121].mxu0 }
 0x937   : > { %v2535_v1 = vpop.f32.mrb[122].mxu0 }
 0x938   : > { %v6801_v35 = vadd.f32 %v2535_v1, %v6555_v18  ;;  %v4690_v38 = vpop.f32.mrb[123].mxu0 }
 0x939   : > { %v2706_v25 = vpop.xlane.xlu0 %2705 }
 0x93a   : > { %v2734_v44 = vsub.f32 %v2666_v4, %v2706_v25 }
 0x93b   : > { %v2709_v34 = vpop.xlane.xlu1 %2708 }
 0x93c   : > { %v2744_v9 = vmul.f32 1.442695, %v2734_v44  ;;  %v2735_v63 = vsub.f32 %v2669_v50, %v2709_v34 }
 0x93e   : > { %5142 = vpow2.f32 %v2744_v9  ;;  %v2746_v31 = vmul.f32 1.442695, %v2735_v63 }
 0x93f   : > { %v2820_v2 = vpop.permute.xlu1 %2819  ;;  %v2540_v60 = vpop.f32.mrb[124].mxu0 }
 0x940   : > { %5144 = vpow2.f32 %v2746_v31  ;;  %v6804_v41 = vadd.f32 %v2540_v60, %v6557_v14  ;;  %v4693_v39 = vpop.f32.mrb[125].mxu0  ;;  %4738 = vmatpush3.bf16.msra.mxu0 %v2820_v2 }
 0x941   : > { %v2712_v30 = vpop.xlane.xlu0 %2711  ;;  %v2543_v55 = vpop.f32.mrb[126].mxu0  ;;  %4739 = vmatprep.subr.bf16.mxu0 %v7452_v32 }
 0x942   : > { %v2736_v18 = vsub.f32 %v6753_v6, %v2712_v30  ;;  %v6809_v4 = vadd.f32 %v2543_v55, %v6559_v17  ;;  %v4694_v50 = vpop.f32.mrb[127].mxu0 }
 0x944   : > { %v2748_v5 = vmul.f32 1.442695, %v2736_v18 }
 0x945   : > { %v2715_v16 = vpop.xlane.xlu0 %2714 }
 0x946   : > { %5146 = vpow2.f32 %v2748_v5  ;;  %v2737_v43 = vsub.f32 %v6756_v58, %v2715_v16 }
 0x948   : > { %v6812_v62 = vpop.eup %5142  ;;  %v2750_v14 = vmul.f32 1.442695, %v2737_v43 }
 0x949   : > { %v2764_v7 = vsel %vm1381_vm3, %v6812_v62, 0.0 }
 0x94a   : > { %v6816_v23 = vpop.eup %5144  ;;  %5148 = vpow2.f32 %v2750_v14  ;;  %2765 = vadd.xlane.f32.xlu1 %v2764_v7 }
 0x94b   : > { %v2721_v6 = vpop.xlane.xlu0 %2720  ;;  %v2767_v17 = vsel %vm1381_vm3, %v6816_v23, 0.0 }
 0x94c   : > { %v2739_v3 = vsub.f32 %v6763_v29, %v2721_v6  ;;  %2768 = vadd.xlane.f32.xlu0 %v2767_v17 }
 0x94e   : > { %v2754_v48 = vmul.f32 1.442695, %v2739_v3 }
 0x950   : > { %v6821_v22 = vpop.eup %5146  ;;  %5150 = vpow2.f32 %v2754_v48 }
 0x951   : > { %v2770_v58 = vsel %vm1381_vm3, %v6821_v22, 0.0 }
 0x952   : > { %2771 = vadd.xlane.f32.xlu1 %v2770_v58 }
 0x953   : > { %v2727_v13 = vpop.xlane.xlu0 %2726 }
 0x954   : > { %v6825_v19 = vpop.eup %5148 }
 0x955   : > { %v2773_v0 = vsel %vm1381_vm3, %v6825_v19, 0.0 }
 0x956   : > { %2774 = vadd.xlane.f32.xlu0 %v2773_v0  ;;  %v446_v0 = vld [vmem:[#allocation7 + $0x4c] sm:$0xf] }
 0x95a   : > { %v6829_v26 = vpop.eup %5150 }
 0x95b   : > { %v2733_v12 = vpop.xlane.xlu0 %2732  ;;  %v2779_v29 = vsel %vm1381_vm3, %v6829_v26, 0.0 }
 0x95c   : > { %2780 = vadd.xlane.f32.xlu0 %v2779_v29 }
 0x95f   : > { %v2822_v47 = vpop.permute.xlu0 %2821 }
 0x960   : > { %4740 = vmatpush3.bf16.msra.mxu0 %v2822_v47 }
 0x961   : > { %4741 = vmatprep.subr.bf16.mxu0 %v7452_v32 }
 0x968   : > { %v2548_v37 = vpop.f32.mrb[128].mxu0 }
 0x969   : > { %v6835_v40 = vadd.f32 %v2548_v37, %v6561_v56  ;;  %v4697_v45 = vpop.f32.mrb[129].mxu0 }
 0x96a   : > { %v2551_v27 = vpop.f32.mrb[130].mxu0 }
 0x96b   : > { %v6838_v51 = vadd.f32 %v2551_v27, %v6563_v11  ;;  %v4698_v1 = vpop.f32.mrb[131].mxu0 }
 0x970   : > { %v2718_v38 = vpop.xlane.xlu1 %2717  ;;  %v2556_v25 = vpop.f32.mrb[132].mxu0 }
 0x971   : > { %v2738_v44 = vsub.f32 %v6779_v49, %v2718_v38  ;;  %v6842_v34 = vadd.f32 %v2556_v25, %v6565_v10  ;;  %v4701_v9 = vpop.f32.mrb[133].mxu0 }
 0x972   : > { %2825 = vrot.lane.b32.xlu0 %v6199_v20, %s5446_s9  ;;  %v2559_v63 = vpop.f32.mrb[134].mxu0  ;;  %v2741_v20 = vsub.f32 %v6770_v59, %v2727_v13  ;;  %v2943_v13 = vsel %vm1966_vm4, %v446_v0, 0 }
 0x973   : > { %v2752_v56 = vmul.f32 1.442695, %v2738_v44  ;;  %v6847_v31 = vadd.f32 %v2559_v63, %v6567_v28  ;;  %v4702_v2 = vpop.f32.mrb[135].mxu0  ;;  %4768 = vmatpush3.bf16.msra.mxu1 %v2943_v13 }
 0x974   : > { %v2724_v11 = vpop.xlane.xlu1 %2723  ;;  %v2758_v16 = vmul.f32 1.442695, %v2741_v20  ;;  %4813 = vmatprep.subr.bf16.mxu1 %v7452_v32 }
 0x975   : > { %5152 = vpow2.f32 %v2752_v56  ;;  %v2740_v60 = vsub.f32 %v6782_v61, %v2724_v11 }
 0x977   : > { %v2756_v39 = vmul.f32 1.442695, %v2740_v60 }
 0x978   : > { %v2730_v30 = vpop.xlane.xlu1 %2729  ;;  %v2564_v49 = vpop.f32.mrb[136].mxu0 }
 0x979   : > { %5154 = vpow2.f32 %v2756_v39  ;;  %v6851_v10 = vadd.f32 %v2564_v49, %v6569_v57  ;;  %v4705_v55 = vpop.f32.mrb[137].mxu0  ;;  %v2742_v43 = vsub.f32 %v6789_v21, %v2730_v30 }
 0x97a   : > { %v2567_v18 = vpop.f32.mrb[138].mxu0  ;;  %5156 = vpow2.f32 %v2758_v16 }
 0x97b   : > { %v6855_v50 = vadd.f32 %v2567_v18, %v6571_v36  ;;  %v4706_v28 = vpop.f32.mrb[139].mxu0  ;;  %v2743_v36 = vsub.f32 %v6775_v54, %v2733_v12  ;;  %v2760_v59 = vmul.f32 1.442695, %v2742_v43 }
 0x97c   : > { %v2824_v5 = vpop.permute.xlu1 %2823 }
 0x97d   : > { %4742 = vmatpush3.bf16.msra.mxu0 %v2824_v5  ;;  %v2762_v6 = vmul.f32 1.442695, %v2743_v36  ;;  %5158 = vpow2.f32 %v2760_v59 }
 0x97e   : > { %4743 = vmatprep.subr.bf16.mxu0 %v7452_v32 }
 0x97f   : > { %v6858_v61 = vpop.eup %5152  ;;  %5160 = vpow2.f32 %v2762_v6 }
 0x980   : > { %v2776_v57 = vsel %vm1381_vm3, %v6858_v61, 0.0 }
 0x981   : > { %2777 = vadd.xlane.f32.xlu1 %v2776_v57 }
 0x983   : > { %v6863_v14 = vpop.eup %5154 }
 0x984   : > { %v2782_v7 = vsel %vm1381_vm3, %v6863_v14, 0.0  ;;  %v6868_v17 = vpop.eup %5156 }
 0x985   : > { %2783 = vadd.xlane.f32.xlu1 %v2782_v7  ;;  %v2785_v21 = vsel %vm1381_vm3, %v6868_v17, 0.0 }
 0x987   : > { %v6872_v3 = vpop.eup %5158 }
 0x988   : > { %v2788_v48 = vsel %vm1381_vm3, %v6872_v3, 0.0 }
 0x989   : > { %v6876_v54 = vpop.eup %5160 }
 0x98a   : > { %v2791_v58 = vsel %vm1381_vm3, %v6876_v54, 0.0 }
 0x991   : > { %2786 = vadd.xlane.f32.xlu0 %v2785_v21 }
 0x995   : > { %2789 = vadd.xlane.f32.xlu0 %v2788_v48 }
 0x996   : > { %2827 = vrot.lane.b32.xlu1 %v6210_v24, %s5446_s9 }
 0x999   : > { %2792 = vadd.xlane.f32.xlu0 %v2791_v58 }
 0x9d7   : > { %v2766_v45 = vpop.xlane.xlu1 %2765 }
 0x9d9   : > { %v2769_v12 = vpop.xlane.xlu0 %2768 }
 0x9da   : > { %5162 = vrcp.f32 %v2769_v12 }
 0x9db   : > { %5164 = vrcp.f32 %v2766_v45 }
 0x9df   : > { %v2772_v24 = vpop.xlane.xlu1 %2771 }
 0x9e3   : > { %v2775_v29 = vpop.xlane.xlu0 %2774 }
 0x9e4   : > { %5166 = vrcp.f32 %v2775_v29  ;;  %v5163_v1 = vpop.eup %5162 }
 0x9e5   : > { %5168 = vrcp.f32 %v2772_v24  ;;  %v5165_v25 = vpop.eup %5164  ;;  %v2805_v44 = vmul.f32 %v5163_v1, %v6816_v23 }
 0x9e6   : > { %v2804_v9 = vmul.f32 %v5165_v25, %v6812_v62 }
 0x9e8   : > { %v2814_v56 = vpack.c.bf16 %v2805_v44, %v2804_v9 }
 0x9e9   : > { %v2781_v47 = vpop.xlane.xlu0 %2780 }
 0x9ed   : > { %v2826_v37 = vpop.permute.xlu0 %2825 }
 0x9ee   : > { %4744 = vmatpush3.bf16.msra.mxu0 %v2826_v37  ;;  %v5167_v2 = vpop.eup %5166 }
 0x9ef   : > { %4745 = vmatprep.subr.bf16.mxu0 %v7452_v32  ;;  %v5169_v11 = vpop.eup %5168  ;;  %v2807_v60 = vmul.f32 %v5167_v2, %v6825_v19 }
 0x9f0   : > { %v2806_v23 = vmul.f32 %v5169_v11, %v6821_v22  ;;  %v3030_v11 = vsub.s32 1, %v5861_v52 }
 0x9f2   : > { %v2815_v62 = vpack.c.bf16 %v2807_v60, %v2806_v23  ;;  %v6927_v60 = vld [vmem:[#allocation8] sm:$0xff] }
 0xa0e   : > { %v2778_v27 = vpop.xlane.xlu1 %2777 }
 0xa0f   : > { %5170 = vrcp.f32 %v2778_v27 }
 0xa10   : > { %5172 = vrcp.f32 %v2781_v47 }
 0xa12   : > { %v2784_v38 = vpop.xlane.xlu1 %2783 }
 0xa16   : > { %v2828_v63 = vpop.permute.xlu1 %2827 }
 0xa17   : > { %4746 = vmatpush3.bf16.msra.mxu0 %v2828_v63 }
 0xa18   : > { %4789 = vmatprep.subr.bf16.mxu0 %v7452_v32 }
 0xa19   : > { %v5171_v30 = vpop.eup %5170 }
 0xa1a   : > { %4748 = vmatmul.mubr.msk.bf16.vlgmr.msra.gmra.mrb[140].mxu0 %vm1381_vm3, %v2814_v56  ;;  %v5173_v55 = vpop.eup %5172  ;;  %v2808_v18 = vmul.f32 %v5171_v30, %v6858_v61 }
 0xa1b   : > { %4751 = vmatprep.mubr.msk.bf16.mxu0 %vm5441_vm0, %v7452_v32  ;;  %v2809_v28 = vmul.f32 %v5173_v55, %v6829_v26 }
 0xa1d   : > { %v2816_v19 = vpack.c.bf16 %v2809_v28, %v2808_v18 }
 0xa1e   : > { %v2787_v39 = vpop.xlane.xlu0 %2786 }
 0xa1f   : > { %5174 = vrcp.f32 %v2787_v39  ;;  %v6930_v39 = vrot.slane %v6927_v60, %v3030_v11 }
 0xa20   : > { %5176 = vrcp.f32 %v2784_v38 }
 0xa22   : > { %v2790_v49 = vpop.xlane.xlu0 %2789  ;;  %4752 = vmatmul.mubr.msk.bf16.gmra.mrb[144].mxu0 %vm1381_vm3, %v2815_v62 }
 0xa23   : > { %4755 = vmatprep.mubr.msk.bf16.mxu0 %vm5441_vm0, %v7452_v32 }
 0xa26   : > { %v2793_v20 = vpop.xlane.xlu0 %2792 }
 0xa27   : > { %5178 = vrcp.f32 %v2793_v20 }
 0xa28   : > { %5180 = vrcp.f32 %v2790_v49  ;;  %v5237_v49 = vld [vmem:[%s5694_s14] sm:$0xff]  }
 0xa29   : > { %v5175_v5 = vpop.eup %5174  ;;  %v3042_v55 = vunpack.c.l.bf16 %v5237_v49 }
 0xa2a   : > { %4756 = vmatmul.mubr.msk.bf16.gmra.mrb[148].mxu0 %vm1381_vm3, %v2816_v19  ;;  %v5177_v22 = vpop.eup %5176  ;;  %v2811_v16 = vmul.f32 %v5175_v5, %v6868_v17  ;;  %v3043_v5 = vunpack.c.h.bf16 %v5237_v49 }
 0xa2b   : > { %4759 = vmatprep.mubr.msk.bf16.mxu0 %vm5441_vm0, %v7452_v32  ;;  %v2810_v43 = vmul.f32 %v5177_v22, %v6863_v14 }
 0xa2d   : > { %v2817_v57 = vpack.c.bf16 %v2811_v16, %v2810_v43 }
 0xa31   : > { %v5179_v36 = vpop.eup %5178 }
 0xa32   : > { %4760 = vmatmul.mubr.msk.bf16.gmra.mrb[152].mxu0 %vm1381_vm3, %v2817_v57  ;;  %v5181_v61 = vpop.eup %5180  ;;  %v2813_v26 = vmul.f32 %v5179_v36, %v6876_v54 }
 0xa33   : > { %4763 = vmatprep.mubr.msk.bf16.mxu0 %vm5441_vm0, %v7452_v32  ;;  %v2812_v59 = vmul.f32 %v5181_v61, %v6872_v3 }
 0xa35   : > { %v2818_v7 = vpack.c.bf16 %v2813_v26, %v2812_v59  ;;  %v5238_v26 = vld [vmem:[%s5694_s14 + $0x8] sm:$0xff]  }
 0xa36   : > { %v3044_v59 = vunpack.c.l.bf16 %v5238_v26 }
 0xa3a   : > { %4764 = vmatmul.mubr.msk.bf16.gmra.mrb[156].mxu0 %vm1381_vm3, %v2818_v7 }
 0xa3b   : > { %4793 = vmatprep.mubr.msk.bf16.mxu0 %vm5441_vm0, %v7452_v32 }
 0xaed   : > { %v2883_v6 = vpop.f32.mrb[140].mxu0 }
 0xaee   : > { %v4749_v14 = vpop.f32.mrb[141].mxu0 }
 0xaef   : > { %v2886_v17 = vpop.f32.mrb[142].mxu0 }
 0xaf0   : > { %v2922_v21 = vpack.c.bf16 %v2886_v17, %v2883_v6  ;;  %v4750_v48 = vpop.f32.mrb[143].mxu0 }
 0xaf2   : > { %4770 = vmatmul.mubr.msk.bf16.vlgmr.msra.gmra.mrb[140].mxu1 %vm1277_vm2, %v2922_v21  ;;  %v3045_v21 = vunpack.c.h.bf16 %v5238_v26 }
 0xaf3   : > { %4773 = vmatprep.mubr.msk.bf16.mxu1 %vm5441_vm0, %v7452_v32 }
 0xaf5   : > { %v2891_v58 = vpop.f32.mrb[144].mxu0 }
 0xaf6   : > { %v4753_v54 = vpop.f32.mrb[145].mxu0 }
 0xaf7   : > { %v2894_v0 = vpop.f32.mrb[146].mxu0 }
 0xaf8   : > { %v2923_v3 = vpack.c.bf16 %v2894_v0, %v2891_v58  ;;  %v4754_v13 = vpop.f32.mrb[147].mxu0 }
 0xafa   : > { %4774 = vmatmul.mubr.msk.bf16.gmra.mrb[144].mxu1 %vm1277_vm2, %v2923_v3 }
 0xafb   : > { %4777 = vmatprep.mubr.msk.bf16.mxu1 %vm5441_vm0, %v7452_v32 }
 0xafd   : > { %v2899_v12 = vpop.f32.mrb[148].mxu0 }
 0xafe   : > { %v4757_v29 = vpop.f32.mrb[149].mxu0 }
 0xaff   : > { %v2902_v47 = vpop.f32.mrb[150].mxu0 }
 0xb00   : > { %v2924_v37 = vpack.c.bf16 %v2902_v47, %v2899_v12  ;;  %v4758_v45 = vpop.f32.mrb[151].mxu0  ;;  %v5239_v12 = vld [vmem:[%s5694_s14 + $0x10] sm:$0xff]  }
 0xb01   : > { %v3046_v29 = vunpack.c.l.bf16 %v5239_v12 }
 0xb02   : > { %4778 = vmatmul.mubr.msk.bf16.gmra.mrb[148].mxu1 %vm1277_vm2, %v2924_v37 }
 0xb03   : > { %4781 = vmatprep.mubr.msk.bf16.mxu1 %vm5441_vm0, %v7452_v32 }
 0xb05   : > { %v2907_v24 = vpop.f32.mrb[152].mxu0 }
 0xb06   : > { %v4761_v27 = vpop.f32.mrb[153].mxu0 }
 0xb07   : > { %v2910_v1 = vpop.f32.mrb[154].mxu0  ;;  %v3047_v27 = vunpack.c.h.bf16 %v5239_v12 }
 0xb08   : > { %v2925_v38 = vpack.c.bf16 %v2910_v1, %v2907_v24  ;;  %v4762_v25 = vpop.f32.mrb[155].mxu0 }
 0xb0a   : > { %4782 = vmatmul.mubr.msk.bf16.gmra.mrb[152].mxu1 %vm1277_vm2, %v2925_v38 }
 0xb0b   : > { %4785 = vmatprep.mubr.msk.bf16.mxu1 %vm5441_vm0, %v7452_v32 }
 0xb0d   : > { %v2915_v44 = vpop.f32.mrb[156].mxu0 }
 0xb0e   : > { %v4765_v9 = vpop.f32.mrb[157].mxu0 }
 0xb0f   : > { %v2918_v63 = vpop.f32.mrb[158].mxu0 }
 0xb10   : > { %v2926_v56 = vpack.c.bf16 %v2918_v63, %v2915_v44  ;;  %v4766_v2 = vpop.f32.mrb[159].mxu0 }
 0xb12   : > { %4786 = vmatmul.mubr.msk.bf16.gmra.mrb[156].mxu1 %vm1277_vm2, %v2926_v56  ;;  %v5240_v56 = vld [vmem:[%s5694_s14 + $0x18] sm:$0xff]  }
 0xb13   : > { %4817 = vmatprep.mubr.msk.bf16.mxu1 %vm5441_vm0, %v7452_v32  ;;  %v3048_v2 = vunpack.c.l.bf16 %v5240_v56  ;;  %v3049_v49 = vunpack.c.h.bf16 %v5240_v56 }
 0xbc5   : > { %v2979_v23 = vpop.f32.mrb[140].mxu1 }
 0xbc6   : > { %v3018_v62 = vadd.f32 %v2979_v23, %v6798_v53  ;;  %v4771_v30 = vpop.f32.mrb[141].mxu1 }
 0xbc7   : > { %v2982_v18 = vpop.f32.mrb[142].mxu1 }
 0xbc8   : > { %v3032_v20 = vadd.f32 %v6930_v39, %v3018_v62  ;;  %v3019_v28 = vadd.f32 %v2982_v18, %v6801_v35  ;;  %v4772_v19 = vpop.f32.mrb[143].mxu1 }
 0xbca   : > { %v3033_v22 = vadd.f32 %v6930_v39, %v3019_v28  ;;  %v6937_v16 = vadd.f32 %v3042_v55, %v3032_v20 }
 0xbcc   : > { %v3062_v43 = vsel %vm778_vm1, %v6937_v16, 0.0  ;;  %v6941_v57 = vadd.f32 %v3043_v5, %v3033_v22  ;;  %v5241_v22 = vld [vmem:[%s5694_s14 + $0x20] sm:$0xff]   ;;  %s4195_s14 = sshll.u32 %s5509_s28, 4  ;;  %s5447_s28 = smov [#allocation10]  }
 0xbcd   : > { %3063 = vadd.xlane.f32.xlu0 %v3062_v43  ;;  %v2987_v53 = vpop.f32.mrb[144].mxu1  ;;  %s7370_s3 = scalar_lea.hbm %s7421_s7, %s4195_s14  ;;  %s5360_s23 = sshll.u32 %s5447_s28, 4  ;;  %s5361_s23 = int_to_ptr.vmem [resolvable:$false] %s5360_s23 }
 0xbce   : > { %v3020_v36 = vadd.f32 %v2987_v53, %v6804_v41  ;;  %v4775_v61 = vpop.f32.mrb[145].mxu1  ;;  %v3065_v17 = vsel %vm778_vm1, %v6941_v57, 0.0  ;;  %s5362_s10 = scalar_lea.vmem %s5361_s23, 32  ;;  %p5363_p1 = scmp.lt.s32.totalorder %s7372_s15, %s5361_s23 }
 0xbcf   : > { %v2990_v7 = vpop.f32.mrb[146].mxu1  ;;  %p5364_p2 = scmp.lt.s32.totalorder %s5362_s10, %s5356_s18 }
 0xbd0   : > { %v3034_v35 = vadd.f32 %v6930_v39, %v3020_v36  ;;  %v3021_v6 = vadd.f32 %v2990_v7, %v6809_v4  ;;  %v4776_v14 = vpop.f32.mrb[147].mxu1 }
 0xbd1   : > { %3066 = vadd.xlane.f32.xlu0 %v3065_v17  ;;  %v5009_v17 = vld [vmem:[#allocation7 + $0x50] sm:$0xff]   ;;  %p5365_p4 = por %p5364_p2, %p5363_p1 }
 0xbd2   : > { %v3035_v48 = vadd.f32 %v6930_v39, %v3021_v6  ;;  %v6950_v58 = vadd.f32 %v3044_v59, %v3034_v35  ;;  %v3051_v59 = vunpack.c.h.bf16 %v5241_v22  ;;  %4790 = vmatpush3.bf16.msra.mxu0 %v5009_v17 }
 0xbd3   : > { %4791 = vmatprep.subr.bf16.mxu0 %v7452_v32  ;;  %p5366_p9 = pnand %p5365_p4, %p5359_p12 }
 0xbd4   : > { %v3068_v41 = vsel %vm778_vm1, %v6950_v58, 0.0  ;;  %v6954_v54 = vadd.f32 %v3045_v21, %v3035_v48 }
 0xbd5   : > { %3069 = vadd.xlane.f32.xlu1 %v3068_v41  ;;  %v2995_v0 = vpop.f32.mrb[148].mxu1 }
 0xbd6   : > { %v3022_v3 = vadd.f32 %v2995_v0, %v6835_v40  ;;  %v4779_v4 = vpop.f32.mrb[149].mxu1  ;;  %v3071_v13 = vsel %vm778_vm1, %v6954_v54, 0.0 }
 0xbd7   : > { %3072 = vadd.xlane.f32.xlu0 %v3071_v13  ;;  %v2998_v47 = vpop.f32.mrb[150].mxu1 }
 0xbd8   : > { %v3036_v37 = vadd.f32 %v6930_v39, %v3022_v3  ;;  %v3023_v45 = vadd.f32 %v2998_v47, %v6838_v51  ;;  %v4780_v24 = vpop.f32.mrb[151].mxu1 }
 0xbda   : > { %v3037_v1 = vadd.f32 %v6930_v39, %v3023_v45  ;;  %v6963_v38 = vadd.f32 %v3046_v29, %v3036_v37 }
 0xbdc   : > { %v3074_v40 = vsel %vm778_vm1, %v6963_v38, 0.0  ;;  %v6967_v25 = vadd.f32 %v3047_v27, %v3037_v1 }
 0xbdd   : > { %3075 = vadd.xlane.f32.xlu0 %v3074_v40  ;;  %v3003_v44 = vpop.f32.mrb[152].mxu1 }
 0xbde   : > { %v3024_v9 = vadd.f32 %v3003_v44, %v6842_v34  ;;  %v4783_v63 = vpop.f32.mrb[153].mxu1  ;;  %v3077_v30 = vsel %vm778_vm1, %v6967_v25, 0.0 }
 0xbdf   : > { %v3006_v51 = vpop.f32.mrb[154].mxu1 }
 0xbe0   : > { %v3038_v11 = vadd.f32 %v6930_v39, %v3024_v9  ;;  %v3025_v23 = vadd.f32 %v3006_v51, %v6847_v31  ;;  %v4784_v62 = vpop.f32.mrb[155].mxu1  ;;  %v3050_v31 = vunpack.c.l.bf16 %v5241_v22 }
 0xbe1   : > { %3078 = vadd.xlane.f32.xlu0 %v3077_v30 }
 0xbe2   : > { %v3039_v55 = vadd.f32 %v6930_v39, %v3025_v23  ;;  %v3058_v18 = vadd.f32 %v3048_v2, %v3038_v11 }
 0xbe4   : > { %v3080_v34 = vsel %vm778_vm1, %v3058_v18, 0.0  ;;  %v6977_v20 = vadd.f32 %v3049_v49, %v3039_v55 }
 0xbe5   : > { %3081 = vadd.xlane.f32.xlu0 %v3080_v34  ;;  %v3011_v28 = vpop.f32.mrb[156].mxu1 }
 0xbe6   : > { %v3026_v19 = vadd.f32 %v3011_v28, %v6851_v10  ;;  %v4787_v5 = vpop.f32.mrb[157].mxu1  ;;  %v3083_v26 = vsel %vm778_vm1, %v6977_v20, 0.0 }
 0xbe7   : > { %v3014_v43 = vpop.f32.mrb[158].mxu1 }
 0xbe8   : > { %v3040_v53 = vadd.f32 %v6930_v39, %v3026_v19  ;;  %v3027_v36 = vadd.f32 %v3014_v43, %v6855_v50  ;;  %v4788_v61 = vpop.f32.mrb[159].mxu1 }
 0xbe9   : > { %3084 = vadd.xlane.f32.xlu0 %v3083_v26 }
 0xbea   : > { %v3041_v7 = vadd.f32 %v6930_v39, %v3027_v36  ;;  %v3060_v35 = vadd.f32 %v3050_v31, %v3040_v53 }
 0xbec   : > { %v3086_v6 = vsel %vm778_vm1, %v3060_v35, 0.0  ;;  %v3061_v10 = vadd.f32 %v3051_v59, %v3041_v7  ;;  %v5010_v7 = vld [vmem:[#allocation7 + $0x58] sm:$0xff]  }
 0xbed   : > { %3087 = vadd.xlane.f32.xlu0 %v3086_v6  ;;  %4792 = vmatpush3.bf16.msra.mxu0 %v5010_v7  ;;  %v5012_v6 = vld [vmem:[#allocation7 + $0x68] sm:$0xff]  }
 0xbee   : > { %v3089_v14 = vsel %vm778_vm1, %v3061_v10, 0.0  ;;  %4837 = vmatprep.subr.bf16.mxu0 %v7452_v32 }
 0xbf1   : > { %3090 = vadd.xlane.f32.xlu0 %v3089_v14 }
 0xc5a   : > { %v3064_v50 = vpop.xlane.xlu0 %3063 }
 0xc5b   : > { %v3093_v21 = vmul.f32 0.03125, %v3064_v50 }
 0xc5d   : > { %v6990_v48 = vsub.f32 %v6937_v16, %v3093_v21 }
 0xc5e   : > { %v3067_v41 = vpop.xlane.xlu0 %3066 }
 0xc5f   : > { %v3094_v0 = vmul.f32 0.03125, %v3067_v41  ;;  %v3113_v39 = vmul.f32 %v6990_v48, %v6990_v48 }
 0xc61   : > { %v6995_v3 = vsub.f32 %v6941_v57, %v3094_v0  ;;  %v3123_v4 = vsel %vm778_vm1, %v3113_v39, 0.0 }
 0xc62   : > { %v3070_v13 = vpop.xlane.xlu1 %3069  ;;  %3124 = vadd.xlane.f32.xlu0 %v3123_v4 }
 0xc63   : > { %v3095_v12 = vmul.f32 0.03125, %v3070_v13  ;;  %v3114_v29 = vmul.f32 %v6995_v3, %v6995_v3 }
 0xc64   : > { %v3073_v47 = vpop.xlane.xlu0 %3072 }
 0xc65   : > { %v7001_v16 = vsub.f32 %v6950_v58, %v3095_v12  ;;  %v3096_v37 = vmul.f32 0.03125, %v3073_v47  ;;  %v3126_v45 = vsel %vm778_vm1, %v3114_v29, 0.0  ;;  %v3195_v29 = vsub.s32 2, %v5861_v52 }
 0xc66   : > { %3127 = vadd.xlane.f32.xlu0 %v3126_v45 }
 0xc67   : > { %v7005_v24 = vsub.f32 %v6954_v54, %v3096_v37  ;;  %v3115_v57 = vmul.f32 %v7001_v16, %v7001_v16  ;;  %v7051_v45 = vrot.slane %v6927_v60, %v3195_v29 }
 0xc69   : > { %v3129_v27 = vsel %vm778_vm1, %v3115_v57, 0.0  ;;  %v3116_v1 = vmul.f32 %v7005_v24, %v7005_v24  ;;  %v3209_v57 = vsub.s32 3, %v5861_v52 }
 0xc6a   : > { %3130 = vadd.xlane.f32.xlu1 %v3129_v27  ;;  %v3076_v40 = vpop.xlane.xlu0 %3075 }
 0xc6b   : > { %v3097_v44 = vmul.f32 0.03125, %v3076_v40  ;;  %v3132_v58 = vsel %vm778_vm1, %v3116_v1, 0.0 }
 0xc6c   : > { %3133 = vadd.xlane.f32.xlu0 %v3132_v58 }
 0xc6d   : > { %v7014_v9 = vsub.f32 %v6963_v38, %v3097_v44 }
 0xc6e   : > { %v3079_v63 = vpop.xlane.xlu0 %3078 }
 0xc6f   : > { %v3098_v54 = vmul.f32 0.03125, %v3079_v63  ;;  %v3117_v56 = vmul.f32 %v7014_v9, %v7014_v9  ;;  %v7056_v63 = vrot.slane %v6927_v60, %v3209_v57 }
 0xc71   : > { %v7019_v2 = vsub.f32 %v6967_v25, %v3098_v54  ;;  %v3135_v51 = vsel %vm778_vm1, %v3117_v56, 0.0 }
 0xc72   : > { %3136 = vadd.xlane.f32.xlu1 %v3135_v51  ;;  %v3082_v11 = vpop.xlane.xlu0 %3081 }
 0xc73   : > { %v3099_v23 = vmul.f32 0.03125, %v3082_v11  ;;  %v3118_v62 = vmul.f32 %v7019_v2, %v7019_v2 }
 0xc75   : > { %v7024_v30 = vsub.f32 %v3058_v18, %v3099_v23  ;;  %v3138_v38 = vsel %vm778_vm1, %v3118_v62, 0.0 }
 0xc76   : > { %v3085_v49 = vpop.xlane.xlu0 %3084  ;;  %3139 = vadd.xlane.f32.xlu0 %v3138_v38 }
 0xc77   : > { %v3100_v55 = vmul.f32 0.03125, %v3085_v49  ;;  %v3119_v34 = vmul.f32 %v7024_v30, %v7024_v30 }
 0xc79   : > { %v7030_v25 = vsub.f32 %v6977_v20, %v3100_v55  ;;  %v3141_v28 = vsel %vm778_vm1, %v3119_v34, 0.0 }
 0xc7a   : > { %3142 = vadd.xlane.f32.xlu1 %v3141_v28  ;;  %v3088_v19 = vpop.xlane.xlu0 %3087 }
 0xc7b   : > { %v3101_v5 = vmul.f32 0.03125, %v3088_v19  ;;  %v3120_v18 = vmul.f32 %v7030_v25, %v7030_v25 }
 0xc7d   : > { %v7035_v22 = vsub.f32 %v3060_v35, %v3101_v5  ;;  %v3144_v31 = vsel %vm778_vm1, %v3120_v18, 0.0  ;;  %v5011_v35 = vld [vmem:[#allocation7 + $0x60] sm:$0xff]  }
 0xc7e   : > { %3145 = vadd.xlane.f32.xlu0 %v3144_v31  ;;  %v3091_v43 = vpop.xlane.xlu0 %3090  ;;  %4814 = vmatpush3.bf16.msra.mxu1 %v5011_v35 }
 0xc7f   : > { %v3102_v53 = vmul.f32 0.03125, %v3091_v43  ;;  %v3121_v36 = vmul.f32 %v7035_v22, %v7035_v22  ;;  %4815 = vmatprep.subr.bf16.mxu1 %v7452_v32 }
 0xc81   : > { %v7040_v20 = vsub.f32 %v3061_v10, %v3102_v53  ;;  %v3147_v61 = vsel %vm778_vm1, %v3121_v36, 0.0 }
 0xc82   : > { %3148 = vadd.xlane.f32.xlu1 %v3147_v61  ;;  %4816 = vmatpush3.bf16.msra.mxu1 %v5012_v6 }
 0xc83   : > { %v3122_v26 = vmul.f32 %v7040_v20, %v7040_v20  ;;  %4861 = vmatprep.subr.bf16.mxu1 %v7452_v32 }
 0xc85   : > { %v3150_v59 = vsel %vm778_vm1, %v3122_v26, 0.0 }
 0xc86   : > { %3151 = vadd.xlane.f32.xlu0 %v3150_v59 }
 0xcef   : > { %v3125_v10 = vpop.xlane.xlu0 %3124 }
 0xcf0   : > { %v3153_v14 = vmul.f32 0.03125, %v3125_v10 }
 0xcf2   : > { %v3163_v17 = vadd.f32 1e-05, %v3153_v14 }
 0xcf3   : > { %v3128_v50 = vpop.xlane.xlu0 %3127 }
 0xcf4   : > { %5182 = vrsqrt.f32 %v3163_v17  ;;  %v3154_v21 = vmul.f32 0.03125, %v3128_v50 }
 0xcf6   : > { %v3164_v41 = vadd.f32 1e-05, %v3154_v21 }
 0xcf7   : > { %v3131_v0 = vpop.xlane.xlu1 %3130 }
 0xcf8   : > { %5184 = vrsqrt.f32 %v3164_v41  ;;  %v3155_v39 = vmul.f32 0.03125, %v3131_v0 }
 0xcf9   : > { %v3134_v4 = vpop.xlane.xlu0 %3133 }
 0xcfa   : > { %v3165_v13 = vadd.f32 1e-05, %v3155_v39  ;;  %v3156_v12 = vmul.f32 0.03125, %v3134_v4 }
 0xcfc   : > { %5186 = vrsqrt.f32 %v3165_v13  ;;  %v3166_v47 = vadd.f32 1e-05, %v3156_v12 }
 0xcfe   : > { %v5183_v37 = vpop.eup %5182  ;;  %5188 = vrsqrt.f32 %v3166_v47 }
 0xcff   : > { %v3183_v27 = vmul.f32 %v5183_v37, %v6990_v48  ;;  %v3137_v1 = vpop.xlane.xlu1 %3136 }
 0xd00   : > { %v3157_v40 = vmul.f32 0.03125, %v3137_v1 }
 0xd01   : > { %v3197_v54 = vmul.f32 %v7051_v45, %v3183_v27 }
 0xd02   : > { %v5185_v44 = vpop.eup %5184  ;;  %v3167_v58 = vadd.f32 1e-05, %v3157_v40 }
 0xd03   : > { %v3184_v56 = vmul.f32 %v5185_v44, %v6995_v3  ;;  %v3140_v51 = vpop.xlane.xlu0 %3139  ;;  %v7062_v48 = vadd.f32 %v7056_v63, %v3197_v54 }
 0xd04   : > { %5190 = vrsqrt.f32 %v3167_v58  ;;  %v3158_v11 = vmul.f32 0.03125, %v3140_v51 }
 0xd05   : > { %v3198_v23 = vmul.f32 %v7051_v45, %v3184_v56 }
 0xd06   : > { %v5187_v62 = vpop.eup %5186  ;;  %v3168_v38 = vadd.f32 1e-05, %v3158_v11 }
 0xd07   : > { %v7065_v49 = vadd.f32 %v7056_v63, %v3198_v23  ;;  %v3185_v55 = vmul.f32 %v5187_v62, %v7001_v16  ;;  %v3143_v34 = vpop.xlane.xlu1 %3142 }
 0xd08   : > { %v5189_v28 = vpop.eup %5188  ;;  %5192 = vrsqrt.f32 %v3168_v38  ;;  %v3159_v19 = vmul.f32 0.03125, %v3143_v34 }
 0xd09   : > { %v3186_v3 = vmul.f32 %v5189_v28, %v7005_v24  ;;  %v3221_v5 = vpack.c.bf16 %v7065_v49, %v7062_v48  ;;  %v3199_v43 = vmul.f32 %v7051_v45, %v3185_v55 }
 0xd0a   : > { %v3169_v18 = vadd.f32 1e-05, %v3159_v19 }
 0xd0b   : > { %4794 = vmatmul.mubr.msk.bf16.vlgmr.msra.gmra.mrb[160].mxu0 %vm778_vm1, %v3221_v5  ;;  %v3146_v31 = vpop.xlane.xlu0 %3145  ;;  %v3200_v53 = vmul.f32 %v7051_v45, %v3186_v3  ;;  %v7081_v7 = vadd.f32 %v7056_v63, %v3199_v43 }
 0xd0c   : > { %5194 = vrsqrt.f32 %v3169_v18  ;;  %v3160_v36 = vmul.f32 0.03125, %v3146_v31  ;;  %4797 = vmatprep.mubr.msk.bf16.mxu0 %vm5441_vm0, %v7452_v32 }
 0xd0d   : > { %v7077_v16 = vadd.f32 %v7056_v63, %v3200_v53 }
 0xd0e   : > { %v5191_v24 = vpop.eup %5190  ;;  %v3170_v61 = vadd.f32 1e-05, %v3160_v36 }
 0xd0f   : > { %v3187_v26 = vmul.f32 %v5191_v24, %v7014_v9  ;;  %v3149_v59 = vpop.xlane.xlu1 %3148  ;;  %v3222_v6 = vpack.c.bf16 %v7077_v16, %v7081_v7 }
 0xd10   : > { %5196 = vrsqrt.f32 %v3170_v61  ;;  %v3161_v35 = vmul.f32 0.03125, %v3149_v59 }
 0xd11   : > { %v3201_v21 = vmul.f32 %v7051_v45, %v3187_v26 }
 0xd12   : > { %v5193_v10 = vpop.eup %5192  ;;  %v3171_v14 = vadd.f32 1e-05, %v3161_v35 }
 0xd13   : > { %v3188_v17 = vmul.f32 %v5193_v10, %v7019_v2  ;;  %4798 = vmatmul.mubr.msk.bf16.gmra.mrb[164].mxu0 %vm778_vm1, %v3222_v6  ;;  %v3152_v50 = vpop.xlane.xlu0 %3151  ;;  %v7093_v13 = vadd.f32 %v7056_v63, %v3201_v21 }
 0xd14   : > { %5198 = vrsqrt.f32 %v3171_v14  ;;  %v3162_v9 = vmul.f32 0.03125, %v3152_v50  ;;  %4801 = vmatprep.mubr.msk.bf16.mxu0 %vm5441_vm0, %v7452_v32 }
 0xd15   : > { %v3202_v41 = vmul.f32 %v7051_v45, %v3188_v17 }
 0xd16   : > { %v5195_v0 = vpop.eup %5194  ;;  %v3172_v39 = vadd.f32 1e-05, %v3162_v9 }
 0xd17   : > { %v3189_v4 = vmul.f32 %v5195_v0, %v7024_v30  ;;  %v7096_v2 = vadd.f32 %v7056_v63, %v3202_v41 }
 0xd18   : > { %5200 = vrsqrt.f32 %v3172_v39 }
 0xd19   : > { %v3223_v12 = vpack.c.bf16 %v7096_v2, %v7093_v13  ;;  %v3203_v37 = vmul.f32 %v7051_v45, %v3189_v4 }
 0xd1a   : > { %v5197_v29 = vpop.eup %5196 }
 0xd1b   : > { %v3190_v47 = vmul.f32 %v5197_v29, %v7030_v25  ;;  %4802 = vmatmul.mubr.msk.bf16.gmra.mrb[168].mxu0 %vm778_vm1, %v3223_v12  ;;  %v7108_v1 = vadd.f32 %v7056_v63, %v3203_v37 }
 0xd1c   : > { %4805 = vmatprep.mubr.msk.bf16.mxu0 %vm5441_vm0, %v7452_v32 }
 0xd1d   : > { %v3204_v30 = vmul.f32 %v7051_v45, %v3190_v47 }
 0xd1e   : > { %v5199_v57 = vpop.eup %5198 }
 0xd1f   : > { %v3191_v27 = vmul.f32 %v5199_v57, %v7035_v22  ;;  %v7111_v40 = vadd.f32 %v7056_v63, %v3204_v30 }
 0xd21   : > { %v3224_v25 = vpack.c.bf16 %v7111_v40, %v7108_v1  ;;  %v3205_v54 = vmul.f32 %v7051_v45, %v3191_v27 }
 0xd22   : > { %v5201_v44 = vpop.eup %5200 }
 0xd23   : > { %v3192_v58 = vmul.f32 %v5201_v44, %v7040_v20  ;;  %4806 = vmatmul.mubr.msk.bf16.gmra.mrb[172].mxu0 %vm778_vm1, %v3224_v25  ;;  %v7122_v56 = vadd.f32 %v7056_v63, %v3205_v54  ;;  %v3228_v20 = vsub.s32 4, %v5861_v52 }
 0xd24   : > { %4809 = vmatprep.mubr.msk.bf16.mxu0 %vm5441_vm0, %v7452_v32 }
 0xd25   : > { %v3206_v22 = vmul.f32 %v7051_v45, %v3192_v58  ;;  %v3229_v23 = vrot.slane %v6927_v60, %v3228_v20 }
 0xd27   : > { %v7125_v51 = vadd.f32 %v7056_v63, %v3206_v22 }
 0xd29   : > { %v3225_v11 = vpack.c.bf16 %v7125_v51, %v7122_v56 }
 0xd2b   : > { %4810 = vmatmul.mubr.msk.bf16.gmra.mrb[176].mxu0 %vm778_vm1, %v3225_v11 }
 0xd2c   : > { %4841 = vmatprep.mubr.msk.bf16.mxu0 %vm5441_vm0, %v7452_v32 }
 0xdde   : > { %v3291_v62 = vpop.f32.mrb[160].mxu0 }
 0xddf   : > { %v3292_v45 = vadd.f32 %v3291_v62, %v3229_v23  ;;  %v4795_v38 = vpop.f32.mrb[161].mxu0  ;;  %v3347_v62 = vsub.s32 5, %v5861_v52 }
 0xde0   : > { %v3294_v55 = vpop.f32.mrb[162].mxu0 }
 0xde1   : > { %v3295_v34 = vadd.f32 %v3294_v55, %v3229_v23  ;;  %v4796_v28 = vpop.f32.mrb[163].mxu0  ;;  %v3330_v63 = vmax.f32 %v3292_v45, 0.0  ;;  %v3348_v45 = vrot.slane %v6927_v60, %v3347_v62 }
 0xde3   : > { %v3331_v19 = vmax.f32 %v3295_v34, 0.0 }
 0xde5   : > { %v3340_v3 = vpack.c.bf16 %v3331_v19, %v3330_v63 }
 0xde6   : > { %v3299_v5 = vpop.f32.mrb[164].mxu0 }
 0xde7   : > { %v3300_v18 = vadd.f32 %v3299_v5, %v3229_v23  ;;  %v4799_v31 = vpop.f32.mrb[165].mxu0  ;;  %4818 = vmatmul.mubr.msk.bf16.vlgmr.msra.gmra.mrb[160].mxu1 %vm778_vm1, %v3340_v3 }
 0xde8   : > { %v3302_v43 = vpop.f32.mrb[166].mxu0  ;;  %4821 = vmatprep.mubr.msk.bf16.mxu1 %vm5441_vm0, %v7452_v32 }
 0xde9   : > { %v3303_v53 = vadd.f32 %v3302_v43, %v3229_v23  ;;  %v4800_v36 = vpop.f32.mrb[167].mxu0  ;;  %v3332_v24 = vmax.f32 %v3300_v18, 0.0 }
 0xdeb   : > { %v3333_v61 = vmax.f32 %v3303_v53, 0.0 }
 0xded   : > { %v3341_v26 = vpack.c.bf16 %v3333_v61, %v3332_v24 }
 0xdee   : > { %v3307_v59 = vpop.f32.mrb[168].mxu0 }
 0xdef   : > { %v3308_v35 = vadd.f32 %v3307_v59, %v3229_v23  ;;  %v4803_v6 = vpop.f32.mrb[169].mxu0  ;;  %4822 = vmatmul.mubr.msk.bf16.gmra.mrb[164].mxu1 %vm778_vm1, %v3341_v26 }
 0xdf0   : > { %v3310_v10 = vpop.f32.mrb[170].mxu0  ;;  %4825 = vmatprep.mubr.msk.bf16.mxu1 %vm5441_vm0, %v7452_v32 }
 0xdf1   : > { %v3311_v14 = vadd.f32 %v3310_v10, %v3229_v23  ;;  %v4804_v17 = vpop.f32.mrb[171].mxu0  ;;  %v3334_v50 = vmax.f32 %v3308_v35, 0.0 }
 0xdf3   : > { %v3335_v21 = vmax.f32 %v3311_v14, 0.0 }
 0xdf5   : > { %v3342_v9 = vpack.c.bf16 %v3335_v21, %v3334_v50 }
 0xdf6   : > { %v3315_v41 = vpop.f32.mrb[172].mxu0 }
 0xdf7   : > { %v3316_v0 = vadd.f32 %v3315_v41, %v3229_v23  ;;  %v4807_v39 = vpop.f32.mrb[173].mxu0  ;;  %4826 = vmatmul.mubr.msk.bf16.gmra.mrb[168].mxu1 %vm778_vm1, %v3342_v9 }
 0xdf8   : > { %v3318_v4 = vpop.f32.mrb[174].mxu0  ;;  %4829 = vmatprep.mubr.msk.bf16.mxu1 %vm5441_vm0, %v7452_v32 }
 0xdf9   : > { %v3319_v12 = vadd.f32 %v3318_v4, %v3229_v23  ;;  %v4808_v29 = vpop.f32.mrb[175].mxu0  ;;  %v3336_v47 = vmax.f32 %v3316_v0, 0.0 }
 0xdfb   : > { %v3337_v37 = vmax.f32 %v3319_v12, 0.0 }
 0xdfd   : > { %v3343_v30 = vpack.c.bf16 %v3337_v37, %v3336_v47 }
 0xdfe   : > { %v3323_v57 = vpop.f32.mrb[176].mxu0 }
 0xdff   : > { %v3324_v27 = vadd.f32 %v3323_v57, %v3229_v23  ;;  %v4811_v25 = vpop.f32.mrb[177].mxu0  ;;  %4830 = vmatmul.mubr.msk.bf16.gmra.mrb[172].mxu1 %vm778_vm1, %v3343_v30 }
 0xe00   : > { %v3326_v44 = vpop.f32.mrb[178].mxu0  ;;  %4833 = vmatprep.mubr.msk.bf16.mxu1 %vm5441_vm0, %v7452_v32 }
 0xe01   : > { %v3327_v58 = vadd.f32 %v3326_v44, %v3229_v23  ;;  %v4812_v54 = vpop.f32.mrb[179].mxu0  ;;  %v3338_v22 = vmax.f32 %v3324_v27, 0.0 }
 0xe03   : > { %v3339_v11 = vmax.f32 %v3327_v58, 0.0 }
 0xe05   : > { %v3344_v20 = vpack.c.bf16 %v3339_v11, %v3338_v22  ;;  %v5013_v11 = vld [vmem:[#allocation7 + $0x80] sm:$0xff]  }
 0xe06   : > { %4838 = vmatpush3.bf16.msra.mxu0 %v5013_v11 }
 0xe07   : > { %4834 = vmatmul.mubr.msk.bf16.gmra.mrb[176].mxu1 %vm778_vm1, %v3344_v20  ;;  %v5014_v20 = vld [vmem:[#allocation7 + $0x70] sm:$0xff]   ;;  %4839 = vmatprep.subr.bf16.mxu0 %v7452_v32 }
 0xe08   : > { %4865 = vmatprep.mubr.msk.bf16.mxu1 %vm5441_vm0, %v7452_v32  ;;  %4862 = vmatpush3.bf16.msra.mxu1 %v5014_v20 }
 0xe09   : > { %4863 = vmatprep.subr.bf16.mxu1 %v7452_v32 }
 0xeba   : > { %v3410_v38 = vpop.f32.mrb[160].mxu1 }
 0xebb   : > { %v3411_v55 = vadd.f32 %v3410_v38, %v3348_v45  ;;  %v4819_v34 = vpop.f32.mrb[161].mxu1 }
 0xebc   : > { %v3413_v28 = vpop.f32.mrb[162].mxu1 }
 0xebd   : > { %v7152_v63 = vadd.f32 %v3411_v55, %v7062_v48  ;;  %v3414_v23 = vadd.f32 %v3413_v28, %v3348_v45  ;;  %v4820_v19 = vpop.f32.mrb[163].mxu1 }
 0xebf   : > { %v7155_v3 = vadd.f32 %v3414_v23, %v7065_v49  ;;  %v3459_v5 = vsel %vm778_vm1, %v7152_v63, 0.0 }
 0xec0   : > { %3460 = vadd.xlane.f32.xlu1 %v3459_v5 }
 0xec1   : > { %v3462_v18 = vsel %vm778_vm1, %v7155_v3, 0.0 }
 0xec2   : > { %3463 = vadd.xlane.f32.xlu0 %v3462_v18  ;;  %v3418_v31 = vpop.f32.mrb[164].mxu1 }
 0xec3   : > { %v3419_v43 = vadd.f32 %v3418_v31, %v3348_v45  ;;  %v4823_v53 = vpop.f32.mrb[165].mxu1 }
 0xec4   : > { %v3421_v36 = vpop.f32.mrb[166].mxu1 }
 0xec5   : > { %v7162_v48 = vadd.f32 %v3419_v43, %v7081_v7  ;;  %v3422_v24 = vadd.f32 %v3421_v36, %v3348_v45  ;;  %v4824_v61 = vpop.f32.mrb[167].mxu1 }
 0xec7   : > { %v7165_v49 = vadd.f32 %v3422_v24, %v7077_v16  ;;  %v3465_v26 = vsel %vm778_vm1, %v7162_v48, 0.0 }
 0xec8   : > { %3466 = vadd.xlane.f32.xlu1 %v3465_v26 }
 0xec9   : > { %v3468_v59 = vsel %vm778_vm1, %v7165_v49, 0.0 }
 0xeca   : > { %3469 = vadd.xlane.f32.xlu0 %v3468_v59  ;;  %v3426_v35 = vpop.f32.mrb[168].mxu1 }
 0xecb   : > { %v3427_v6 = vadd.f32 %v3426_v35, %v3348_v45  ;;  %v4827_v10 = vpop.f32.mrb[169].mxu1 }
 0xecc   : > { %v3429_v14 = vpop.f32.mrb[170].mxu1 }
 0xecd   : > { %v7172_v7 = vadd.f32 %v3427_v6, %v7093_v13  ;;  %v3430_v17 = vadd.f32 %v3429_v14, %v3348_v45  ;;  %v4828_v50 = vpop.f32.mrb[171].mxu1 }
 0xecf   : > { %v7175_v16 = vadd.f32 %v3430_v17, %v7096_v2  ;;  %v3471_v21 = vsel %vm778_vm1, %v7172_v7, 0.0 }
 0xed0   : > { %3472 = vadd.xlane.f32.xlu1 %v3471_v21 }
 0xed1   : > { %v3474_v9 = vsel %vm778_vm1, %v7175_v16, 0.0 }
 0xed2   : > { %3475 = vadd.xlane.f32.xlu0 %v3474_v9  ;;  %v3434_v41 = vpop.f32.mrb[172].mxu1 }
 0xed3   : > { %v3435_v0 = vadd.f32 %v3434_v41, %v3348_v45  ;;  %v4831_v39 = vpop.f32.mrb[173].mxu1 }
 0xed4   : > { %v3437_v4 = vpop.f32.mrb[174].mxu1 }
 0xed5   : > { %v7182_v13 = vadd.f32 %v3435_v0, %v7108_v1  ;;  %v3438_v12 = vadd.f32 %v3437_v4, %v3348_v45  ;;  %v4832_v29 = vpop.f32.mrb[175].mxu1 }
 0xed7   : > { %v7185_v2 = vadd.f32 %v3438_v12, %v7111_v40  ;;  %v3477_v47 = vsel %vm778_vm1, %v7182_v13, 0.0 }
 0xed8   : > { %3478 = vadd.xlane.f32.xlu1 %v3477_v47 }
 0xed9   : > { %v3480_v37 = vsel %vm778_vm1, %v7185_v2, 0.0 }
 0xeda   : > { %3481 = vadd.xlane.f32.xlu0 %v3480_v37  ;;  %v3442_v30 = vpop.f32.mrb[176].mxu1 }
 0xedb   : > { %v3443_v57 = vadd.f32 %v3442_v30, %v3348_v45  ;;  %v4835_v27 = vpop.f32.mrb[177].mxu1 }
 0xedc   : > { %v3445_v25 = vpop.f32.mrb[178].mxu1 }
 0xedd   : > { %v7192_v1 = vadd.f32 %v3443_v57, %v7122_v56  ;;  %v3446_v44 = vadd.f32 %v3445_v25, %v3348_v45  ;;  %v4836_v58 = vpop.f32.mrb[179].mxu1 }
 0xedf   : > { %v7195_v40 = vadd.f32 %v3446_v44, %v7125_v51  ;;  %v3483_v54 = vsel %vm778_vm1, %v7192_v1, 0.0 }
 0xee0   : > { %3484 = vadd.xlane.f32.xlu1 %v3483_v54  ;;  %v5015_v54 = vld [vmem:[#allocation7 + $0x88] sm:$0xff]  }
 0xee1   : > { %v3486_v22 = vsel %vm778_vm1, %v7195_v40, 0.0  ;;  %4840 = vmatpush3.bf16.msra.mxu0 %v5015_v54 }
 0xee2   : > { %3487 = vadd.xlane.f32.xlu0 %v3486_v22  ;;  %4885 = vmatprep.subr.bf16.mxu0 %v7452_v32 }
 0xee4   : > { %4842 = vmatmul.mubr.msk.bf16.vlgmr.msra.gmra.mrb[180].mxu0 %vm778_vm1, %v5729_v8 }
 0xee5   : > { %4845 = vmatprep.mubr.msk.bf16.mxu0 %vm5441_vm0, %v7452_v32 }
 0xeec   : > { %4846 = vmatmul.mubr.msk.bf16.gmra.mrb[184].mxu0 %vm778_vm1, %v5761_v15 }
 0xeed   : > { %4849 = vmatprep.mubr.msk.bf16.mxu0 %vm5441_vm0, %v7452_v32 }
 0xef4   : > { %4850 = vmatmul.mubr.msk.bf16.gmra.mrb[188].mxu0 %vm778_vm1, %v5798_v33 }
 0xef5   : > { %4853 = vmatprep.mubr.msk.bf16.mxu0 %vm5441_vm0, %v7452_v32 }
 0xefc   : > { %4854 = vmatmul.mubr.msk.bf16.gmra.mrb[192].mxu0 %vm778_vm1, %v5832_v42  ;;  %v3591_v42 = vsub.s32 6, %v5861_v52 }
 0xefd   : > { %4857 = vmatprep.mubr.msk.bf16.mxu0 %vm5441_vm0, %v7452_v32 }
 0xf04   : > { %4858 = vmatmul.mubr.msk.bf16.gmra.mrb[196].mxu0 %vm778_vm1, %v5850_v46 }
 0xf05   : > { %4895 = vmatprep.mubr.msk.bf16.mxu0 %vm5441_vm0, %v7452_v32 }
 0xf4d   : > { %v3461_v56 = vpop.xlane.xlu1 %3460 }
 0xf4e   : > { %v3489_v62 = vmul.f32 0.03125, %v3461_v56 }
 0xf4f   : > { %v3464_v51 = vpop.xlane.xlu0 %3463 }
 0xf50   : > { %v7204_v45 = vsub.f32 %v7152_v63, %v3489_v62  ;;  %v3490_v38 = vmul.f32 0.03125, %v3464_v51 }
 0xf52   : > { %v7207_v55 = vsub.f32 %v7155_v3, %v3490_v38  ;;  %v3509_v34 = vmul.f32 %v7204_v45, %v7204_v45 }
 0xf54   : > { %v3519_v28 = vsel %vm778_vm1, %v3509_v34, 0.0  ;;  %v3510_v23 = vmul.f32 %v7207_v55, %v7207_v55 }
 0xf55   : > { %v3467_v19 = vpop.xlane.xlu1 %3466  ;;  %3520 = vadd.xlane.f32.xlu1 %v3519_v28  ;;  %v7289_v28 = vrot.slane %v6927_v60, %v3591_v42 }
 0xf56   : > { %v3491_v5 = vmul.f32 0.03125, %v3467_v19  ;;  %v3522_v18 = vsel %vm778_vm1, %v3510_v23, 0.0  ;;  %v3605_v23 = vsub.s32 7, %v5861_v52 }
 0xf57   : > { %v3470_v31 = vpop.xlane.xlu0 %3469  ;;  %3523 = vadd.xlane.f32.xlu0 %v3522_v18 }
 0xf58   : > { %v7216_v63 = vsub.f32 %v7162_v48, %v3491_v5  ;;  %v3492_v3 = vmul.f32 0.03125, %v3470_v31 }
 0xf5a   : > { %v7219_v43 = vsub.f32 %v7165_v49, %v3492_v3  ;;  %v3511_v53 = vmul.f32 %v7216_v63, %v7216_v63 }
 0xf5c   : > { %v3525_v36 = vsel %vm778_vm1, %v3511_v53, 0.0  ;;  %v3512_v24 = vmul.f32 %v7219_v43, %v7219_v43  ;;  %v7294_v53 = vrot.slane %v6927_v60, %v3605_v23 }
 0xf5d   : > { %v3473_v61 = vpop.xlane.xlu1 %3472  ;;  %3526 = vadd.xlane.f32.xlu1 %v3525_v36 }
 0xf5e   : > { %v3493_v26 = vmul.f32 0.03125, %v3473_v61  ;;  %v3528_v59 = vsel %vm778_vm1, %v3512_v24, 0.0 }
 0xf5f   : > { %v3476_v35 = vpop.xlane.xlu0 %3475  ;;  %3529 = vadd.xlane.f32.xlu0 %v3528_v59 }
 0xf60   : > { %v7228_v48 = vsub.f32 %v7172_v7, %v3493_v26  ;;  %v3494_v49 = vmul.f32 0.03125, %v3476_v35 }
 0xf62   : > { %v7231_v6 = vsub.f32 %v7175_v16, %v3494_v49  ;;  %v3513_v10 = vmul.f32 %v7228_v48, %v7228_v48 }
 0xf64   : > { %v3531_v14 = vsel %vm778_vm1, %v3513_v10, 0.0  ;;  %v3514_v17 = vmul.f32 %v7231_v6, %v7231_v6 }
 0xf65   : > { %v3479_v50 = vpop.xlane.xlu1 %3478  ;;  %3532 = vadd.xlane.f32.xlu1 %v3531_v14 }
 0xf66   : > { %v3495_v21 = vmul.f32 0.03125, %v3479_v50  ;;  %v3534_v9 = vsel %vm778_vm1, %v3514_v17, 0.0 }
 0xf67   : > { %v3482_v41 = vpop.xlane.xlu0 %3481  ;;  %3535 = vadd.xlane.f32.xlu0 %v3534_v9 }
 0xf68   : > { %v7240_v7 = vsub.f32 %v7182_v13, %v3495_v21  ;;  %v3496_v16 = vmul.f32 0.03125, %v3482_v41 }
 0xf6a   : > { %v7243_v0 = vsub.f32 %v7185_v2, %v3496_v16  ;;  %v3515_v39 = vmul.f32 %v7240_v7, %v7240_v7 }
 0xf6c   : > { %v3537_v4 = vsel %vm778_vm1, %v3515_v39, 0.0  ;;  %v3516_v12 = vmul.f32 %v7243_v0, %v7243_v0 }
 0xf6d   : > { %3538 = vadd.xlane.f32.xlu1 %v3537_v4  ;;  %v3485_v29 = vpop.xlane.xlu1 %3484 }
 0xf6e   : > { %v3497_v47 = vmul.f32 0.03125, %v3485_v29  ;;  %v3540_v37 = vsel %vm778_vm1, %v3516_v12, 0.0 }
 0xf6f   : > { %3541 = vadd.xlane.f32.xlu0 %v3540_v37  ;;  %v3488_v13 = vpop.xlane.xlu0 %3487 }
 0xf70   : > { %v7252_v30 = vsub.f32 %v7192_v1, %v3497_v47  ;;  %v3498_v2 = vmul.f32 0.03125, %v3488_v13  ;;  %v5016_v1 = vld [vmem:[#allocation7 + $0x78] sm:$0xff]  }
 0xf71   : > { %4864 = vmatpush3.bf16.msra.mxu1 %v5016_v1 }
 0xf72   : > { %v7255_v57 = vsub.f32 %v7195_v40, %v3498_v2  ;;  %v3517_v27 = vmul.f32 %v7252_v30, %v7252_v30  ;;  %v7268_v40 = vld [vmem:[#allocation8 + $0x8] sm:$0x7] }
 0xf74   : > { %v3543_v25 = vsel %vm778_vm1, %v3517_v27, 0.0  ;;  %v3518_v44 = vmul.f32 %v7255_v57, %v7255_v57 }
 0xf75   : > { %3544 = vadd.xlane.f32.xlu1 %v3543_v25 }
 0xf76   : > { %v3546_v58 = vsel %vm778_vm1, %v3518_v44, 0.0 }
 0xf77   : > { %3547 = vadd.xlane.f32.xlu0 %v3546_v58 }
 0xf86   : > { %3839 = vperm.xlu1 %4990, %v7268_v40  }
 0xfe2   : > { %v3521_v8 = vpop.xlane.xlu1 %3520 }
 0xfe3   : > { %v3549_v15 = vmul.f32 0.03125, %v3521_v8 }
 0xfe4   : > { %v3524_v22 = vpop.xlane.xlu0 %3523 }
 0xfe5   : > { %v3559_v11 = vadd.f32 1e-05, %v3549_v15  ;;  %v3550_v33 = vmul.f32 0.03125, %v3524_v22 }
 0xfe7   : > { %5202 = vrsqrt.f32 %v3559_v11  ;;  %v3560_v20 = vadd.f32 1e-05, %v3550_v33 }
 0xfe9   : > { %5204 = vrsqrt.f32 %v3560_v20 }
 0xfea   : > { %v3527_v56 = vpop.xlane.xlu1 %3526 }
 0xfeb   : > { %v3551_v62 = vmul.f32 0.03125, %v3527_v56 }
 0xfec   : > { %v3530_v51 = vpop.xlane.xlu0 %3529 }
 0xfed   : > { %v3561_v38 = vadd.f32 1e-05, %v3551_v62  ;;  %v3552_v34 = vmul.f32 0.03125, %v3530_v51 }
 0xfef   : > { %5206 = vrsqrt.f32 %v3561_v38  ;;  %v3562_v46 = vadd.f32 1e-05, %v3552_v34 }
 0xff1   : > { %v5203_v19 = vpop.eup %5202  ;;  %5208 = vrsqrt.f32 %v3562_v46 }
 0xff2   : > { %v3579_v5 = vmul.f32 %v5203_v19, %v7204_v45  ;;  %v3533_v18 = vpop.xlane.xlu1 %3532 }
 0xff3   : > { %v5205_v31 = vpop.eup %5204  ;;  %v3553_v3 = vmul.f32 0.03125, %v3533_v18 }
 0xff4   : > { %v3593_v36 = vmul.f32 %v7289_v28, %v3579_v5  ;;  %v3580_v24 = vmul.f32 %v5205_v31, %v7207_v55  ;;  %v3536_v61 = vpop.xlane.xlu0 %3535 }
 0xff5   : > { %v3563_v26 = vadd.f32 1e-05, %v3553_v3  ;;  %v3554_v59 = vmul.f32 0.03125, %v3536_v61 }
 0xff6   : > { %v3594_v35 = vmul.f32 %v7289_v28, %v3580_v24  ;;  %v3607_v10 = vadd.f32 %v7294_v53, %v3593_v36 }
 0xff7   : > { %5210 = vrsqrt.f32 %v3563_v26  ;;  %v3564_v49 = vadd.f32 1e-05, %v3554_v59 }
 0xff8   : > { %v3608_v45 = vadd.f32 %v7294_v53, %v3594_v35 }
 0xff9   : > { %v5207_v14 = vpop.eup %5206  ;;  %5212 = vrsqrt.f32 %v3564_v49 }
 0xffa   : > { %v3581_v60 = vmul.f32 %v5207_v14, %v7216_v63  ;;  %v3539_v17 = vpop.xlane.xlu1 %3538  ;;  %v3617_v50 = vpack.c.bf16 %v3608_v45, %v3607_v10 }
 0xffb   : > { %v5209_v21 = vpop.eup %5208  ;;  %v3555_v9 = vmul.f32 0.03125, %v3539_v17 }
 0xffc   : > { %v3582_v55 = vmul.f32 %v5209_v21, %v7219_v43  ;;  %4866 = vmatmul.mubr.msk.bf16.vlgmr.msra.gmra.mrb[180].mxu1 %vm778_vm1, %v3617_v50  ;;  %v3542_v41 = vpop.xlane.xlu0 %3541  ;;  %v3595_v16 = vmul.f32 %v7289_v28, %v3581_v60 }
 0xffd   : > { %v3565_v39 = vadd.f32 1e-05, %v3555_v9  ;;  %v3556_v4 = vmul.f32 0.03125, %v3542_v41  ;;  %4869 = vmatprep.mubr.msk.bf16.mxu1 %vm5441_vm0, %v7452_v32 }
 0xffe   : > { %v3596_v12 = vmul.f32 %v7289_v28, %v3582_v55  ;;  %v3609_v29 = vadd.f32 %v7294_v53, %v3595_v16  ;;  %v7453_v16 = vsub.s32 0, %v5861_v52 }
 0xfff   : > { %5214 = vrsqrt.f32 %v3565_v39  ;;  %v3566_v63 = vadd.f32 1e-05, %v3556_v4 }
0x1000   : > { %v3610_v47 = vadd.f32 %v7294_v53, %v3596_v12  ;;  %v7341_v39 = vrot.slane %v7268_v40, %v7453_v16 }
0x1001   : > { %v5211_v37 = vpop.eup %5210  ;;  %5216 = vrsqrt.f32 %v3566_v63 }
0x1002   : > { %v3583_v43 = vmul.f32 %v5211_v37, %v7228_v48  ;;  %v3545_v13 = vpop.xlane.xlu1 %3544  ;;  %v3618_v2 = vpack.c.bf16 %v3610_v47, %v3609_v29 }
0x1003   : > { %v5213_v27 = vpop.eup %5212  ;;  %v3557_v25 = vmul.f32 0.03125, %v3545_v13 }
0x1004   : > { %v3584_v44 = vmul.f32 %v5213_v27, %v7231_v6  ;;  %4870 = vmatmul.mubr.msk.bf16.gmra.mrb[184].mxu1 %vm778_vm1, %v3618_v2  ;;  %v3548_v58 = vpop.xlane.xlu0 %3547  ;;  %v3597_v54 = vmul.f32 %v7289_v28, %v3583_v43 }
0x1005   : > { %v3567_v1 = vadd.f32 1e-05, %v3557_v25  ;;  %v3558_v8 = vmul.f32 0.03125, %v3548_v58  ;;  %4873 = vmatprep.mubr.msk.bf16.mxu1 %vm5441_vm0, %v7452_v32 }
0x1006   : > { %v3598_v15 = vmul.f32 %v7289_v28, %v3584_v44  ;;  %v3611_v22 = vadd.f32 %v7294_v53, %v3597_v54 }
0x1007   : > { %5218 = vrsqrt.f32 %v3567_v1  ;;  %v3568_v48 = vadd.f32 1e-05, %v3558_v8 }
0x1008   : > { %v3612_v11 = vadd.f32 %v7294_v53, %v3598_v15 }
0x1009   : > { %v5215_v33 = vpop.eup %5214  ;;  %5220 = vrsqrt.f32 %v3568_v48 }
0x100a   : > { %v3585_v6 = vmul.f32 %v5215_v33, %v7240_v7  ;;  %v3619_v20 = vpack.c.bf16 %v3612_v11, %v3611_v22 }
0x100b   : > { %v5217_v56 = vpop.eup %5216 }
0x100c   : > { %v3586_v62 = vmul.f32 %v5217_v56, %v7243_v0  ;;  %4874 = vmatmul.mubr.msk.bf16.gmra.mrb[188].mxu1 %vm778_vm1, %v3619_v20  ;;  %v3599_v42 = vmul.f32 %v7289_v28, %v3585_v6 }
0x100d   : > { %4877 = vmatprep.mubr.msk.bf16.mxu1 %vm5441_vm0, %v7452_v32 }
0x100e   : > { %v3600_v51 = vmul.f32 %v7289_v28, %v3586_v62  ;;  %v3613_v38 = vadd.f32 %v7294_v53, %v3599_v42 }
0x1010   : > { %v3614_v34 = vadd.f32 %v7294_v53, %v3600_v51 }
0x1011   : > { %v5219_v46 = vpop.eup %5218 }
0x1012   : > { %v3587_v7 = vmul.f32 %v5219_v46, %v7252_v30  ;;  %v3620_v23 = vpack.c.bf16 %v3614_v34, %v3613_v38  ;;  %v3668_v30 = vpop.f32.mrb[180].mxu0 }
0x1013   : > { %v5221_v19 = vpop.eup %5220  ;;  %v4843_v24 = vpop.f32.mrb[181].mxu0 }
0x1014   : > { %v3588_v0 = vmul.f32 %v5221_v19, %v7255_v57  ;;  %4878 = vmatmul.mubr.msk.bf16.gmra.mrb[192].mxu1 %vm778_vm1, %v3620_v23  ;;  %v3601_v5 = vmul.f32 %v7289_v28, %v3587_v7  ;;  %v3671_v61 = vpop.f32.mrb[182].mxu0 }
0x1015   : > { %4881 = vmatprep.mubr.msk.bf16.mxu1 %vm5441_vm0, %v7452_v32  ;;  %v4844_v57 = vpop.f32.mrb[183].mxu0 }
0x1016   : > { %v3602_v18 = vmul.f32 %v7289_v28, %v3588_v0  ;;  %v3615_v31 = vadd.f32 %v7294_v53, %v3601_v5  ;;  %v3676_v26 = vpop.f32.mrb[184].mxu0 }
0x1017   : > { %v4847_v59 = vpop.f32.mrb[185].mxu0 }
0x1018   : > { %v3616_v3 = vadd.f32 %v7294_v53, %v3602_v18  ;;  %v3679_v35 = vpop.f32.mrb[186].mxu0 }
0x1019   : > { %v4848_v49 = vpop.f32.mrb[187].mxu0 }
0x101a   : > { %v3621_v36 = vpack.c.bf16 %v3616_v3, %v3615_v31  ;;  %v3684_v10 = vpop.f32.mrb[188].mxu0 }
0x101b   : > { %v4851_v45 = vpop.f32.mrb[189].mxu0 }
0x101c   : > { %4882 = vmatmul.mubr.msk.bf16.gmra.mrb[196].mxu1 %vm778_vm1, %v3621_v36  ;;  %v3687_v14 = vpop.f32.mrb[190].mxu0 }
0x101d   : > { %v4852_v60 = vpop.f32.mrb[191].mxu0 }
0x101e   : > { %v3692_v28 = vpop.f32.mrb[192].mxu0 }
0x101f   : > { %v4855_v17 = vpop.f32.mrb[193].mxu0 }
0x1020   : > { %v3695_v50 = vpop.f32.mrb[194].mxu0 }
0x1021   : > { %v4856_v21 = vpop.f32.mrb[195].mxu0 }
0x1022   : > { %v3700_v53 = vpop.f32.mrb[196].mxu0 }
0x1023   : > { %v4859_v9 = vpop.f32.mrb[197].mxu0 }
0x1024   : > { %v3703_v55 = vpop.f32.mrb[198].mxu0 }
0x1025   : > { %v4860_v41 = vpop.f32.mrb[199].mxu0 }
0x10cf   : > { %v3768_v4 = vpop.f32.mrb[180].mxu1 }
0x10d0   : > { %v3769_v12 = vadd.f32 %v3768_v4, %v3668_v30  ;;  %v4867_v63 = vpop.f32.mrb[181].mxu1  ;;  %v3831_v4 = vpack.c.bf16 %v7268_v40, %v7268_v40 }
0x10d1   : > { %v3771_v29 = vpop.f32.mrb[182].mxu1 }
0x10d2   : > { %v3811_v47 = vadd.f32 %v7341_v39, %v3769_v12  ;;  %v3772_v37 = vadd.f32 %v3771_v29, %v3671_v61  ;;  %v4868_v43 = vpop.f32.mrb[183].mxu1  ;;  %v3840_v12 = vpop.permute.xlu1 %3839 }
0x10d3   : > { %v3844_v63 = vrot.slane %v3840_v12, 2 }
0x10d4   : > { %v3812_v13 = vadd.f32 %v7341_v39, %v3772_v37  ;;  %v3821_v2 = vmax.f32 %v3811_v47, 0.0 }
0x10d6   : > { %v3822_v27 = vmax.f32 %v3812_v13, 0.0 }
0x10d7   : > { %v3776_v25 = vpop.f32.mrb[184].mxu1 }
0x10d8   : > { %v3832_v44 = vpack.c.bf16 %v3822_v27, %v3821_v2  ;;  %v3777_v58 = vadd.f32 %v3776_v25, %v3676_v26  ;;  %v4871_v54 = vpop.f32.mrb[185].mxu1 }
0x10d9   : > { %v3779_v52 = vpop.f32.mrb[186].mxu1 }
0x10da   : > { %v3813_v1 = vadd.f32 %v7341_v39, %v3777_v58  ;;  %v3780_v8 = vadd.f32 %v3779_v52, %v3679_v35  ;;  %v4872_v15 = vpop.f32.mrb[187].mxu1  ;;  %v3850_v48 = vsel %vm778_vm1, %v3832_v44, 0 }
0x10db   : > { %4886 = vmatpush3.bf16.xpose.msra.mxu0 %v3850_v48 }
0x10dc   : > { %v3814_v22 = vadd.f32 %v7341_v39, %v3780_v8  ;;  %4887 = vmatprep.subr.bf16.mxu0 %v7452_v32  ;;  %v3823_v11 = vmax.f32 %v3813_v1, 0.0 }
0x10de   : > { %v3824_v33 = vmax.f32 %v3814_v22, 0.0 }
0x10df   : > { %v3784_v6 = vpop.f32.mrb[188].mxu1 }
0x10e0   : > { %v3833_v20 = vpack.c.bf16 %v3824_v33, %v3823_v11  ;;  %v3785_v56 = vadd.f32 %v3784_v6, %v3684_v10  ;;  %v4875_v62 = vpop.f32.mrb[189].mxu1 }
0x10e1   : > { %v3787_v42 = vpop.f32.mrb[190].mxu1 }
0x10e2   : > { %v3815_v51 = vadd.f32 %v7341_v39, %v3785_v56  ;;  %v3788_v38 = vadd.f32 %v3787_v42, %v3687_v14  ;;  %v4876_v34 = vpop.f32.mrb[191].mxu1  ;;  %v3853_v46 = vsel %vm778_vm1, %v3833_v20, 0 }
0x10e3   : > { %4888 = vmatpush3.bf16.xpose.msra.mxu0 %v3853_v46 }
0x10e4   : > { %v3816_v7 = vadd.f32 %v7341_v39, %v3788_v38  ;;  %4889 = vmatprep.subr.bf16.mxu0 %v7452_v32  ;;  %v3825_v23 = vmax.f32 %v3815_v51, 0.0 }
0x10e6   : > { %v3826_v19 = vmax.f32 %v3816_v7, 0.0 }
0x10e7   : > { %v3792_v0 = vpop.f32.mrb[192].mxu1 }
0x10e8   : > { %v3834_v5 = vpack.c.bf16 %v3826_v19, %v3825_v23  ;;  %v3793_v18 = vadd.f32 %v3792_v0, %v3692_v28  ;;  %v4879_v31 = vpop.f32.mrb[193].mxu1 }
0x10e9   : > { %v3795_v3 = vpop.f32.mrb[194].mxu1 }
0x10ea   : > { %v3817_v36 = vadd.f32 %v7341_v39, %v3793_v18  ;;  %v3796_v30 = vadd.f32 %v3795_v3, %v3695_v50  ;;  %v4880_v24 = vpop.f32.mrb[195].mxu1  ;;  %v3856_v61 = vsel %vm778_vm1, %v3834_v5, 0 }
0x10eb   : > { %4890 = vmatpush3.bf16.xpose.msra.mxu0 %v3856_v61 }
0x10ec   : > { %v3818_v57 = vadd.f32 %v7341_v39, %v3796_v30  ;;  %4891 = vmatprep.subr.bf16.mxu0 %v7452_v32  ;;  %v3827_v26 = vmax.f32 %v3817_v36, 0.0 }
0x10ee   : > { %v3828_v59 = vmax.f32 %v3818_v57, 0.0 }
0x10ef   : > { %v3800_v35 = vpop.f32.mrb[196].mxu1 }
0x10f0   : > { %v3835_v49 = vpack.c.bf16 %v3828_v59, %v3827_v26  ;;  %v3801_v10 = vadd.f32 %v3800_v35, %v3700_v53  ;;  %v4883_v45 = vpop.f32.mrb[197].mxu1 }
0x10f1   : > { %v3803_v14 = vpop.f32.mrb[198].mxu1 }
0x10f2   : > { %v3819_v60 = vadd.f32 %v7341_v39, %v3801_v10  ;;  %v3804_v28 = vadd.f32 %v3803_v14, %v3703_v55  ;;  %v4884_v17 = vpop.f32.mrb[199].mxu1  ;;  %v3859_v50 = vsel %vm778_vm1, %v3835_v49, 0  ;;  %v3842_v55 = vshrl.u32 %v3831_v4, 16 }
0x10f3   : > { %4892 = vmatpush3.bf16.xpose.msra.mxu0 %v3859_v50 }
0x10f4   : > { %v3820_v21 = vadd.f32 %v7341_v39, %v3804_v28  ;;  %4893 = vmatprep.subr.bf16.mxu0 %v7452_v32  ;;  %v3829_v9 = vmax.f32 %v3819_v60, 0.0 }
0x10f6   : > { %v3830_v41 = vmax.f32 %v3820_v21, 0.0 }
0x10f8   : > { %v3836_v16 = vpack.c.bf16 %v3830_v41, %v3829_v9 }
0x10fa   : > { %v3862_v53 = vsel %vm778_vm1, %v3836_v16, 0 }
0x10fb   : > { %4894 = vmatpush3.bf16.xpose.msra.mxu0 %v3862_v53 }
0x1102   : > { %4896 = vmatmul.mubr.msk.bf16.vlgmr.msra.gmra.mrb[200].mxu0 %vm778_vm1, %v3842_v55 }
0x11d5   : > { %v3898_v29 = vpop.f32.mrb[200].mxu0 }
0x11d6   : > { %v3899_v39 = vadd.f32 %v3898_v29, %v3844_v63  ;;  %v4897_v47 = vpop.f32.mrb[201].mxu0 }
0x11d7   : > { %v3901_v32 = vpop.f32.mrb[202].mxu0 }
0x11d8   : > { %v4194_v37 = vmul.f32 -1.442695, %v3899_v39  ;;  %v4898_v43 = vpop.f32.mrb[203].mxu0 }
0x11da   : > { %5222 = vpow2.f32 %v4194_v37 }
0x11e4   : > { %v5223_v40 = vpop.eup %5222 }
0x11e5   : > { %v3907_v13 = vadd.f32 1.0, %v5223_v40 }
0x11e7   : > { %5224 = vrcp.f32 %v3907_v13 }
0x11f1   : > { %v5225_v2 = vpop.eup %5224 }
0x11f2   : > { %3911 = vst.msk [vmem:[%s371_s30] sm:$0x1] %vm3910_vm5, %v5225_v2 }
0x11f3   : > { %5369 = shalt.err (!%p5366_p9)
}
0x11f4   : > { %s5370_s12 = scalar_lea.hbm %s7370_s3, 16  ;;  %s5374_s22 = scalar_lea.hbm %s7421_s7, 32 }
0x11f5   : > { %p5371_p0 = scmp.ne.s32.totalorder %s7370_s3, %s5370_s12  ;;  %p5375_p13 = scmp.lt.u32.totalorder %s7370_s3, %s7421_s7 }
0x11f6   : > { %p5376_p6 = scmp.lt.u32.totalorder %s5374_s22, %s5370_s12  ;;  %p5378_p3 = scmp.lt.u32.totalorder %s5370_s12, %s7370_s3 }
0x11f7   : > { %p5372_p7 = pnand %p5371_p0, %p5639_p5 }
0x11f8   : > { %p5377_p10 = por %p5376_p6, %p5375_p13 }
0x11f9   : > { %p5373_p8 = pneg %p5372_p7 }
0x11fa   : > { %p5379_p11 = por %p5378_p3, %p5377_p10 }
0x11fc   : > { %p5380_p12 = pnand %p5379_p11, %p5373_p8 }
0x11fe   : > { %5383 = shalt.err (!%p5380_p12)
}
0x11ff   : > { %4915 = dma.vmem_to_hbm [thread:$0]  (%p5639_p5), %s7372_s15, 16, %s7370_s3, %s3913_s8  }
0x1200 PF: > { %s7454_s14 = sld [smem:[#allocation15_spill]]  ;;  %s3937_s30 = sand.u32 1, %s5418_s24  }
0x1201   : > { %p7456_p2 = scmp.ge.s32.totalorder %s5430_s27, 2  ;;  %s3938_s11 = scalar_lea.sflag [#allocation4], %s3937_s30 }
0x1206   : > { %p7455_p1 = scmp.ne.s32.totalorder %s7454_s14, 0 }
0x1208   : > { %p4932_p4 = pnand %p7456_p2, %p7455_p1 }
0x120a   : > { %5413 = dma.done.wait (!%p4932_p4), %s3938_s11, 16  }
0x120b   : > { %5415 = vsyncadd (!%p4932_p4), %s3938_s11, 4294967280  ;;  %p22_p9 = scmp.ge.s32.totalorder %s5604_s21, 4   ;;  %s7457_s24 = smov %s5422_s25 }
0x120c   : > { %s7458_s25 = smov %s5426_s26  ;;  %s7459_s26 = smov %s5635_s16 }
0x120d   : > { %s7460_s27 = smov %s5604_s21  ;;  %24 = sbr.rel (!%p22_p9) target bundleno = 9 (0x9), region = 111 }
0x1214   :  { %3942 = vsyncpa [#allocation3], 1 }
0x1215   :  { %3944 = vsyncpa [#allocation3 + $0x1], 1 }
0x1216   :  { %3945 = vsyncpa [#allocation6], 1 }
0x1217   :  { %3946 = vsyncpa [#allocation9], 1 }
0x1218   :  { %3947 = vsyncpa [#allocation4], 1 }
0x1219   :  { %3949 = vsyncpa [#allocation4 + $0x1], 1 }

</bundles_post_ra>
